<compile_context>
chip_gen: v7x
topology: tpu7x:2x2x1
jax: 0.10.0
libtpu: 0.0.40
codegen_flags: <defaults>
</compile_context>

<pallas_src>
import functools

import jax
import jax.numpy as jnp
from jax.experimental import pallas as pl
from jax.experimental.pallas import tpu as pltpu

_VMEM_LIMIT = 32 * 1024 * 1024  # safe on v5e/v6e/v7x; raises v5e's 16 MiB default


# ----------------------------------------------------------------------------
# Tile pickers
# ----------------------------------------------------------------------------
def _largest_divisor(n, target):
    """Largest divisor of n that is <= target (>= 1)."""
    t = max(1, min(n, target))
    while n % t:
        t -= 1
    return t


def _pick_m_tile(m, target):
    """M-tile for the matmul kernel: full M, or a divisor that is a multiple of 8."""
    if m <= target:
        return m
    t = (min(m, target) // 8) * 8
    while t >= 8:
        if m % t == 0:
            return t
        t -= 8
    return m


# ----------------------------------------------------------------------------
# Kernel 1: M-tiled matmul + bias (+ optional ReLU).  bf16 operands, f32 acc.
# Used for layer 1 (im2col'ed 3x3 conv) and as the small-shape fallback.
# ----------------------------------------------------------------------------
def _matmul_bias_kernel(x_ref, w_ref, b_ref, o_ref, *, relu):
    acc = jnp.dot(x_ref[...], w_ref[...], preferred_element_type=jnp.float32)
    acc = acc + b_ref[...]
    if relu:
        acc = jnp.maximum(acc, 0.0)
    o_ref[...] = acc.astype(o_ref.dtype)


def matmul_bias(xs, wm, b, *, relu, out_dtype, tm_target=4096):
    M, K = xs.shape
    N = wm.shape[1]
    tm = _pick_m_tile(M, tm_target)
    return pl.pallas_call(
        functools.partial(_matmul_bias_kernel, relu=relu),
        out_shape=jax.ShapeDtypeStruct((M, N), out_dtype),
        grid=(M // tm,),
        in_specs=[
            pl.BlockSpec((tm, K), lambda i: (i, 0)),
            pl.BlockSpec((K, N), lambda i: (0, 0)),
            pl.BlockSpec((1, N), lambda i: (0, 0)),
        ],
        out_specs=pl.BlockSpec((tm, N), lambda i: (i, 0)),
        compiler_params=pltpu.CompilerParams(
            dimension_semantics=("parallel",),
            vmem_limit_bytes=_VMEM_LIMIT),
    )(xs, wm, b.reshape(1, N))


# ----------------------------------------------------------------------------
# Kernel 2: fused space-to-depth + matmul for the 2x2 / stride-2 convs.
# Input block is the free-reshaped NHWC view (tho, 2, Wo, 2*Cin); the kernel
# moves the 2x2 taps onto lanes (aligned concat) and runs one MXU matmul.
# ----------------------------------------------------------------------------
def _s2d_matmul_kernel(x_ref, w_ref, b_ref, o_ref, *, relu):
    # x_ref: (tho, 2, Wo, 2*Cin)   w_ref: (4*Cin, Cout)
    # b_ref: (1, Cout)             o_ref: (tho*Wo, Cout)
    tho, _, wo, two_c = x_ref.shape
    x = x_ref[...]
    # fused space-to-depth: (dh, dw, ci) taps of each 2x2 patch onto lanes
    xs = jnp.concatenate([x[:, 0], x[:, 1]], axis=-1)      # (tho, Wo, 4*Cin)
    xs = xs.reshape(tho * wo, 2 * two_c)                   # Wo % 8 == 0 on this path
    acc = jnp.dot(xs, w_ref[...], preferred_element_type=jnp.float32)
    acc = acc + b_ref[...]
    if relu:
        acc = jnp.maximum(acc, 0.0)
    o_ref[...] = acc.astype(o_ref.dtype)


def conv2x2_s2(x_nhwc, wm, b, *, relu, out_dtype):
    """2x2 stride-2 conv (+bias, optional ReLU).  x: (B,H,W,C) NHWC, wm: (4C, Cout)."""
    B, H, W, C = x_nhwc.shape
    Ho, Wo = H // 2, W // 2
    Cout = wm.shape[1]
    if Wo % 8 == 0:
        # In-kernel space-to-depth: only a *free* reshape outside the kernel,
        # no XLA transpose / extra HBM round trip.
        xr = x_nhwc.reshape(B, Ho, 2, Wo, 2 * C)
        tho = _largest_divisor(Ho, max(1, 4096 // Wo))      # ~4K output rows / step
        out = pl.pallas_call(
            functools.partial(_s2d_matmul_kernel, relu=relu),
            out_shape=jax.ShapeDtypeStruct((B, Ho * Wo, Cout), out_dtype),
            grid=(B, Ho // tho),
            in_specs=[
                pl.BlockSpec((None, tho, 2, Wo, 2 * C),
                             lambda bi, ti: (bi, ti, 0, 0, 0)),
                pl.BlockSpec((4 * C, Cout), lambda bi, ti: (0, 0)),
                pl.BlockSpec((1, Cout), lambda bi, ti: (0, 0)),
            ],
            out_specs=pl.BlockSpec((None, tho * Wo, Cout),
                                   lambda bi, ti: (bi, ti, 0)),
            compiler_params=pltpu.CompilerParams(
                dimension_semantics=("parallel", "parallel"),
                vmem_limit_bytes=_VMEM_LIMIT),
        )(xr, wm, b.reshape(1, Cout))
    else:
        # Tiny spatial extent (only hit by the small demo input): XLA
        # space-to-depth + the same tiled matmul kernel.
        xs = (x_nhwc.reshape(B, Ho, 2, Wo, 2, C)
              .transpose(0, 1, 3, 2, 4, 5).reshape(B * Ho * Wo, 4 * C))
        out = matmul_bias(xs, wm, b, relu=relu, out_dtype=out_dtype, tm_target=1024)
    return out.reshape(B, Ho, Wo, Cout)


# ----------------------------------------------------------------------------
# Layer 1: 3x3 conv, stride 1, pad 1, + ReLU as ONE fused im2col matmul.
# ----------------------------------------------------------------------------
def conv3x3_relu(x_nhwc, w_pair, b_pair):
    """w_pair: (2*9*Cin, 2*Cout) block-diagonal, b_pair: (2*Cout,).

    Adjacent output columns are paired into the K/N dims so the matmul output
    is lane-dense (128 lanes) and already in the space-to-depth-friendly layout
    that layer 2 reads back with a free reshape.
    """
    B, H, W, C = x_nhwc.shape
    Cout2 = w_pair.shape[1]                                   # 2 * 64
    # Wrapper-side im2col slab, K = 9*Cin = 36 (small 4-channel tensor).
    xp = jnp.pad(x_nhwc, ((0, 0), (1, 1), (1, 1), (0, 0)))
    cols = [xp[:, dh:dh + H, dw:dw + W, :] for dh in range(3) for dw in range(3)]
    slab = jnp.concatenate(cols, axis=-1)                     # (B, H, W, 36)
    slab = slab.reshape(B * H * (W // 2), 2 * 9 * C)          # (M, 72) -- free reshape
    out = matmul_bias(slab, w_pair, b_pair, relu=True,
                      out_dtype=jnp.bfloat16, tm_target=8192)  # (M, 128), lane-dense
    return out.reshape(B, H, W, Cout2 // 2)                   # (B, H, W, 64) -- free


# ----------------------------------------------------------------------------
# Parameter setup (glue): deterministic init + spectral normalization
# (nn.utils.spectral_norm semantics: one power iteration on the (Cout, -1)
# reshaped weight, then W / sigma), followed by conversion to bf16 matmul mats.
# ----------------------------------------------------------------------------
def spectral_normalize(w, key, n_iter=1, eps=1e-12):
    cout = w.shape[0]
    wm = w.reshape(cout, -1)
    u = jax.random.normal(key, (cout,), dtype=w.dtype)
    u = u / (jnp.linalg.norm(u) + eps)
    v = u
    for _ in range(max(1, n_iter)):
        v = wm.T @ u
        v = v / (jnp.linalg.norm(v) + eps)
        u = wm @ v
        u = u / (jnp.linalg.norm(u) + eps)
    sigma = jnp.dot(u, wm @ v)
    return w / sigma


def init_params(key, channel_in=4):
    specs = [
        (64, channel_in, 3, 3),
        (128, 64, 2, 2),
        (256, 128, 2, 2),
        (512, 256, 2, 2),
        (512, 512, 2, 2),
    ]
    params = []
    for i, (co, ci, kh, kw) in enumerate(specs):
        kw_key, kb_key, ku_key = jax.random.split(jax.random.fold_in(key, i), 3)
        fan_in = ci * kh * kw
        bound = 1.0 / (fan_in ** 0.5)
        w = jax.random.uniform(kw_key, (co, ci, kh, kw), jnp.float32, -bound, bound)
        b = jax.random.uniform(kb_key, (co,), jnp.float32, -bound, bound)
        w = spectral_normalize(w, ku_key)
        params.append((w, b))
    return params


def prepare_params(raw_params):
    """OIHW conv weights -> bf16 matmul matrices for the kernels (f32 biases)."""
    w1, b1 = raw_params[0]
    co1, ci1 = w1.shape[0], w1.shape[1]
    # (Cout, Cin, 3, 3) -> (kh, kw, ci, co) -> (9*Cin, Cout)
    wm1 = w1.transpose(2, 3, 1, 0).reshape(9 * ci1, co1)
    z = jnp.zeros_like(wm1)
    # Block-diagonal column pairing: (72, 128) so layer-1 output is lane-dense.
    w_pair = jnp.concatenate(
        [jnp.concatenate([wm1, z], axis=1), jnp.concatenate([z, wm1], axis=1)], axis=0)
    b_pair = jnp.concatenate([b1, b1])
    prepped = [(w_pair.astype(jnp.bfloat16), b_pair.astype(jnp.float32))]
    for w, b in raw_params[1:]:
        co, ci = w.shape[0], w.shape[1]
        # (Cout, Cin, 2, 2) -> (dh, dw, ci, co) -> (4*Cin, Cout)
        wm = w.transpose(2, 3, 1, 0).reshape(4 * ci, co)
        prepped.append((wm.astype(jnp.bfloat16), b.astype(jnp.float32)))
    return prepped


# ----------------------------------------------------------------------------
# Forward pass (matches ColorTransformD.forward)
# ----------------------------------------------------------------------------
def color_transform_d(params, line, pic):
    """line: (B,1,H,W), pic: (B,3,H,W) NCHW f32 -> (B, 512, H/16, W/16) f32."""
    x = jnp.concatenate([line, pic], axis=1)                     # (B, 4, H, W)
    x = jnp.transpose(x, (0, 2, 3, 1)).astype(jnp.bfloat16)      # NHWC, bf16 MXU inputs
    (w1, b1), (w2, b2), (w3, b3), (w4, b4), (w5, b5) = params
    x = conv3x3_relu(x, w1, b1)                                  # (B, H,    W,    64)
    x = conv2x2_s2(x, w2, b2, relu=True, out_dtype=jnp.bfloat16)   # (B, H/2,  W/2,  128)
    x = conv2x2_s2(x, w3, b3, relu=True, out_dtype=jnp.bfloat16)   # (B, H/4,  W/4,  256)
    x = conv2x2_s2(x, w4, b4, relu=True, out_dtype=jnp.bfloat16)   # (B, H/8,  W/8,  512)
    x = conv2x2_s2(x, w5, b5, relu=False, out_dtype=jnp.float32)   # (B, H/16, W/16, 512)
    return jnp.transpose(x, (0, 3, 1, 2))                        # back to NCHW


if __name__ == "__main__":
    key = jax.random.PRNGKey(0)
    kp, kl, ki = jax.random.split(key, 3)
    params = prepare_params(init_params(kp, channel_in=4))

    B, H, W = 2, 32, 32                    # small, /16-divisible spatial size
    line = jax.random.normal(kl, (B, 1, H, W), jnp.float32)
    pic = jax.random.normal(ki, (B, 3, H, W), jnp.float32)

    out = jax.jit(color_transform_d)(params, line, pic)
    out = jax.block_until_ready(out)
    assert out.shape == (B, 512, H // 16, W // 16), out.shape
    assert out.dtype == jnp.float32
    print("KERNEL_OK")
</pallas_src>

<mosaic_0001>
module attributes {stable_mosaic.version = 11 : i64} {
  func.func @_matmul_bias_kernel(%arg0: i32, %arg1: memref<1024x72xbf16, #tpu.memory_space<vmem>>, %arg2: memref<72x128xbf16, #tpu.memory_space<vmem>>, %arg3: memref<1x128xf32, #tpu.memory_space<vmem>>, %arg4: memref<1024x128xbf16, #tpu.memory_space<vmem>>) attributes {dimension_semantics = [#tpu.dimension_semantics<parallel>], iteration_bounds = array<i64: 1>, scalar_prefetch = 0 : i64, scratch_operands = 0 : i64, tpu.core_type = #tpu.core_type<tc>, window_params = [{transform_indices = @transform_0, window_bounds = array<i64: 1024, 72>}, {pipeline_mode = #tpu.pipeline_mode<synchronous>, transform_indices = @transform_1, window_bounds = array<i64: 72, 128>}, {pipeline_mode = #tpu.pipeline_mode<synchronous>, transform_indices = @transform_2, window_bounds = array<i64: 1, 128>}, {transform_indices = @transform_3, window_bounds = array<i64: 1024, 128>}]} {
    %c0 = arith.constant 0 : index
    %c0_0 = arith.constant 0 : index
    %0 = vector.load %arg1[%c0, %c0_0] : memref<1024x72xbf16, #tpu.memory_space<vmem>>, vector<1024x72xbf16>
    %c0_1 = arith.constant 0 : index
    %c0_2 = arith.constant 0 : index
    %1 = vector.load %arg2[%c0_1, %c0_2] : memref<72x128xbf16, #tpu.memory_space<vmem>>, vector<72x128xbf16>
    %cst = arith.constant dense<0.000000e+00> : vector<1024x128xf32>
    %2 = tpu.matmul %0, %1, %cst {dimension_numbers = #tpu.dot_dimension_numbers<[1], [0], [0], [1], [0, 0, 1, 1], [], []>} : vector<1024x72xbf16>, vector<72x128xbf16>, vector<1024x128xf32> -> vector<1024x128xf32>
    %c0_3 = arith.constant 0 : index
    %c0_4 = arith.constant 0 : index
    %3 = vector.load %arg3[%c0_3, %c0_4] : memref<1x128xf32, #tpu.memory_space<vmem>>, vector<1x128xf32>
    %4 = vector.broadcast %3 : vector<1x128xf32> to vector<1024x128xf32>
    %5 = arith.addf %2, %4 : vector<1024x128xf32>
    %cst_5 = arith.constant 0.000000e+00 : f32
    %6 = vector.broadcast %cst_5 : f32 to vector<1024x128xf32>
    %7 = arith.maximumf %5, %6 : vector<1024x128xf32>
    %8 = arith.truncf %7 : vector<1024x128xf32> to vector<1024x128xbf16>
    %c0_6 = arith.constant 0 : index
    %c0_7 = arith.constant 0 : index
    %9 = vector.load %arg4[%c0_6, %c0_7] : memref<1024x128xbf16, #tpu.memory_space<vmem>>, vector<1024x128xbf16>
    tpu.vector_store %arg4[%c0_6, %c0_7], %8 {strides = array<i32>} : memref<1024x128xbf16, #tpu.memory_space<vmem>>, vector<1024x128xbf16>,
    return
  }
  func.func @transform_0(%arg0: i32) -> (i32, i32) {
    %c0_i32 = arith.constant 0 : i32
    %c0_i32_0 = arith.constant 0 : i32
    return %arg0, %c0_i32 : i32, i32
  }
  func.func @transform_1(%arg0: i32) -> (i32, i32) {
    %c0_i32 = arith.constant 0 : i32
    %c0_i32_0 = arith.constant 0 : i32
    %c0_i32_1 = arith.constant 0 : i32
    return %c0_i32, %c0_i32_0 : i32, i32
  }
  func.func @transform_2(%arg0: i32) -> (i32, i32) {
    %c0_i32 = arith.constant 0 : i32
    %c0_i32_0 = arith.constant 0 : i32
    %c0_i32_1 = arith.constant 0 : i32
    return %c0_i32, %c0_i32_0 : i32, i32
  }
  func.func @transform_3(%arg0: i32) -> (i32, i32) {
    %c0_i32 = arith.constant 0 : i32
    %c0_i32_0 = arith.constant 0 : i32
    return %arg0, %c0_i32 : i32, i32
  }
}

module attributes {stable_mosaic.version = 11 : i64} {
  func.func @_s2d_matmul_kernel(%arg0: i32, %arg1: i32, %arg2: memref<1x16x2x16x128xbf16, #tpu.memory_space<vmem>>, %arg3: memref<256x128xbf16, #tpu.memory_space<vmem>>, %arg4: memref<1x128xf32, #tpu.memory_space<vmem>>, %arg5: memref<1x256x128xbf16, #tpu.memory_space<vmem>>) attributes {dimension_semantics = [#tpu.dimension_semantics<parallel>, #tpu.dimension_semantics<parallel>], iteration_bounds = array<i64: 2, 1>, scalar_prefetch = 0 : i64, scratch_operands = 0 : i64, tpu.core_type = #tpu.core_type<tc>, window_params = [{transform_indices = @transform_0, window_bounds = array<i64: 1, 16, 2, 16, 128>}, {pipeline_mode = #tpu.pipeline_mode<synchronous>, transform_indices = @transform_1, window_bounds = array<i64: 256, 128>}, {pipeline_mode = #tpu.pipeline_mode<synchronous>, transform_indices = @transform_2, window_bounds = array<i64: 1, 128>}, {transform_indices = @transform_3, window_bounds = array<i64: 1, 256, 128>}]} {
    %c0 = arith.constant 0 : index
    %c0_0 = arith.constant 0 : index
    %c0_1 = arith.constant 0 : index
    %c0_2 = arith.constant 0 : index
    %c0_3 = arith.constant 0 : index
    %0 = vector.load %arg2[%c0, %c0_0, %c0_1, %c0_2, %c0_3] : memref<1x16x2x16x128xbf16, #tpu.memory_space<vmem>>, vector<1x16x2x16x128xbf16>
    %1 = vector.shape_cast %0 : vector<1x16x2x16x128xbf16> to vector<16x2x16x128xbf16>
    %2 = vector.extract_strided_slice %1 {offsets = [0, 0, 0, 0], sizes = [16, 1, 16, 128], strides = [1, 1, 1, 1]} : vector<16x2x16x128xbf16> to vector<16x1x16x128xbf16>
    %3 = vector.shape_cast %2 : vector<16x1x16x128xbf16> to vector<16x16x128xbf16>
    %4 = vector.extract_strided_slice %1 {offsets = [0, 1, 0, 0], sizes = [16, 1, 16, 128], strides = [1, 1, 1, 1]} : vector<16x2x16x128xbf16> to vector<16x1x16x128xbf16>
    %5 = vector.shape_cast %4 : vector<16x1x16x128xbf16> to vector<16x16x128xbf16>
    %6 = tpu.concatenate %3, %5 in 2 : vector<16x16x128xbf16>, vector<16x16x128xbf16> -> vector<16x16x256xbf16>
    %7 = vector.shape_cast %6 : vector<16x16x256xbf16> to vector<256x256xbf16>
    %c0_4 = arith.constant 0 : index
    %c0_5 = arith.constant 0 : index
    %8 = vector.load %arg3[%c0_4, %c0_5] : memref<256x128xbf16, #tpu.memory_space<vmem>>, vector<256x128xbf16>
    %cst = arith.constant dense<0.000000e+00> : vector<256x128xf32>
    %9 = tpu.matmul %7, %8, %cst {dimension_numbers = #tpu.dot_dimension_numbers<[1], [0], [0], [1], [0, 0, 1, 1], [], []>} : vector<256x256xbf16>, vector<256x128xbf16>, vector<256x128xf32> -> vector<256x128xf32>
    %c0_6 = arith.constant 0 : index
    %c0_7 = arith.constant 0 : index
    %10 = vector.load %arg4[%c0_6, %c0_7] : memref<1x128xf32, #tpu.memory_space<vmem>>, vector<1x128xf32>
    %11 = vector.broadcast %10 : vector<1x128xf32> to vector<256x128xf32>
    %12 = arith.addf %9, %11 : vector<256x128xf32>
    %cst_8 = arith.constant 0.000000e+00 : f32
    %13 = vector.broadcast %cst_8 : f32 to vector<256x128xf32>
    %14 = arith.maximumf %12, %13 : vector<256x128xf32>
    %15 = arith.truncf %14 : vector<256x128xf32> to vector<256x128xbf16>
    %c0_9 = arith.constant 0 : index
    %c0_10 = arith.constant 0 : index
    %c0_11 = arith.constant 0 : index
    %16 = vector.load %arg5[%c0_9, %c0_10, %c0_11] : memref<1x256x128xbf16, #tpu.memory_space<vmem>>, vector<1x256x128xbf16>
    %17 = vector.shape_cast %16 : vector<1x256x128xbf16> to vector<256x128xbf16>
    %18 = vector.shape_cast %15 : vector<256x128xbf16> to vector<1x256x128xbf16>
    tpu.vector_store %arg5[%c0_9, %c0_10, %c0_11], %18 {strides = array<i32>} : memref<1x256x128xbf16, #tpu.memory_space<vmem>>, vector<1x256x128xbf16>,
    return
  }
  func.func @transform_0(%arg0: i32, %arg1: i32) -> (i32, i32, i32, i32, i32) {
    %c0_i32 = arith.constant 0 : i32
    %c0_i32_0 = arith.constant 0 : i32
    %c0_i32_1 = arith.constant 0 : i32
    %c0_i32_2 = arith.constant 0 : i32
    return %arg0, %arg1, %c0_i32, %c0_i32_0, %c0_i32_1 : i32, i32, i32, i32, i32
  }
  func.func @transform_1(%arg0: i32, %arg1: i32) -> (i32, i32) {
    %c0_i32 = arith.constant 0 : i32
    %c0_i32_0 = arith.constant 0 : i32
    %c0_i32_1 = arith.constant 0 : i32
    return %c0_i32, %c0_i32_0 : i32, i32
  }
  func.func @transform_2(%arg0: i32, %arg1: i32) -> (i32, i32) {
    %c0_i32 = arith.constant 0 : i32
    %c0_i32_0 = arith.constant 0 : i32
    %c0_i32_1 = arith.constant 0 : i32
    return %c0_i32, %c0_i32_0 : i32, i32
  }
  func.func @transform_3(%arg0: i32, %arg1: i32) -> (i32, i32, i32) {
    %c0_i32 = arith.constant 0 : i32
    %c0_i32_0 = arith.constant 0 : i32
    return %arg0, %arg1, %c0_i32 : i32, i32, i32
  }
}

module attributes {stable_mosaic.version = 11 : i64} {
  func.func @_s2d_matmul_kernel(%arg0: i32, %arg1: i32, %arg2: memref<1x8x2x8x256xbf16, #tpu.memory_space<vmem>>, %arg3: memref<512x256xbf16, #tpu.memory_space<vmem>>, %arg4: memref<1x256xf32, #tpu.memory_space<vmem>>, %arg5: memref<1x64x256xbf16, #tpu.memory_space<vmem>>) attributes {dimension_semantics = [#tpu.dimension_semantics<parallel>, #tpu.dimension_semantics<parallel>], iteration_bounds = array<i64: 2, 1>, scalar_prefetch = 0 : i64, scratch_operands = 0 : i64, tpu.core_type = #tpu.core_type<tc>, window_params = [{transform_indices = @transform_0, window_bounds = array<i64: 1, 8, 2, 8, 256>}, {pipeline_mode = #tpu.pipeline_mode<synchronous>, transform_indices = @transform_1, window_bounds = array<i64: 512, 256>}, {pipeline_mode = #tpu.pipeline_mode<synchronous>, transform_indices = @transform_2, window_bounds = array<i64: 1, 256>}, {transform_indices = @transform_3, window_bounds = array<i64: 1, 64, 256>}]} {
    %c0 = arith.constant 0 : index
    %c0_0 = arith.constant 0 : index
    %c0_1 = arith.constant 0 : index
    %c0_2 = arith.constant 0 : index
    %c0_3 = arith.constant 0 : index
    %0 = vector.load %arg2[%c0, %c0_0, %c0_1, %c0_2, %c0_3] : memref<1x8x2x8x256xbf16, #tpu.memory_space<vmem>>, vector<1x8x2x8x256xbf16>
    %1 = vector.shape_cast %0 : vector<1x8x2x8x256xbf16> to vector<8x2x8x256xbf16>
    %2 = vector.extract_strided_slice %1 {offsets = [0, 0, 0, 0], sizes = [8, 1, 8, 256], strides = [1, 1, 1, 1]} : vector<8x2x8x256xbf16> to vector<8x1x8x256xbf16>
    %3 = vector.shape_cast %2 : vector<8x1x8x256xbf16> to vector<8x8x256xbf16>
    %4 = vector.extract_strided_slice %1 {offsets = [0, 1, 0, 0], sizes = [8, 1, 8, 256], strides = [1, 1, 1, 1]} : vector<8x2x8x256xbf16> to vector<8x1x8x256xbf16>
    %5 = vector.shape_cast %4 : vector<8x1x8x256xbf16> to vector<8x8x256xbf16>
    %6 = tpu.concatenate %3, %5 in 2 : vector<8x8x256xbf16>, vector<8x8x256xbf16> -> vector<8x8x512xbf16>
    %7 = vector.shape_cast %6 : vector<8x8x512xbf16> to vector<64x512xbf16>
    %c0_4 = arith.constant 0 : index
    %c0_5 = arith.constant 0 : index
    %8 = vector.load %arg3[%c0_4, %c0_5] : memref<512x256xbf16, #tpu.memory_space<vmem>>, vector<512x256xbf16>
    %cst = arith.constant dense<0.000000e+00> : vector<64x256xf32>
    %9 = tpu.matmul %7, %8, %cst {dimension_numbers = #tpu.dot_dimension_numbers<[1], [0], [0], [1], [0, 0, 1, 1], [], []>} : vector<64x512xbf16>, vector<512x256xbf16>, vector<64x256xf32> -> vector<64x256xf32>
    %c0_6 = arith.constant 0 : index
    %c0_7 = arith.constant 0 : index
    %10 = vector.load %arg4[%c0_6, %c0_7] : memref<1x256xf32, #tpu.memory_space<vmem>>, vector<1x256xf32>
    %11 = vector.broadcast %10 : vector<1x256xf32> to vector<64x256xf32>
    %12 = arith.addf %9, %11 : vector<64x256xf32>
    %cst_8 = arith.constant 0.000000e+00 : f32
    %13 = vector.broadcast %cst_8 : f32 to vector<64x256xf32>
    %14 = arith.maximumf %12, %13 : vector<64x256xf32>
    %15 = arith.truncf %14 : vector<64x256xf32> to vector<64x256xbf16>
    %c0_9 = arith.constant 0 : index
    %c0_10 = arith.constant 0 : index
    %c0_11 = arith.constant 0 : index
    %16 = vector.load %arg5[%c0_9, %c0_10, %c0_11] : memref<1x64x256xbf16, #tpu.memory_space<vmem>>, vector<1x64x256xbf16>
    %17 = vector.shape_cast %16 : vector<1x64x256xbf16> to vector<64x256xbf16>
    %18 = vector.shape_cast %15 : vector<64x256xbf16> to vector<1x64x256xbf16>
    tpu.vector_store %arg5[%c0_9, %c0_10, %c0_11], %18 {strides = array<i32>} : memref<1x64x256xbf16, #tpu.memory_space<vmem>>, vector<1x64x256xbf16>,
    return
  }
  func.func @transform_0(%arg0: i32, %arg1: i32) -> (i32, i32, i32, i32, i32) {
    %c0_i32 = arith.constant 0 : i32
    %c0_i32_0 = arith.constant 0 : i32
    %c0_i32_1 = arith.constant 0 : i32
    %c0_i32_2 = arith.constant 0 : i32
    return %arg0, %arg1, %c0_i32, %c0_i32_0, %c0_i32_1 : i32, i32, i32, i32, i32
  }
  func.func @transform_1(%arg0: i32, %arg1: i32) -> (i32, i32) {
    %c0_i32 = arith.constant 0 : i32
    %c0_i32_0 = arith.constant 0 : i32
    %c0_i32_1 = arith.constant 0 : i32
    return %c0_i32, %c0_i32_0 : i32, i32
  }
  func.func @transform_2(%arg0: i32, %arg1: i32) -> (i32, i32) {
    %c0_i32 = arith.constant 0 : i32
    %c0_i32_0 = arith.constant 0 : i32
    %c0_i32_1 = arith.constant 0 : i32
    return %c0_i32, %c0_i32_0 : i32, i32
  }
  func.func @transform_3(%arg0: i32, %arg1: i32) -> (i32, i32, i32) {
    %c0_i32 = arith.constant 0 : i32
    %c0_i32_0 = arith.constant 0 : i32
    return %arg0, %arg1, %c0_i32 : i32, i32, i32
  }
}

module attributes {stable_mosaic.version = 11 : i64} {
  func.func @_matmul_bias_kernel(%arg0: i32, %arg1: memref<32x1024xbf16, #tpu.memory_space<vmem>>, %arg2: memref<1024x512xbf16, #tpu.memory_space<vmem>>, %arg3: memref<1x512xf32, #tpu.memory_space<vmem>>, %arg4: memref<32x512xbf16, #tpu.memory_space<vmem>>) attributes {dimension_semantics = [#tpu.dimension_semantics<parallel>], iteration_bounds = array<i64: 1>, scalar_prefetch = 0 : i64, scratch_operands = 0 : i64, tpu.core_type = #tpu.core_type<tc>, window_params = [{transform_indices = @transform_0, window_bounds = array<i64: 32, 1024>}, {pipeline_mode = #tpu.pipeline_mode<synchronous>, transform_indices = @transform_1, window_bounds = array<i64: 1024, 512>}, {pipeline_mode = #tpu.pipeline_mode<synchronous>, transform_indices = @transform_2, window_bounds = array<i64: 1, 512>}, {transform_indices = @transform_3, window_bounds = array<i64: 32, 512>}]} {
    %c0 = arith.constant 0 : index
    %c0_0 = arith.constant 0 : index
    %0 = vector.load %arg1[%c0, %c0_0] : memref<32x1024xbf16, #tpu.memory_space<vmem>>, vector<32x1024xbf16>
    %c0_1 = arith.constant 0 : index
    %c0_2 = arith.constant 0 : index
    %1 = vector.load %arg2[%c0_1, %c0_2] : memref<1024x512xbf16, #tpu.memory_space<vmem>>, vector<1024x512xbf16>
    %cst = arith.constant dense<0.000000e+00> : vector<32x512xf32>
    %2 = tpu.matmul %0, %1, %cst {dimension_numbers = #tpu.dot_dimension_numbers<[1], [0], [0], [1], [0, 0, 1, 1], [], []>} : vector<32x1024xbf16>, vector<1024x512xbf16>, vector<32x512xf32> -> vector<32x512xf32>
    %c0_3 = arith.constant 0 : index
    %c0_4 = arith.constant 0 : index
    %3 = vector.load %arg3[%c0_3, %c0_4] : memref<1x512xf32, #tpu.memory_space<vmem>>, vector<1x512xf32>
    %4 = vector.broadcast %3 : vector<1x512xf32> to vector<32x512xf32>
    %5 = arith.addf %2, %4 : vector<32x512xf32>
    %cst_5 = arith.constant 0.000000e+00 : f32
    %6 = vector.broadcast %cst_5 : f32 to vector<32x512xf32>
    %7 = arith.maximumf %5, %6 : vector<32x512xf32>
    %8 = arith.truncf %7 : vector<32x512xf32> to vector<32x512xbf16>
    %c0_6 = arith.constant 0 : index
    %c0_7 = arith.constant 0 : index
    %9 = vector.load %arg4[%c0_6, %c0_7] : memref<32x512xbf16, #tpu.memory_space<vmem>>, vector<32x512xbf16>
    tpu.vector_store %arg4[%c0_6, %c0_7], %8 {strides = array<i32>} : memref<32x512xbf16, #tpu.memory_space<vmem>>, vector<32x512xbf16>,
    return
  }
  func.func @transform_0(%arg0: i32) -> (i32, i32) {
    %c0_i32 = arith.constant 0 : i32
    %c0_i32_0 = arith.constant 0 : i32
    return %arg0, %c0_i32 : i32, i32
  }
  func.func @transform_1(%arg0: i32) -> (i32, i32) {
    %c0_i32 = arith.constant 0 : i32
    %c0_i32_0 = arith.constant 0 : i32
    %c0_i32_1 = arith.constant 0 : i32
    return %c0_i32, %c0_i32_0 : i32, i32
  }
  func.func @transform_2(%arg0: i32) -> (i32, i32) {
    %c0_i32 = arith.constant 0 : i32
    %c0_i32_0 = arith.constant 0 : i32
    %c0_i32_1 = arith.constant 0 : i32
    return %c0_i32, %c0_i32_0 : i32, i32
  }
  func.func @transform_3(%arg0: i32) -> (i32, i32) {
    %c0_i32 = arith.constant 0 : i32
    %c0_i32_0 = arith.constant 0 : i32
    return %arg0, %c0_i32 : i32, i32
  }
}

module attributes {stable_mosaic.version = 11 : i64} {
  func.func @_matmul_bias_kernel(%arg0: i32, %arg1: memref<8x2048xbf16, #tpu.memory_space<vmem>>, %arg2: memref<2048x512xbf16, #tpu.memory_space<vmem>>, %arg3: memref<1x512xf32, #tpu.memory_space<vmem>>, %arg4: memref<8x512xf32, #tpu.memory_space<vmem>>) attributes {dimension_semantics = [#tpu.dimension_semantics<parallel>], iteration_bounds = array<i64: 1>, scalar_prefetch = 0 : i64, scratch_operands = 0 : i64, tpu.core_type = #tpu.core_type<tc>, window_params = [{transform_indices = @transform_0, window_bounds = array<i64: 8, 2048>}, {pipeline_mode = #tpu.pipeline_mode<synchronous>, transform_indices = @transform_1, window_bounds = array<i64: 2048, 512>}, {pipeline_mode = #tpu.pipeline_mode<synchronous>, transform_indices = @transform_2, window_bounds = array<i64: 1, 512>}, {transform_indices = @transform_3, window_bounds = array<i64: 8, 512>}]} {
    %c0 = arith.constant 0 : index
    %c0_0 = arith.constant 0 : index
    %0 = vector.load %arg1[%c0, %c0_0] : memref<8x2048xbf16, #tpu.memory_space<vmem>>, vector<8x2048xbf16>
    %c0_1 = arith.constant 0 : index
    %c0_2 = arith.constant 0 : index
    %1 = vector.load %arg2[%c0_1, %c0_2] : memref<2048x512xbf16, #tpu.memory_space<vmem>>, vector<2048x512xbf16>
    %cst = arith.constant dense<0.000000e+00> : vector<8x512xf32>
    %2 = tpu.matmul %0, %1, %cst {dimension_numbers = #tpu.dot_dimension_numbers<[1], [0], [0], [1], [0, 0, 1, 1], [], []>} : vector<8x2048xbf16>, vector<2048x512xbf16>, vector<8x512xf32> -> vector<8x512xf32>
    %c0_3 = arith.constant 0 : index
    %c0_4 = arith.constant 0 : index
    %3 = vector.load %arg3[%c0_3, %c0_4] : memref<1x512xf32, #tpu.memory_space<vmem>>, vector<1x512xf32>
    %4 = vector.broadcast %3 : vector<1x512xf32> to vector<8x512xf32>
    %5 = arith.addf %2, %4 : vector<8x512xf32>
    %c0_5 = arith.constant 0 : index
    %c0_6 = arith.constant 0 : index
    %6 = vector.load %arg4[%c0_5, %c0_6] : memref<8x512xf32, #tpu.memory_space<vmem>>, vector<8x512xf32>
    tpu.vector_store %arg4[%c0_5, %c0_6], %5 {strides = array<i32>} : memref<8x512xf32, #tpu.memory_space<vmem>>, vector<8x512xf32>,
    return
  }
  func.func @transform_0(%arg0: i32) -> (i32, i32) {
    %c0_i32 = arith.constant 0 : i32
    %c0_i32_0 = arith.constant 0 : i32
    return %arg0, %c0_i32 : i32, i32
  }
  func.func @transform_1(%arg0: i32) -> (i32, i32) {
    %c0_i32 = arith.constant 0 : i32
    %c0_i32_0 = arith.constant 0 : i32
    %c0_i32_1 = arith.constant 0 : i32
    return %c0_i32, %c0_i32_0 : i32, i32
  }
  func.func @transform_2(%arg0: i32) -> (i32, i32) {
    %c0_i32 = arith.constant 0 : i32
    %c0_i32_0 = arith.constant 0 : i32
    %c0_i32_1 = arith.constant 0 : i32
    return %c0_i32, %c0_i32_0 : i32, i32
  }
  func.func @transform_3(%arg0: i32) -> (i32, i32) {
    %c0_i32 = arith.constant 0 : i32
    %c0_i32_0 = arith.constant 0 : i32
    return %arg0, %c0_i32 : i32, i32
  }
}

</mosaic_0001>

<bundles_post_ra>
// kernel: color_transform_d.6
= control target key start
LH: loop header
LB: loop body
LE: loop exit
PB: predicated region body
PF: predicated region fallthrough
CT: control target
= control target key end

     0   :  { %s1513_s12 = smov 0   ;;  %s1515_s13 = smov 0   ;;  %s1687_s0 = inlined_call_operand.vmem [shape: bf16[2,16,2,16,128], index: 0, kind: input, shape index: {}]   ;;  %s1688_s1 = inlined_call_operand.vmem [shape: bf16[256,128], index: 1, kind: input, shape index: {}]   ;;  %s1689_s2 = inlined_call_operand.vmem [shape: f32[1,128], index: 2, kind: input, shape index: {}]   ;;  %s1690_s3 = inlined_call_operand.vmem [shape: bf16[2,256,128], index: 3, kind: output, shape index: {}]  }
   0x1   :  { %s1517_s14 = smov 0  }
   0x2 LB: > { %s25_s15 = sadd.s32 1, %s1487_s13  ;;  %p1052_p0 = scmp.ge.s32.totalorder %s1491_s14, 1  ;;  %s1491_s14 = sphi %s1517_s14, %s13_s14   ;;  %s1487_s13 = sphi %s1515_s13, %s1692_s13   ;;  %s1483_s12 = sphi %s1513_s12, %s1691_s12  }
   0x3   : > { %p27_p1 = scmp.ge.s32.totalorder %s25_s15, 2  ;;  %p159_p2 = scmp.lt.s32.totalorder %s1491_s14, 3 }
   0x5   : > { %s1694_s15 = smov (%p27_p1, %s25_s15), 0  ;;  %p160_p3 = pnand %p1052_p0, %p159_p2 }
   0x6   : > { %v1421_v0 = vld [vmem:[%s1688_s1 + $0x40] sm:$0xff] (!%p160_p3)   ;;  %v1423_v2 = vld [vmem:[%s1688_s1 + $0x48] sm:$0xff] (!%p160_p3)   ;;  %p193_p4 = scmp.lt.s32.totalorder (!%p160_p3), %s1483_s12, 1  ;;  %v1425_v4 = vld [vmem:[%s1688_s1 + $0x50] sm:$0xff] (!%p160_p3)  }
   0x7   : > { %163 = sbr.rel (%p160_p3) target bundleno = 320 (0x140), region = 32  ;;  %v1422_v1 = vld [vmem:[%s1688_s1] sm:$0xff] (!%p160_p3)   ;;  %1269 = vmatprep.subr.bf16.mxu0 (!%p160_p3), %v1421_v0  ;;  %1381 = vmatprep.subr.bf16.mxu1 (!%p160_p3), %v1421_v0  ;;  %v1424_v3 = vld [vmem:[%s1688_s1 + $0x8] sm:$0xff] (!%p160_p3)   ;;  %v1426_v5 = vld [vmem:[%s1688_s1 + $0x10] sm:$0xff] (!%p160_p3)  }
   0x8   : > { %1270 = vmatpush3.bf16.msra.mxu0 (!%p160_p3), %v1422_v1  ;;  %1389 = vmatpush3.bf16.msra.mxu1 (!%p160_p3), %v1422_v1  ;;  %v1427_v6 = vld [vmem:[%s1688_s1 + $0x58] sm:$0xff] (!%p160_p3)   ;;  %v1429_v8 = vld [vmem:[%s1688_s1 + $0x60] sm:$0xff] (!%p160_p3)   ;;  %v1431_v10 = vld [vmem:[%s1688_s1 + $0x68] sm:$0xff] (!%p160_p3)  }
   0x9   : > { %1271 = vmatprep.subr.bf16.mxu0 (!%p160_p3), %v1423_v2  ;;  %1382 = vmatprep.subr.bf16.mxu1 (!%p160_p3), %v1423_v2  ;;  %v1428_v7 = vld [vmem:[%s1688_s1 + $0x18] sm:$0xff] (!%p160_p3)   ;;  %v1430_v9 = vld [vmem:[%s1688_s1 + $0x20] sm:$0xff] (!%p160_p3)   ;;  %v1432_v13 = vld [vmem:[%s1688_s1 + $0x28] sm:$0xff] (!%p160_p3)  }
   0xa   : > { %v1433_v14 = vld [vmem:[%s1688_s1 + $0x70] sm:$0xff] (!%p160_p3)   ;;  %v1435_v16 = vld [vmem:[%s1688_s1 + $0x78] sm:$0xff] (!%p160_p3)   ;;  %v1622_v50 = vld [vmem:[%s1689_s2] ss:$0 sm:$0xff] (!%p160_p3) }
   0xb   : > { %v1434_v15 = vld [vmem:[%s1688_s1 + $0x30] sm:$0xff] (!%p160_p3)   ;;  %v1436_v17 = vld [vmem:[%s1688_s1 + $0x38] sm:$0xff] (!%p160_p3)  }
   0xc   : > { %1272 = vmatpush3.bf16.msra.mxu0 (!%p160_p3), %v1424_v3  ;;  %1390 = vmatpush3.bf16.msra.mxu1 (!%p160_p3), %v1424_v3 }
   0xd   : > { %1273 = vmatprep.subr.bf16.mxu0 (!%p160_p3), %v1425_v4  ;;  %1383 = vmatprep.subr.bf16.mxu1 (!%p160_p3), %v1425_v4 }
   0xe   : > { %s1696_s12 = smov (!%p193_p4, %s1483_s12), 1 }
   0xf   : > { %s1140_s30 = sshll.u32 %s1696_s12, 8  ;;  %s1141_s4 = sshll.u32 %s1696_s12, 7 }
  0x10   : > { %1274 = vmatpush3.bf16.msra.mxu0 %v1426_v5  ;;  %1391 = vmatpush3.bf16.msra.mxu1 %v1426_v5  ;;  %s1564_s10 = scalar_lea.vmem %s1687_s0, %s1140_s30  ;;  %s1632_s7 = scalar_lea.vmem %s1690_s3, %s1141_s4 }
  0x11   : > { %1275 = vmatprep.subr.bf16.mxu0 %v1427_v6  ;;  %1384 = vmatprep.subr.bf16.mxu1 %v1427_v6  ;;  %v1437_v11 = vld [vmem:[%s1564_s10 + $0x8] sm:$0xff]   ;;  %v1439_v18 = vld [vmem:[%s1564_s10] sm:$0xff]   ;;  %v1441_v20 = vld [vmem:[%s1564_s10 + $0x18] sm:$0xff]  }
  0x12   : > { %v1438_v12 = vld [vmem:[%s1564_s10 + $0x88] sm:$0xff]   ;;  %637 = vmatprep.mubr.bf16.mxu0 %v1437_v11  ;;  %v1440_v19 = vld [vmem:[%s1564_s10 + $0x80] sm:$0xff]   ;;  %v1442_v21 = vld [vmem:[%s1564_s10 + $0x98] sm:$0xff]  }
  0x13   : > { %701 = vmatprep.mubr.bf16.mxu1 %v1438_v12  ;;  %v1443_v22 = vld [vmem:[%s1564_s10 + $0x10] sm:$0xff]   ;;  %v1445_v24 = vld [vmem:[%s1564_s10 + $0x28] sm:$0xff]   ;;  %v1447_v26 = vld [vmem:[%s1564_s10 + $0x20] sm:$0xff]  }
  0x14   : > { %1276 = vmatpush3.bf16.msra.mxu0 %v1428_v7  ;;  %1392 = vmatpush3.bf16.msra.mxu1 %v1428_v7  ;;  %v1444_v23 = vld [vmem:[%s1564_s10 + $0x90] sm:$0xff]   ;;  %v1446_v25 = vld [vmem:[%s1564_s10 + $0xa8] sm:$0xff]   ;;  %v1448_v27 = vld [vmem:[%s1564_s10 + $0xa0] sm:$0xff]  }
  0x15   : > { %1277 = vmatprep.subr.bf16.mxu0 %v1429_v8  ;;  %1385 = vmatprep.subr.bf16.mxu1 %v1429_v8  ;;  %v1449_v28 = vld [vmem:[%s1564_s10 + $0x38] sm:$0xff]   ;;  %v1451_v30 = vld [vmem:[%s1564_s10 + $0x30] sm:$0xff]   ;;  %v1453_v32 = vld [vmem:[%s1564_s10 + $0x48] sm:$0xff]  }
  0x16   : > { %v1450_v29 = vld [vmem:[%s1564_s10 + $0xb8] sm:$0xff]   ;;  %v1452_v31 = vld [vmem:[%s1564_s10 + $0xb0] sm:$0xff]   ;;  %v1454_v33 = vld [vmem:[%s1564_s10 + $0xc8] sm:$0xff]  }
  0x17   : > { %v1455_v34 = vld [vmem:[%s1564_s10 + $0x40] sm:$0xff]   ;;  %v1457_v36 = vld [vmem:[%s1564_s10 + $0x58] sm:$0xff]   ;;  %v1459_v38 = vld [vmem:[%s1564_s10 + $0x50] sm:$0xff]  }
  0x18   : > { %1278 = vmatpush3.bf16.msra.mxu0 %v1430_v9  ;;  %1393 = vmatpush3.bf16.msra.mxu1 %v1430_v9  ;;  %v1456_v35 = vld [vmem:[%s1564_s10 + $0xc0] sm:$0xff]   ;;  %v1458_v37 = vld [vmem:[%s1564_s10 + $0xd8] sm:$0xff]   ;;  %v1460_v39 = vld [vmem:[%s1564_s10 + $0xd0] sm:$0xff]  }
  0x19   : > { %1279 = vmatprep.subr.bf16.mxu0 %v1431_v10  ;;  %1386 = vmatprep.subr.bf16.mxu1 %v1431_v10  ;;  %v1461_v40 = vld [vmem:[%s1564_s10 + $0x68] sm:$0xff]   ;;  %v1463_v42 = vld [vmem:[%s1564_s10 + $0x60] sm:$0xff]   ;;  %v1465_v44 = vld [vmem:[%s1564_s10 + $0x78] sm:$0xff]  }
  0x1a   : > { %v1462_v41 = vld [vmem:[%s1564_s10 + $0xe8] sm:$0xff]   ;;  %v1464_v43 = vld [vmem:[%s1564_s10 + $0xe0] sm:$0xff]   ;;  %v1466_v45 = vld [vmem:[%s1564_s10 + $0xf8] sm:$0xff]  }
  0x1b   : > { %v1467_v46 = vld [vmem:[%s1564_s10 + $0x70] sm:$0xff]  }
  0x1c   : > { %1280 = vmatpush3.bf16.msra.mxu0 %v1432_v13  ;;  %1394 = vmatpush3.bf16.msra.mxu1 %v1432_v13  ;;  %v1468_v47 = vld [vmem:[%s1564_s10 + $0xf0] sm:$0xff]  }
  0x1d   : > { %1281 = vmatprep.subr.bf16.mxu0 %v1433_v14  ;;  %1387 = vmatprep.subr.bf16.mxu1 %v1433_v14 }
  0x20   : > { %1282 = vmatpush3.bf16.msra.mxu0 %v1434_v15  ;;  %1395 = vmatpush3.bf16.msra.mxu1 %v1434_v15 }
  0x21   : > { %1283 = vmatprep.subr.bf16.mxu0 %v1435_v16  ;;  %1388 = vmatprep.subr.bf16.mxu1 %v1435_v16 }
  0x24   : > { %1284 = vmatpush3.bf16.msra.mxu0 %v1436_v17  ;;  %1396 = vmatpush3.bf16.msra.mxu1 %v1436_v17 }
  0x27   : > { %638 = vmatmul.mubr.bf16.vlgmr.msra.gmra.mrb[0].mxu0 %v1439_v18  ;;  %702 = vmatmul.mubr.bf16.vlgmr.msra.gmra.mrb[0].mxu1 %v1440_v19 }
  0x28   : > { %645 = vmatprep.mubr.bf16.mxu0 %v1441_v20  ;;  %709 = vmatprep.mubr.bf16.mxu1 %v1442_v21 }
  0x2f   : > { %646 = vmatmul.mubr.bf16.gmra.mrb[4].mxu0 %v1443_v22  ;;  %710 = vmatmul.mubr.bf16.gmra.mrb[4].mxu1 %v1444_v23 }
  0x30   : > { %653 = vmatprep.mubr.bf16.mxu0 %v1445_v24  ;;  %717 = vmatprep.mubr.bf16.mxu1 %v1446_v25 }
  0x37   : > { %654 = vmatmul.mubr.bf16.gmra.mrb[8].mxu0 %v1447_v26  ;;  %718 = vmatmul.mubr.bf16.gmra.mrb[8].mxu1 %v1448_v27 }
  0x38   : > { %661 = vmatprep.mubr.bf16.mxu0 %v1449_v28  ;;  %725 = vmatprep.mubr.bf16.mxu1 %v1450_v29 }
  0x3f   : > { %662 = vmatmul.mubr.bf16.gmra.mrb[12].mxu0 %v1451_v30  ;;  %726 = vmatmul.mubr.bf16.gmra.mrb[12].mxu1 %v1452_v31 }
  0x40   : > { %669 = vmatprep.mubr.bf16.mxu0 %v1453_v32  ;;  %733 = vmatprep.mubr.bf16.mxu1 %v1454_v33 }
  0x47   : > { %670 = vmatmul.mubr.bf16.gmra.mrb[16].mxu0 %v1455_v34  ;;  %734 = vmatmul.mubr.bf16.gmra.mrb[16].mxu1 %v1456_v35 }
  0x48   : > { %677 = vmatprep.mubr.bf16.mxu0 %v1457_v36  ;;  %741 = vmatprep.mubr.bf16.mxu1 %v1458_v37 }
  0x4f   : > { %678 = vmatmul.mubr.bf16.gmra.mrb[20].mxu0 %v1459_v38  ;;  %742 = vmatmul.mubr.bf16.gmra.mrb[20].mxu1 %v1460_v39 }
  0x50   : > { %685 = vmatprep.mubr.bf16.mxu0 %v1461_v40  ;;  %749 = vmatprep.mubr.bf16.mxu1 %v1462_v41 }
  0x57   : > { %686 = vmatmul.mubr.bf16.gmra.mrb[24].mxu0 %v1463_v42  ;;  %750 = vmatmul.mubr.bf16.gmra.mrb[24].mxu1 %v1464_v43 }
  0x58   : > { %693 = vmatprep.mubr.bf16.mxu0 %v1465_v44  ;;  %757 = vmatprep.mubr.bf16.mxu1 %v1466_v45 }
  0x5f   : > { %694 = vmatmul.mubr.bf16.gmra.mrb[28].mxu0 %v1467_v46  ;;  %758 = vmatmul.mubr.bf16.gmra.mrb[28].mxu1 %v1468_v47 }
  0xfa   : > { %v1285_v48 = vpop.f32.mrb[0].mxu0  ;;  %v1333_v49 = vpop.f32.mrb[0].mxu1 }
  0xfb   : > { %v1286_v51 = vpop.f32.mrb[1].mxu0  ;;  %v1334_v52 = vpop.f32.mrb[1].mxu1 }
  0xfc   : > { %v1287_v53 = vadd.f32 %v1286_v51, %v1285_v48  ;;  %v1335_v54 = vadd.f32 %v1334_v52, %v1333_v49  ;;  %v1288_v55 = vpop.f32.mrb[2].mxu0  ;;  %v1336_v56 = vpop.f32.mrb[2].mxu1 }
  0xfd   : > { %v1289_v57 = vpop.f32.mrb[3].mxu0  ;;  %v1337_v58 = vpop.f32.mrb[3].mxu1 }
  0xfe   : > { %v640_v59 = vadd.f32 %v1287_v53, %v1622_v50  ;;  %v704_v60 = vadd.f32 %v1335_v54, %v1622_v50  ;;  %v1290_v61 = vadd.f32 %v1289_v57, %v1288_v55  ;;  %v1338_v62 = vadd.f32 %v1337_v58, %v1336_v56 }
 0x100   : > { %v643_v63 = vadd.f32 %v1290_v61, %v1622_v50  ;;  %v707_v0 = vadd.f32 %v1338_v62, %v1622_v50  ;;  %v766_v1 = vmax.f32 %v640_v59, 0.0  ;;  %v782_v2 = vmax.f32 %v704_v60, 0.0 }
 0x102   : > { %v767_v3 = vmax.f32 %v643_v63, 0.0  ;;  %v783_v4 = vmax.f32 %v707_v0, 0.0  ;;  %v1291_v5 = vpop.f32.mrb[4].mxu0  ;;  %v1339_v6 = vpop.f32.mrb[4].mxu1 }
 0x103   : > { %v1292_v7 = vpop.f32.mrb[5].mxu0  ;;  %v1340_v8 = vpop.f32.mrb[5].mxu1 }
 0x104   : > { %v1177_v9 = vpack.c.bf16 %v767_v3, %v766_v1  ;;  %v1217_v10 = vpack.c.bf16 %v783_v4, %v782_v2  ;;  %v1293_v11 = vadd.f32 %v1292_v7, %v1291_v5  ;;  %v1341_v12 = vadd.f32 %v1340_v8, %v1339_v6  ;;  %v1294_v13 = vpop.f32.mrb[6].mxu0  ;;  %v1342_v14 = vpop.f32.mrb[6].mxu1 }
 0x105   : > { %v1295_v15 = vpop.f32.mrb[7].mxu0  ;;  %v1343_v16 = vpop.f32.mrb[7].mxu1 }
 0x106   : > { %1178 = vst [vmem:[%s1632_s7] sm:$0xff] %v1177_v9   ;;  %1261 = vst [vmem:[%s1632_s7 + $0x40] sm:$0xff] %v1217_v10   ;;  %v648_v17 = vadd.f32 %v1293_v11, %v1622_v50  ;;  %v712_v18 = vadd.f32 %v1341_v12, %v1622_v50  ;;  %v1296_v19 = vadd.f32 %v1295_v15, %v1294_v13 }
 0x107   : > { %v1344_v20 = vadd.f32 %v1343_v16, %v1342_v14 }
 0x108   : > { %v651_v21 = vadd.f32 %v1296_v19, %v1622_v50  ;;  %v768_v23 = vmax.f32 %v648_v17, 0.0  ;;  %v784_v24 = vmax.f32 %v712_v18, 0.0 }
 0x109   : > { %v715_v22 = vadd.f32 %v1344_v20, %v1622_v50 }
 0x10a   : > { %v769_v25 = vmax.f32 %v651_v21, 0.0  ;;  %v1297_v27 = vpop.f32.mrb[8].mxu0  ;;  %v1345_v28 = vpop.f32.mrb[8].mxu1 }
 0x10b   : > { %v785_v26 = vmax.f32 %v715_v22, 0.0  ;;  %v1298_v29 = vpop.f32.mrb[9].mxu0  ;;  %v1346_v30 = vpop.f32.mrb[9].mxu1 }
 0x10c   : > { %v1182_v31 = vpack.c.bf16 %v769_v25, %v768_v23  ;;  %v1299_v33 = vadd.f32 %v1298_v29, %v1297_v27  ;;  %v1347_v34 = vadd.f32 %v1346_v30, %v1345_v28  ;;  %v1300_v35 = vpop.f32.mrb[10].mxu0  ;;  %v1348_v36 = vpop.f32.mrb[10].mxu1 }
 0x10d   : > { %v1222_v32 = vpack.c.bf16 %v785_v26, %v784_v24  ;;  %v1301_v37 = vpop.f32.mrb[11].mxu0  ;;  %v1349_v38 = vpop.f32.mrb[11].mxu1 }
 0x10e   : > { %1254 = vst [vmem:[%s1632_s7 + $0x8] sm:$0xff] %v1182_v31   ;;  %v656_v39 = vadd.f32 %v1299_v33, %v1622_v50  ;;  %v720_v40 = vadd.f32 %v1347_v34, %v1622_v50  ;;  %v1302_v41 = vadd.f32 %v1301_v37, %v1300_v35  ;;  %v1350_v42 = vadd.f32 %v1349_v38, %v1348_v36 }
 0x10f   : > { %1262 = vst [vmem:[%s1632_s7 + $0x48] sm:$0xff] %v1222_v32  }
 0x110   : > { %v659_v43 = vadd.f32 %v1302_v41, %v1622_v50  ;;  %v723_v44 = vadd.f32 %v1350_v42, %v1622_v50  ;;  %v770_v45 = vmax.f32 %v656_v39, 0.0  ;;  %v786_v46 = vmax.f32 %v720_v40, 0.0 }
 0x112   : > { %v771_v47 = vmax.f32 %v659_v43, 0.0  ;;  %v787_v48 = vmax.f32 %v723_v44, 0.0  ;;  %v1303_v49 = vpop.f32.mrb[12].mxu0  ;;  %v1351_v51 = vpop.f32.mrb[12].mxu1 }
 0x113   : > { %v1304_v52 = vpop.f32.mrb[13].mxu0  ;;  %v1352_v53 = vpop.f32.mrb[13].mxu1 }
 0x114   : > { %v1187_v54 = vpack.c.bf16 %v771_v47, %v770_v45  ;;  %v1227_v55 = vpack.c.bf16 %v787_v48, %v786_v46  ;;  %v1305_v56 = vadd.f32 %v1304_v52, %v1303_v49  ;;  %v1353_v57 = vadd.f32 %v1352_v53, %v1351_v51  ;;  %v1306_v58 = vpop.f32.mrb[14].mxu0  ;;  %v1354_v59 = vpop.f32.mrb[14].mxu1 }
 0x115   : > { %v1307_v60 = vpop.f32.mrb[15].mxu0  ;;  %v1355_v61 = vpop.f32.mrb[15].mxu1 }
 0x116   : > { %1255 = vst [vmem:[%s1632_s7 + $0x10] sm:$0xff] %v1187_v54   ;;  %1263 = vst [vmem:[%s1632_s7 + $0x50] sm:$0xff] %v1227_v55   ;;  %v664_v62 = vadd.f32 %v1305_v56, %v1622_v50  ;;  %v728_v63 = vadd.f32 %v1353_v57, %v1622_v50  ;;  %v1308_v0 = vadd.f32 %v1307_v60, %v1306_v58 }
 0x117   : > { %v1356_v1 = vadd.f32 %v1355_v61, %v1354_v59 }
 0x118   : > { %v667_v2 = vadd.f32 %v1308_v0, %v1622_v50  ;;  %v772_v4 = vmax.f32 %v664_v62, 0.0  ;;  %v788_v5 = vmax.f32 %v728_v63, 0.0 }
 0x119   : > { %v731_v3 = vadd.f32 %v1356_v1, %v1622_v50 }
 0x11a   : > { %v773_v6 = vmax.f32 %v667_v2, 0.0  ;;  %v1309_v8 = vpop.f32.mrb[16].mxu0  ;;  %v1357_v9 = vpop.f32.mrb[16].mxu1 }
 0x11b   : > { %v789_v7 = vmax.f32 %v731_v3, 0.0  ;;  %v1310_v10 = vpop.f32.mrb[17].mxu0  ;;  %v1358_v11 = vpop.f32.mrb[17].mxu1 }
 0x11c   : > { %v1192_v12 = vpack.c.bf16 %v773_v6, %v772_v4  ;;  %v1311_v14 = vadd.f32 %v1310_v10, %v1309_v8  ;;  %v1359_v15 = vadd.f32 %v1358_v11, %v1357_v9  ;;  %v1312_v16 = vpop.f32.mrb[18].mxu0  ;;  %v1360_v17 = vpop.f32.mrb[18].mxu1 }
 0x11d   : > { %v1232_v13 = vpack.c.bf16 %v789_v7, %v788_v5  ;;  %v1313_v18 = vpop.f32.mrb[19].mxu0  ;;  %v1361_v19 = vpop.f32.mrb[19].mxu1 }
 0x11e   : > { %1256 = vst [vmem:[%s1632_s7 + $0x18] sm:$0xff] %v1192_v12   ;;  %v672_v20 = vadd.f32 %v1311_v14, %v1622_v50  ;;  %v736_v21 = vadd.f32 %v1359_v15, %v1622_v50  ;;  %v1314_v22 = vadd.f32 %v1313_v18, %v1312_v16  ;;  %v1362_v23 = vadd.f32 %v1361_v19, %v1360_v17 }
 0x11f   : > { %1264 = vst [vmem:[%s1632_s7 + $0x58] sm:$0xff] %v1232_v13  }
 0x120   : > { %v675_v24 = vadd.f32 %v1314_v22, %v1622_v50  ;;  %v739_v25 = vadd.f32 %v1362_v23, %v1622_v50  ;;  %v774_v26 = vmax.f32 %v672_v20, 0.0  ;;  %v790_v27 = vmax.f32 %v736_v21, 0.0 }
 0x122   : > { %v775_v28 = vmax.f32 %v675_v24, 0.0  ;;  %v791_v29 = vmax.f32 %v739_v25, 0.0  ;;  %v1315_v30 = vpop.f32.mrb[20].mxu0  ;;  %v1363_v31 = vpop.f32.mrb[20].mxu1 }
 0x123   : > { %v1316_v32 = vpop.f32.mrb[21].mxu0  ;;  %v1364_v33 = vpop.f32.mrb[21].mxu1 }
 0x124   : > { %v1197_v34 = vpack.c.bf16 %v775_v28, %v774_v26  ;;  %v1237_v35 = vpack.c.bf16 %v791_v29, %v790_v27  ;;  %v1317_v36 = vadd.f32 %v1316_v32, %v1315_v30  ;;  %v1365_v37 = vadd.f32 %v1364_v33, %v1363_v31  ;;  %v1318_v38 = vpop.f32.mrb[22].mxu0  ;;  %v1366_v39 = vpop.f32.mrb[22].mxu1 }
 0x125   : > { %v1319_v40 = vpop.f32.mrb[23].mxu0  ;;  %v1367_v41 = vpop.f32.mrb[23].mxu1 }
 0x126   : > { %1257 = vst [vmem:[%s1632_s7 + $0x20] sm:$0xff] %v1197_v34   ;;  %1265 = vst [vmem:[%s1632_s7 + $0x60] sm:$0xff] %v1237_v35   ;;  %v680_v42 = vadd.f32 %v1317_v36, %v1622_v50  ;;  %v744_v43 = vadd.f32 %v1365_v37, %v1622_v50  ;;  %v1320_v44 = vadd.f32 %v1319_v40, %v1318_v38 }
 0x127   : > { %v1368_v45 = vadd.f32 %v1367_v41, %v1366_v39 }
 0x128   : > { %v683_v46 = vadd.f32 %v1320_v44, %v1622_v50  ;;  %v776_v48 = vmax.f32 %v680_v42, 0.0  ;;  %v792_v49 = vmax.f32 %v744_v43, 0.0 }
 0x129   : > { %v747_v47 = vadd.f32 %v1368_v45, %v1622_v50 }
 0x12a   : > { %v777_v51 = vmax.f32 %v683_v46, 0.0  ;;  %v1321_v53 = vpop.f32.mrb[24].mxu0  ;;  %v1369_v54 = vpop.f32.mrb[24].mxu1 }
 0x12b   : > { %v793_v52 = vmax.f32 %v747_v47, 0.0  ;;  %v1322_v55 = vpop.f32.mrb[25].mxu0  ;;  %v1370_v56 = vpop.f32.mrb[25].mxu1 }
 0x12c   : > { %v1202_v57 = vpack.c.bf16 %v777_v51, %v776_v48  ;;  %v1323_v59 = vadd.f32 %v1322_v55, %v1321_v53  ;;  %v1371_v60 = vadd.f32 %v1370_v56, %v1369_v54  ;;  %v1324_v61 = vpop.f32.mrb[26].mxu0  ;;  %v1372_v62 = vpop.f32.mrb[26].mxu1 }
 0x12d   : > { %v1242_v58 = vpack.c.bf16 %v793_v52, %v792_v49  ;;  %v1325_v63 = vpop.f32.mrb[27].mxu0  ;;  %v1373_v0 = vpop.f32.mrb[27].mxu1 }
 0x12e   : > { %1258 = vst [vmem:[%s1632_s7 + $0x28] sm:$0xff] %v1202_v57   ;;  %v688_v1 = vadd.f32 %v1323_v59, %v1622_v50  ;;  %v752_v2 = vadd.f32 %v1371_v60, %v1622_v50  ;;  %v1326_v3 = vadd.f32 %v1325_v63, %v1324_v61  ;;  %v1374_v4 = vadd.f32 %v1373_v0, %v1372_v62 }
 0x12f   : > { %1266 = vst [vmem:[%s1632_s7 + $0x68] sm:$0xff] %v1242_v58  }
 0x130   : > { %v691_v5 = vadd.f32 %v1326_v3, %v1622_v50  ;;  %v755_v6 = vadd.f32 %v1374_v4, %v1622_v50  ;;  %v778_v7 = vmax.f32 %v688_v1, 0.0  ;;  %v794_v8 = vmax.f32 %v752_v2, 0.0 }
 0x132   : > { %v779_v9 = vmax.f32 %v691_v5, 0.0  ;;  %v795_v10 = vmax.f32 %v755_v6, 0.0  ;;  %v1327_v11 = vpop.f32.mrb[28].mxu0  ;;  %v1375_v12 = vpop.f32.mrb[28].mxu1 }
 0x133   : > { %v1328_v13 = vpop.f32.mrb[29].mxu0  ;;  %v1376_v14 = vpop.f32.mrb[29].mxu1 }
 0x134   : > { %v1207_v15 = vpack.c.bf16 %v779_v9, %v778_v7  ;;  %v1247_v16 = vpack.c.bf16 %v795_v10, %v794_v8  ;;  %v1329_v17 = vadd.f32 %v1328_v13, %v1327_v11  ;;  %v1377_v18 = vadd.f32 %v1376_v14, %v1375_v12  ;;  %v1330_v19 = vpop.f32.mrb[30].mxu0  ;;  %v1378_v20 = vpop.f32.mrb[30].mxu1 }
 0x135   : > { %v1331_v21 = vpop.f32.mrb[31].mxu0  ;;  %v1379_v22 = vpop.f32.mrb[31].mxu1 }
 0x136   : > { %1259 = vst [vmem:[%s1632_s7 + $0x30] sm:$0xff] %v1207_v15   ;;  %1267 = vst [vmem:[%s1632_s7 + $0x70] sm:$0xff] %v1247_v16   ;;  %v696_v23 = vadd.f32 %v1329_v17, %v1622_v50  ;;  %v760_v24 = vadd.f32 %v1377_v18, %v1622_v50  ;;  %v1332_v25 = vadd.f32 %v1331_v21, %v1330_v19 }
 0x137   : > { %v1380_v26 = vadd.f32 %v1379_v22, %v1378_v20 }
 0x138   : > { %v699_v27 = vadd.f32 %v1332_v25, %v1622_v50  ;;  %v780_v29 = vmax.f32 %v696_v23, 0.0  ;;  %v796_v30 = vmax.f32 %v760_v24, 0.0 }
 0x139   : > { %v763_v28 = vadd.f32 %v1380_v26, %v1622_v50 }
 0x13a   : > { %v781_v31 = vmax.f32 %v699_v27, 0.0 }
 0x13b   : > { %v797_v32 = vmax.f32 %v763_v28, 0.0 }
 0x13c   : > { %v1212_v33 = vpack.c.bf16 %v781_v31, %v780_v29 }
 0x13d   : > { %v1252_v34 = vpack.c.bf16 %v797_v32, %v796_v30 }
 0x13e   : > { %1260 = vst [vmem:[%s1632_s7 + $0x38] sm:$0xff] %v1212_v33  }
 0x13f   : > { %1268 = vst [vmem:[%s1632_s7 + $0x78] sm:$0xff] %v1252_v34  }
 0x140 PF: > { %s13_s14 = sadd.s32 1, %s1491_s14   ;;  %s1691_s12 = smov %s1487_s13 }
 0x141   : > { %p10_p5 = scmp.ge.s32.totalorder %s13_s14, 4   ;;  %s1692_s13 = smov %s1694_s15 }
 0x143   :  { %12 = sbr.rel (!%p10_p5) target bundleno = 2 (0x2), region = 62 }

// kernel: color_transform_d.5
= control target key start
LH: loop header
LB: loop body
LE: loop exit
PB: predicated region body
PF: predicated region fallthrough
CT: control target
= control target key end

     0   :  { %vm506_vm0 = vcmask 588800   ;;  %vm699_vm1 = vcmask 1043456   ;;  %s3697_s1 = inlined_call_operand.vmem [shape: bf16[72,128], index: 1, kind: input, shape index: {}]   ;;  %s3698_s0 = inlined_call_operand.vmem [shape: bf16[1024,72], index: 0, kind: input, shape index: {}]   ;;  %s3699_s2 = inlined_call_operand.vmem [shape: f32[1,128], index: 2, kind: input, shape index: {}]   ;;  %s3700_s3 = inlined_call_operand.vmem [shape: bf16[1024,128], index: 3, kind: output, shape index: {}]  }
   0x1   :  { %v3012_v0 = vld [vmem:[%s3697_s1] sm:$0xff]   ;;  %v3013_v1 = vld [vmem:[%s3697_s1 + $0x8] sm:$0xff]   ;;  %v3014_v2 = vld [vmem:[%s3697_s1 + $0x10] sm:$0xff]  }
   0x2   :  { %2862 = vmatprep.subr.bf16.mxu0 %v3012_v0  ;;  %3000 = vmatprep.subr.bf16.mxu1 %v3012_v0  ;;  %v3017_v3 = vld [vmem:[%s3698_s0] sm:$0xff]   ;;  %v3015_v5 = vld [vmem:[%s3697_s1 + $0x18] sm:$0xff]   ;;  %v3019_v8 = vld [vmem:[%s3698_s0 + $0x8] sm:$0xff]  }
   0x3   :  { %2863 = vmatpush3.bf16.msra.mxu0 %v3012_v0  ;;  %3005 = vmatpush3.bf16.msra.mxu1 %v3012_v0  ;;  %v3018_v4 = vld [vmem:[%s3698_s0 + $0x100] sm:$0xff]   ;;  %v3020_v9 = vld [vmem:[%s3698_s0 + $0x108] sm:$0xff]   ;;  %v3021_v10 = vld [vmem:[%s3698_s0 + $0x10] sm:$0xff]  }
   0x4   :  { %2864 = vmatprep.subr.bf16.mxu0 %v3013_v1  ;;  %3001 = vmatprep.subr.bf16.mxu1 %v3013_v1  ;;  %v3016_v6 = vld [vmem:[%s3697_s1 + $0x20] ss:$0 sps:$4 sm:$0xff]   ;;  %v3022_v11 = vld [vmem:[%s3698_s0 + $0x110] sm:$0xff]   ;;  %v3023_v12 = vld [vmem:[%s3698_s0 + $0x18] sm:$0xff]  }
   0x5   :  { %2872 = vmatprep.mubr.msk.bf16.mxu0 %vm506_vm0, %v3017_v3  ;;  %2936 = vmatprep.mubr.msk.bf16.mxu1 %vm506_vm0, %v3018_v4  ;;  %v701_v7 = vsel %vm699_vm1, %v3016_v6, 0  ;;  %v3024_v13 = vld [vmem:[%s3698_s0 + $0x118] sm:$0xff]   ;;  %v3025_v14 = vld [vmem:[%s3698_s0 + $0x20] sm:$0xff]   ;;  %v3027_v16 = vld [vmem:[%s3698_s0 + $0x28] sm:$0xff]  }
   0x6   :  { %v3026_v15 = vld [vmem:[%s3698_s0 + $0x120] sm:$0xff]   ;;  %v3028_v17 = vld [vmem:[%s3698_s0 + $0x128] sm:$0xff]   ;;  %v3029_v18 = vld [vmem:[%s3698_s0 + $0x30] sm:$0xff]  }
   0x7   :  { %2865 = vmatpush3.bf16.msra.mxu0 %v3013_v1  ;;  %3006 = vmatpush3.bf16.msra.mxu1 %v3013_v1  ;;  %v3030_v19 = vld [vmem:[%s3698_s0 + $0x130] sm:$0xff]   ;;  %v3031_v20 = vld [vmem:[%s3698_s0 + $0x38] sm:$0xff]   ;;  %v3033_v22 = vld [vmem:[%s3698_s0 + $0x40] sm:$0xff]  }
   0x8   :  { %2866 = vmatprep.subr.bf16.mxu0 %v3014_v2  ;;  %3002 = vmatprep.subr.bf16.mxu1 %v3014_v2  ;;  %v3032_v21 = vld [vmem:[%s3698_s0 + $0x138] sm:$0xff]   ;;  %v3034_v23 = vld [vmem:[%s3698_s0 + $0x140] sm:$0xff]   ;;  %v3035_v24 = vld [vmem:[%s3698_s0 + $0x48] sm:$0xff]  }
   0x9   :  { %v3036_v25 = vld [vmem:[%s3698_s0 + $0x148] sm:$0xff]   ;;  %v3037_v26 = vld [vmem:[%s3698_s0 + $0x50] sm:$0xff]   ;;  %v3039_v28 = vld [vmem:[%s3698_s0 + $0x58] sm:$0xff]  }
   0xa   :  { %v3038_v27 = vld [vmem:[%s3698_s0 + $0x150] sm:$0xff]   ;;  %v3040_v29 = vld [vmem:[%s3698_s0 + $0x158] sm:$0xff]   ;;  %v3041_v30 = vld [vmem:[%s3698_s0 + $0x60] sm:$0xff]  }
   0xb   :  { %2867 = vmatpush3.bf16.msra.mxu0 %v3014_v2  ;;  %3007 = vmatpush3.bf16.msra.mxu1 %v3014_v2  ;;  %v3042_v31 = vld [vmem:[%s3698_s0 + $0x160] sm:$0xff]   ;;  %v3043_v32 = vld [vmem:[%s3698_s0 + $0x68] sm:$0xff]   ;;  %v3045_v34 = vld [vmem:[%s3698_s0 + $0x70] sm:$0xff]  }
   0xc   :  { %2868 = vmatprep.subr.bf16.mxu0 %v3015_v5  ;;  %3003 = vmatprep.subr.bf16.mxu1 %v3015_v5  ;;  %v3044_v33 = vld [vmem:[%s3698_s0 + $0x168] sm:$0xff]   ;;  %v3046_v35 = vld [vmem:[%s3698_s0 + $0x170] sm:$0xff]   ;;  %v3047_v36 = vld [vmem:[%s3698_s0 + $0x78] sm:$0xff]  }
   0xd   :  { %v3048_v37 = vld [vmem:[%s3698_s0 + $0x178] sm:$0xff]   ;;  %v3049_v38 = vld [vmem:[%s3698_s0 + $0x80] sm:$0xff]   ;;  %v3051_v40 = vld [vmem:[%s3698_s0 + $0x88] sm:$0xff]  }
   0xe   :  { %v3050_v39 = vld [vmem:[%s3698_s0 + $0x180] sm:$0xff]   ;;  %v3052_v41 = vld [vmem:[%s3698_s0 + $0x188] sm:$0xff]   ;;  %v3053_v42 = vld [vmem:[%s3698_s0 + $0x90] sm:$0xff]  }
   0xf   :  { %2869 = vmatpush3.bf16.msra.mxu0 %v3015_v5  ;;  %3008 = vmatpush3.bf16.msra.mxu1 %v3015_v5  ;;  %v3054_v43 = vld [vmem:[%s3698_s0 + $0x190] sm:$0xff]   ;;  %v3055_v44 = vld [vmem:[%s3698_s0 + $0x98] sm:$0xff]   ;;  %v3057_v46 = vld [vmem:[%s3698_s0 + $0xa0] sm:$0xff]  }
  0x10   :  { %3010 = vmatprep.subr.msk.bf16.mxu0 %vm699_vm1, %v3016_v6  ;;  %3011 = vmatprep.subr.msk.bf16.mxu1 %vm699_vm1, %v3016_v6  ;;  %v3056_v45 = vld [vmem:[%s3698_s0 + $0x198] sm:$0xff]   ;;  %v3058_v47 = vld [vmem:[%s3698_s0 + $0x1a0] sm:$0xff]   ;;  %v3059_v48 = vld [vmem:[%s3698_s0 + $0xa8] sm:$0xff]  }
  0x11   :  { %v3060_v49 = vld [vmem:[%s3698_s0 + $0x1a8] sm:$0xff]   ;;  %v3061_v50 = vld [vmem:[%s3698_s0 + $0xb0] sm:$0xff]   ;;  %v3063_v52 = vld [vmem:[%s3698_s0 + $0xb8] sm:$0xff]  }
  0x12   :  { %v3062_v51 = vld [vmem:[%s3698_s0 + $0x1b0] sm:$0xff]   ;;  %v3064_v53 = vld [vmem:[%s3698_s0 + $0x1b8] sm:$0xff]   ;;  %v3065_v54 = vld [vmem:[%s3698_s0 + $0xc0] sm:$0xff]  }
  0x13   :  { %2871 = vmatpush3.bf16.msra.mxu0 %v701_v7  ;;  %3009 = vmatpush3.bf16.msra.mxu1 %v701_v7  ;;  %v3066_v55 = vld [vmem:[%s3698_s0 + $0x1c0] sm:$0xff]   ;;  %v3067_v56 = vld [vmem:[%s3698_s0 + $0xc8] sm:$0xff]   ;;  %v3069_v58 = vld [vmem:[%s3698_s0 + $0xd0] sm:$0xff]  }
  0x14   :  { %v3068_v57 = vld [vmem:[%s3698_s0 + $0x1c8] sm:$0xff]   ;;  %v3070_v59 = vld [vmem:[%s3698_s0 + $0x1d0] sm:$0xff]   ;;  %v3071_v60 = vld [vmem:[%s3698_s0 + $0xd8] sm:$0xff]  }
  0x15   :  { %v3072_v61 = vld [vmem:[%s3698_s0 + $0x1d8] sm:$0xff]   ;;  %v3073_v62 = vld [vmem:[%s3698_s0 + $0xe0] sm:$0xff]   ;;  %v3075_v0 = vld [vmem:[%s3698_s0 + $0xe8] sm:$0xff]  }
  0x16   :  { %2873 = vmatmul.mubr.msk.bf16.vlgmr.msra.gmra.mrb[0].mxu0 %vm506_vm0, %v3019_v8  ;;  %2937 = vmatmul.mubr.msk.bf16.vlgmr.msra.gmra.mrb[0].mxu1 %vm506_vm0, %v3020_v9  ;;  %v3074_v63 = vld [vmem:[%s3698_s0 + $0x1e0] sm:$0xff]   ;;  %v3076_v1 = vld [vmem:[%s3698_s0 + $0x1e8] sm:$0xff]   ;;  %v3077_v2 = vld [vmem:[%s3698_s0 + $0xf0] sm:$0xff]  }
  0x17   :  { %2876 = vmatprep.mubr.msk.bf16.mxu0 %vm506_vm0, %v3021_v10  ;;  %2940 = vmatprep.mubr.msk.bf16.mxu1 %vm506_vm0, %v3022_v11  ;;  %v3078_v3 = vld [vmem:[%s3698_s0 + $0x1f0] sm:$0xff]   ;;  %v3079_v4 = vld [vmem:[%s3698_s0 + $0xf8] sm:$0xff]   ;;  %v3375_v6 = vld [vmem:[%s3699_s2] ss:$0 sm:$0xff] }
  0x18   :  { %v3080_v5 = vld [vmem:[%s3698_s0 + $0x1f8] sm:$0xff]  }
  0x1e   :  { %2877 = vmatmul.mubr.msk.bf16.gmra.mrb[4].mxu0 %vm506_vm0, %v3023_v12  ;;  %2941 = vmatmul.mubr.msk.bf16.gmra.mrb[4].mxu1 %vm506_vm0, %v3024_v13 }
  0x1f   :  { %2880 = vmatprep.mubr.msk.bf16.mxu0 %vm506_vm0, %v3025_v14  ;;  %2944 = vmatprep.mubr.msk.bf16.mxu1 %vm506_vm0, %v3026_v15 }
  0x26   :  { %2881 = vmatmul.mubr.msk.bf16.gmra.mrb[8].mxu0 %vm506_vm0, %v3027_v16  ;;  %2945 = vmatmul.mubr.msk.bf16.gmra.mrb[8].mxu1 %vm506_vm0, %v3028_v17 }
  0x27   :  { %2884 = vmatprep.mubr.msk.bf16.mxu0 %vm506_vm0, %v3029_v18  ;;  %2948 = vmatprep.mubr.msk.bf16.mxu1 %vm506_vm0, %v3030_v19 }
  0x2e   :  { %2885 = vmatmul.mubr.msk.bf16.gmra.mrb[12].mxu0 %vm506_vm0, %v3031_v20  ;;  %2949 = vmatmul.mubr.msk.bf16.gmra.mrb[12].mxu1 %vm506_vm0, %v3032_v21 }
  0x2f   :  { %2888 = vmatprep.mubr.msk.bf16.mxu0 %vm506_vm0, %v3033_v22  ;;  %2952 = vmatprep.mubr.msk.bf16.mxu1 %vm506_vm0, %v3034_v23 }
  0x36   :  { %2889 = vmatmul.mubr.msk.bf16.gmra.mrb[16].mxu0 %vm506_vm0, %v3035_v24  ;;  %2953 = vmatmul.mubr.msk.bf16.gmra.mrb[16].mxu1 %vm506_vm0, %v3036_v25 }
  0x37   :  { %2892 = vmatprep.mubr.msk.bf16.mxu0 %vm506_vm0, %v3037_v26  ;;  %2956 = vmatprep.mubr.msk.bf16.mxu1 %vm506_vm0, %v3038_v27 }
  0x3e   :  { %2893 = vmatmul.mubr.msk.bf16.gmra.mrb[20].mxu0 %vm506_vm0, %v3039_v28  ;;  %2957 = vmatmul.mubr.msk.bf16.gmra.mrb[20].mxu1 %vm506_vm0, %v3040_v29 }
  0x3f   :  { %2896 = vmatprep.mubr.msk.bf16.mxu0 %vm506_vm0, %v3041_v30  ;;  %2960 = vmatprep.mubr.msk.bf16.mxu1 %vm506_vm0, %v3042_v31 }
  0x46   :  { %2897 = vmatmul.mubr.msk.bf16.gmra.mrb[24].mxu0 %vm506_vm0, %v3043_v32  ;;  %2961 = vmatmul.mubr.msk.bf16.gmra.mrb[24].mxu1 %vm506_vm0, %v3044_v33 }
  0x47   :  { %2900 = vmatprep.mubr.msk.bf16.mxu0 %vm506_vm0, %v3045_v34  ;;  %2964 = vmatprep.mubr.msk.bf16.mxu1 %vm506_vm0, %v3046_v35 }
  0x4e   :  { %2901 = vmatmul.mubr.msk.bf16.gmra.mrb[28].mxu0 %vm506_vm0, %v3047_v36  ;;  %2965 = vmatmul.mubr.msk.bf16.gmra.mrb[28].mxu1 %vm506_vm0, %v3048_v37 }
  0x4f   :  { %2904 = vmatprep.mubr.msk.bf16.mxu0 %vm506_vm0, %v3049_v38  ;;  %2968 = vmatprep.mubr.msk.bf16.mxu1 %vm506_vm0, %v3050_v39 }
  0x56   :  { %2905 = vmatmul.mubr.msk.bf16.gmra.mrb[32].mxu0 %vm506_vm0, %v3051_v40  ;;  %2969 = vmatmul.mubr.msk.bf16.gmra.mrb[32].mxu1 %vm506_vm0, %v3052_v41 }
  0x57   :  { %2908 = vmatprep.mubr.msk.bf16.mxu0 %vm506_vm0, %v3053_v42  ;;  %2972 = vmatprep.mubr.msk.bf16.mxu1 %vm506_vm0, %v3054_v43 }
  0x5e   :  { %2909 = vmatmul.mubr.msk.bf16.gmra.mrb[36].mxu0 %vm506_vm0, %v3055_v44  ;;  %2973 = vmatmul.mubr.msk.bf16.gmra.mrb[36].mxu1 %vm506_vm0, %v3056_v45 }
  0x5f   :  { %2912 = vmatprep.mubr.msk.bf16.mxu0 %vm506_vm0, %v3057_v46  ;;  %2976 = vmatprep.mubr.msk.bf16.mxu1 %vm506_vm0, %v3058_v47 }
  0x66   :  { %2913 = vmatmul.mubr.msk.bf16.gmra.mrb[40].mxu0 %vm506_vm0, %v3059_v48  ;;  %2977 = vmatmul.mubr.msk.bf16.gmra.mrb[40].mxu1 %vm506_vm0, %v3060_v49 }
  0x67   :  { %2916 = vmatprep.mubr.msk.bf16.mxu0 %vm506_vm0, %v3061_v50  ;;  %2980 = vmatprep.mubr.msk.bf16.mxu1 %vm506_vm0, %v3062_v51 }
  0x6e   :  { %2917 = vmatmul.mubr.msk.bf16.gmra.mrb[44].mxu0 %vm506_vm0, %v3063_v52  ;;  %2981 = vmatmul.mubr.msk.bf16.gmra.mrb[44].mxu1 %vm506_vm0, %v3064_v53 }
  0x6f   :  { %2920 = vmatprep.mubr.msk.bf16.mxu0 %vm506_vm0, %v3065_v54  ;;  %2984 = vmatprep.mubr.msk.bf16.mxu1 %vm506_vm0, %v3066_v55 }
  0x76   :  { %2921 = vmatmul.mubr.msk.bf16.gmra.mrb[48].mxu0 %vm506_vm0, %v3067_v56  ;;  %2985 = vmatmul.mubr.msk.bf16.gmra.mrb[48].mxu1 %vm506_vm0, %v3068_v57 }
  0x77   :  { %2924 = vmatprep.mubr.msk.bf16.mxu0 %vm506_vm0, %v3069_v58  ;;  %2988 = vmatprep.mubr.msk.bf16.mxu1 %vm506_vm0, %v3070_v59 }
  0x7e   :  { %2925 = vmatmul.mubr.msk.bf16.gmra.mrb[52].mxu0 %vm506_vm0, %v3071_v60  ;;  %2989 = vmatmul.mubr.msk.bf16.gmra.mrb[52].mxu1 %vm506_vm0, %v3072_v61 }
  0x7f   :  { %2928 = vmatprep.mubr.msk.bf16.mxu0 %vm506_vm0, %v3073_v62  ;;  %2992 = vmatprep.mubr.msk.bf16.mxu1 %vm506_vm0, %v3074_v63 }
  0x86   :  { %2929 = vmatmul.mubr.msk.bf16.gmra.mrb[56].mxu0 %vm506_vm0, %v3075_v0  ;;  %2993 = vmatmul.mubr.msk.bf16.gmra.mrb[56].mxu1 %vm506_vm0, %v3076_v1 }
  0x87   :  { %2932 = vmatprep.mubr.msk.bf16.mxu0 %vm506_vm0, %v3077_v2  ;;  %2996 = vmatprep.mubr.msk.bf16.mxu1 %vm506_vm0, %v3078_v3 }
  0x8e   :  { %2933 = vmatmul.mubr.msk.bf16.gmra.mrb[60].mxu0 %vm506_vm0, %v3079_v4  ;;  %2997 = vmatmul.mubr.msk.bf16.gmra.mrb[60].mxu1 %vm506_vm0, %v3080_v5 }
  0xe9   :  { %v2874_v7 = vpop.f32.mrb[0].mxu0  ;;  %v2938_v8 = vpop.f32.mrb[0].mxu1 }
  0xea   :  { %v746_v9 = vadd.f32 %v2874_v7, %v3375_v6  ;;  %v1002_v10 = vadd.f32 %v2938_v8, %v3375_v6  ;;  %v737_v11 = vpop.f32.mrb[1].mxu0  ;;  %v993_v12 = vpop.f32.mrb[1].mxu1 }
  0xeb   :  { %v738_v13 = vadd.f32 %v3375_v6, %v737_v11  ;;  %v994_v14 = vadd.f32 %v3375_v6, %v993_v12  ;;  %v2875_v15 = vpop.f32.mrb[2].mxu0  ;;  %v2939_v16 = vpop.f32.mrb[2].mxu1 }
  0xec   :  { %v749_v17 = vadd.f32 %v2875_v15, %v3375_v6  ;;  %v1005_v18 = vadd.f32 %v2939_v16, %v3375_v6  ;;  %v740_v19 = vpop.f32.mrb[3].mxu0  ;;  %v996_v20 = vpop.f32.mrb[3].mxu1  ;;  %v1250_v23 = vmax.f32 %v746_v9, 0.0  ;;  %v1314_v24 = vmax.f32 %v1002_v10, 0.0 }
  0xed   :  { %v741_v21 = vadd.f32 %v3375_v6, %v740_v19  ;;  %v997_v22 = vadd.f32 %v3375_v6, %v996_v20  ;;  %v1248_v27 = vmax.f32 %v738_v13, 0.0  ;;  %v1312_v28 = vmax.f32 %v994_v14, 0.0 }
  0xee   :  { %v1251_v25 = vmax.f32 %v749_v17, 0.0  ;;  %v1315_v26 = vmax.f32 %v1005_v18, 0.0 }
  0xef   :  { %v1249_v29 = vmax.f32 %v741_v21, 0.0  ;;  %v1313_v30 = vmax.f32 %v997_v22, 0.0 }
  0xf0   :  { %v2418_v31 = vpack.c.bf16 %v1251_v25, %v1250_v23  ;;  %v2578_v32 = vpack.c.bf16 %v1315_v26, %v1314_v24 }
  0xf1   :  { %v2413_v33 = vpack.c.bf16 %v1249_v29, %v1248_v27  ;;  %v2573_v34 = vpack.c.bf16 %v1313_v30, %v1312_v28  ;;  %v2878_v35 = vpop.f32.mrb[4].mxu0  ;;  %v2942_v36 = vpop.f32.mrb[4].mxu1 }
  0xf2   :  { %2730 = vst [vmem:[%s3700_s3 + $0x8] sm:$0xff] %v2418_v31   ;;  %2762 = vst [vmem:[%s3700_s3 + $0x108] sm:$0xff] %v2578_v32   ;;  %v762_v37 = vadd.f32 %v2878_v35, %v3375_v6  ;;  %v1018_v38 = vadd.f32 %v2942_v36, %v3375_v6  ;;  %v753_v39 = vpop.f32.mrb[5].mxu0  ;;  %v1009_v40 = vpop.f32.mrb[5].mxu1 }
  0xf3   :  { %2414 = vst [vmem:[%s3700_s3] sm:$0xff] %v2413_v33   ;;  %2761 = vst [vmem:[%s3700_s3 + $0x100] sm:$0xff] %v2573_v34   ;;  %v754_v41 = vadd.f32 %v3375_v6, %v753_v39  ;;  %v1010_v42 = vadd.f32 %v3375_v6, %v1009_v40  ;;  %v2879_v43 = vpop.f32.mrb[6].mxu0  ;;  %v2943_v44 = vpop.f32.mrb[6].mxu1 }
  0xf4   :  { %v765_v45 = vadd.f32 %v2879_v43, %v3375_v6  ;;  %v1021_v46 = vadd.f32 %v2943_v44, %v3375_v6  ;;  %v756_v47 = vpop.f32.mrb[7].mxu0  ;;  %v1012_v48 = vpop.f32.mrb[7].mxu1  ;;  %v1254_v51 = vmax.f32 %v762_v37, 0.0  ;;  %v1318_v52 = vmax.f32 %v1018_v38, 0.0 }
  0xf5   :  { %v757_v49 = vadd.f32 %v3375_v6, %v756_v47  ;;  %v1013_v50 = vadd.f32 %v3375_v6, %v1012_v48  ;;  %v1252_v55 = vmax.f32 %v754_v41, 0.0  ;;  %v1316_v56 = vmax.f32 %v1010_v42, 0.0 }
  0xf6   :  { %v1255_v53 = vmax.f32 %v765_v45, 0.0  ;;  %v1319_v54 = vmax.f32 %v1021_v46, 0.0 }
  0xf7   :  { %v1253_v57 = vmax.f32 %v757_v49, 0.0  ;;  %v1317_v58 = vmax.f32 %v1013_v50, 0.0 }
  0xf8   :  { %v2428_v59 = vpack.c.bf16 %v1255_v53, %v1254_v51  ;;  %v2588_v60 = vpack.c.bf16 %v1319_v54, %v1318_v52 }
  0xf9   :  { %v2423_v61 = vpack.c.bf16 %v1253_v57, %v1252_v55  ;;  %v2583_v62 = vpack.c.bf16 %v1317_v58, %v1316_v56  ;;  %v2882_v63 = vpop.f32.mrb[8].mxu0  ;;  %v2946_v0 = vpop.f32.mrb[8].mxu1 }
  0xfa   :  { %2732 = vst [vmem:[%s3700_s3 + $0x18] sm:$0xff] %v2428_v59   ;;  %2764 = vst [vmem:[%s3700_s3 + $0x118] sm:$0xff] %v2588_v60   ;;  %v778_v1 = vadd.f32 %v2882_v63, %v3375_v6  ;;  %v1034_v2 = vadd.f32 %v2946_v0, %v3375_v6  ;;  %v769_v3 = vpop.f32.mrb[9].mxu0  ;;  %v1025_v4 = vpop.f32.mrb[9].mxu1 }
  0xfb   :  { %2731 = vst [vmem:[%s3700_s3 + $0x10] sm:$0xff] %v2423_v61   ;;  %2763 = vst [vmem:[%s3700_s3 + $0x110] sm:$0xff] %v2583_v62   ;;  %v770_v5 = vadd.f32 %v3375_v6, %v769_v3  ;;  %v1026_v7 = vadd.f32 %v3375_v6, %v1025_v4  ;;  %v2883_v8 = vpop.f32.mrb[10].mxu0  ;;  %v2947_v9 = vpop.f32.mrb[10].mxu1 }
  0xfc   :  { %v781_v10 = vadd.f32 %v2883_v8, %v3375_v6  ;;  %v1037_v11 = vadd.f32 %v2947_v9, %v3375_v6  ;;  %v772_v12 = vpop.f32.mrb[11].mxu0  ;;  %v1028_v13 = vpop.f32.mrb[11].mxu1  ;;  %v1258_v16 = vmax.f32 %v778_v1, 0.0  ;;  %v1322_v17 = vmax.f32 %v1034_v2, 0.0 }
  0xfd   :  { %v773_v14 = vadd.f32 %v3375_v6, %v772_v12  ;;  %v1029_v15 = vadd.f32 %v3375_v6, %v1028_v13  ;;  %v1256_v20 = vmax.f32 %v770_v5, 0.0  ;;  %v1320_v21 = vmax.f32 %v1026_v7, 0.0 }
  0xfe   :  { %v1259_v18 = vmax.f32 %v781_v10, 0.0  ;;  %v1323_v19 = vmax.f32 %v1037_v11, 0.0 }
  0xff   :  { %v1257_v22 = vmax.f32 %v773_v14, 0.0  ;;  %v1321_v23 = vmax.f32 %v1029_v15, 0.0 }
 0x100   :  { %v2438_v24 = vpack.c.bf16 %v1259_v18, %v1258_v16  ;;  %v2598_v25 = vpack.c.bf16 %v1323_v19, %v1322_v17 }
 0x101   :  { %v2433_v26 = vpack.c.bf16 %v1257_v22, %v1256_v20  ;;  %v2593_v27 = vpack.c.bf16 %v1321_v23, %v1320_v21  ;;  %v2886_v28 = vpop.f32.mrb[12].mxu0  ;;  %v2950_v29 = vpop.f32.mrb[12].mxu1 }
 0x102   :  { %2734 = vst [vmem:[%s3700_s3 + $0x28] sm:$0xff] %v2438_v24   ;;  %2766 = vst [vmem:[%s3700_s3 + $0x128] sm:$0xff] %v2598_v25   ;;  %v794_v30 = vadd.f32 %v2886_v28, %v3375_v6  ;;  %v1050_v31 = vadd.f32 %v2950_v29, %v3375_v6  ;;  %v785_v32 = vpop.f32.mrb[13].mxu0  ;;  %v1041_v33 = vpop.f32.mrb[13].mxu1 }
 0x103   :  { %2733 = vst [vmem:[%s3700_s3 + $0x20] sm:$0xff] %v2433_v26   ;;  %2765 = vst [vmem:[%s3700_s3 + $0x120] sm:$0xff] %v2593_v27   ;;  %v786_v34 = vadd.f32 %v3375_v6, %v785_v32  ;;  %v1042_v35 = vadd.f32 %v3375_v6, %v1041_v33  ;;  %v2887_v36 = vpop.f32.mrb[14].mxu0  ;;  %v2951_v37 = vpop.f32.mrb[14].mxu1 }
 0x104   :  { %v797_v38 = vadd.f32 %v2887_v36, %v3375_v6  ;;  %v1053_v39 = vadd.f32 %v2951_v37, %v3375_v6  ;;  %v788_v40 = vpop.f32.mrb[15].mxu0  ;;  %v1044_v41 = vpop.f32.mrb[15].mxu1  ;;  %v1262_v44 = vmax.f32 %v794_v30, 0.0  ;;  %v1326_v45 = vmax.f32 %v1050_v31, 0.0 }
 0x105   :  { %v789_v42 = vadd.f32 %v3375_v6, %v788_v40  ;;  %v1045_v43 = vadd.f32 %v3375_v6, %v1044_v41  ;;  %v1260_v48 = vmax.f32 %v786_v34, 0.0  ;;  %v1324_v49 = vmax.f32 %v1042_v35, 0.0 }
 0x106   :  { %v1263_v46 = vmax.f32 %v797_v38, 0.0  ;;  %v1327_v47 = vmax.f32 %v1053_v39, 0.0 }
 0x107   :  { %v1261_v50 = vmax.f32 %v789_v42, 0.0  ;;  %v1325_v51 = vmax.f32 %v1045_v43, 0.0 }
 0x108   :  { %v2448_v52 = vpack.c.bf16 %v1263_v46, %v1262_v44  ;;  %v2608_v53 = vpack.c.bf16 %v1327_v47, %v1326_v45 }
 0x109   :  { %v2443_v54 = vpack.c.bf16 %v1261_v50, %v1260_v48  ;;  %v2603_v55 = vpack.c.bf16 %v1325_v51, %v1324_v49  ;;  %v2890_v56 = vpop.f32.mrb[16].mxu0  ;;  %v2954_v57 = vpop.f32.mrb[16].mxu1 }
 0x10a   :  { %2736 = vst [vmem:[%s3700_s3 + $0x38] sm:$0xff] %v2448_v52   ;;  %2768 = vst [vmem:[%s3700_s3 + $0x138] sm:$0xff] %v2608_v53   ;;  %v810_v58 = vadd.f32 %v2890_v56, %v3375_v6  ;;  %v1066_v59 = vadd.f32 %v2954_v57, %v3375_v6  ;;  %v801_v60 = vpop.f32.mrb[17].mxu0  ;;  %v1057_v61 = vpop.f32.mrb[17].mxu1 }
 0x10b   :  { %2735 = vst [vmem:[%s3700_s3 + $0x30] sm:$0xff] %v2443_v54   ;;  %2767 = vst [vmem:[%s3700_s3 + $0x130] sm:$0xff] %v2603_v55   ;;  %v802_v62 = vadd.f32 %v3375_v6, %v801_v60  ;;  %v1058_v63 = vadd.f32 %v3375_v6, %v1057_v61  ;;  %v2891_v0 = vpop.f32.mrb[18].mxu0  ;;  %v2955_v1 = vpop.f32.mrb[18].mxu1 }
 0x10c   :  { %v813_v2 = vadd.f32 %v2891_v0, %v3375_v6  ;;  %v1069_v3 = vadd.f32 %v2955_v1, %v3375_v6  ;;  %v804_v4 = vpop.f32.mrb[19].mxu0  ;;  %v1060_v5 = vpop.f32.mrb[19].mxu1  ;;  %v1266_v9 = vmax.f32 %v810_v58, 0.0  ;;  %v1330_v10 = vmax.f32 %v1066_v59, 0.0 }
 0x10d   :  { %v805_v7 = vadd.f32 %v3375_v6, %v804_v4  ;;  %v1061_v8 = vadd.f32 %v3375_v6, %v1060_v5  ;;  %v1264_v13 = vmax.f32 %v802_v62, 0.0  ;;  %v1328_v14 = vmax.f32 %v1058_v63, 0.0 }
 0x10e   :  { %v1267_v11 = vmax.f32 %v813_v2, 0.0  ;;  %v1331_v12 = vmax.f32 %v1069_v3, 0.0 }
 0x10f   :  { %v1265_v15 = vmax.f32 %v805_v7, 0.0  ;;  %v1329_v16 = vmax.f32 %v1061_v8, 0.0 }
 0x110   :  { %v2458_v17 = vpack.c.bf16 %v1267_v11, %v1266_v9  ;;  %v2618_v18 = vpack.c.bf16 %v1331_v12, %v1330_v10 }
 0x111   :  { %v2453_v19 = vpack.c.bf16 %v1265_v15, %v1264_v13  ;;  %v2613_v20 = vpack.c.bf16 %v1329_v16, %v1328_v14  ;;  %v2894_v21 = vpop.f32.mrb[20].mxu0  ;;  %v2958_v22 = vpop.f32.mrb[20].mxu1 }
 0x112   :  { %2738 = vst [vmem:[%s3700_s3 + $0x48] sm:$0xff] %v2458_v17   ;;  %2770 = vst [vmem:[%s3700_s3 + $0x148] sm:$0xff] %v2618_v18   ;;  %v826_v23 = vadd.f32 %v2894_v21, %v3375_v6  ;;  %v1082_v24 = vadd.f32 %v2958_v22, %v3375_v6  ;;  %v817_v25 = vpop.f32.mrb[21].mxu0  ;;  %v1073_v26 = vpop.f32.mrb[21].mxu1 }
 0x113   :  { %2737 = vst [vmem:[%s3700_s3 + $0x40] sm:$0xff] %v2453_v19   ;;  %2769 = vst [vmem:[%s3700_s3 + $0x140] sm:$0xff] %v2613_v20   ;;  %v818_v27 = vadd.f32 %v3375_v6, %v817_v25  ;;  %v1074_v28 = vadd.f32 %v3375_v6, %v1073_v26  ;;  %v2895_v29 = vpop.f32.mrb[22].mxu0  ;;  %v2959_v30 = vpop.f32.mrb[22].mxu1 }
 0x114   :  { %v829_v31 = vadd.f32 %v2895_v29, %v3375_v6  ;;  %v1085_v32 = vadd.f32 %v2959_v30, %v3375_v6  ;;  %v820_v33 = vpop.f32.mrb[23].mxu0  ;;  %v1076_v34 = vpop.f32.mrb[23].mxu1  ;;  %v1270_v37 = vmax.f32 %v826_v23, 0.0  ;;  %v1334_v38 = vmax.f32 %v1082_v24, 0.0 }
 0x115   :  { %v821_v35 = vadd.f32 %v3375_v6, %v820_v33  ;;  %v1077_v36 = vadd.f32 %v3375_v6, %v1076_v34  ;;  %v1268_v41 = vmax.f32 %v818_v27, 0.0  ;;  %v1332_v42 = vmax.f32 %v1074_v28, 0.0 }
 0x116   :  { %v1271_v39 = vmax.f32 %v829_v31, 0.0  ;;  %v1335_v40 = vmax.f32 %v1085_v32, 0.0 }
 0x117   :  { %v1269_v43 = vmax.f32 %v821_v35, 0.0  ;;  %v1333_v44 = vmax.f32 %v1077_v36, 0.0 }
 0x118   :  { %v2468_v45 = vpack.c.bf16 %v1271_v39, %v1270_v37  ;;  %v2628_v46 = vpack.c.bf16 %v1335_v40, %v1334_v38 }
 0x119   :  { %v2463_v47 = vpack.c.bf16 %v1269_v43, %v1268_v41  ;;  %v2623_v48 = vpack.c.bf16 %v1333_v44, %v1332_v42  ;;  %v2898_v49 = vpop.f32.mrb[24].mxu0  ;;  %v2962_v50 = vpop.f32.mrb[24].mxu1 }
 0x11a   :  { %2740 = vst [vmem:[%s3700_s3 + $0x58] sm:$0xff] %v2468_v45   ;;  %2772 = vst [vmem:[%s3700_s3 + $0x158] sm:$0xff] %v2628_v46   ;;  %v842_v51 = vadd.f32 %v2898_v49, %v3375_v6  ;;  %v1098_v52 = vadd.f32 %v2962_v50, %v3375_v6  ;;  %v833_v53 = vpop.f32.mrb[25].mxu0  ;;  %v1089_v54 = vpop.f32.mrb[25].mxu1 }
 0x11b   :  { %2739 = vst [vmem:[%s3700_s3 + $0x50] sm:$0xff] %v2463_v47   ;;  %2771 = vst [vmem:[%s3700_s3 + $0x150] sm:$0xff] %v2623_v48   ;;  %v834_v55 = vadd.f32 %v3375_v6, %v833_v53  ;;  %v1090_v56 = vadd.f32 %v3375_v6, %v1089_v54  ;;  %v2899_v57 = vpop.f32.mrb[26].mxu0  ;;  %v2963_v58 = vpop.f32.mrb[26].mxu1 }
 0x11c   :  { %v845_v59 = vadd.f32 %v2899_v57, %v3375_v6  ;;  %v1101_v60 = vadd.f32 %v2963_v58, %v3375_v6  ;;  %v836_v61 = vpop.f32.mrb[27].mxu0  ;;  %v1092_v62 = vpop.f32.mrb[27].mxu1  ;;  %v1274_v1 = vmax.f32 %v842_v51, 0.0  ;;  %v1338_v2 = vmax.f32 %v1098_v52, 0.0 }
 0x11d   :  { %v837_v63 = vadd.f32 %v3375_v6, %v836_v61  ;;  %v1093_v0 = vadd.f32 %v3375_v6, %v1092_v62  ;;  %v1272_v5 = vmax.f32 %v834_v55, 0.0  ;;  %v1336_v7 = vmax.f32 %v1090_v56, 0.0 }
 0x11e   :  { %v1275_v3 = vmax.f32 %v845_v59, 0.0  ;;  %v1339_v4 = vmax.f32 %v1101_v60, 0.0 }
 0x11f   :  { %v1273_v8 = vmax.f32 %v837_v63, 0.0  ;;  %v1337_v9 = vmax.f32 %v1093_v0, 0.0 }
 0x120   :  { %v2478_v10 = vpack.c.bf16 %v1275_v3, %v1274_v1  ;;  %v2638_v11 = vpack.c.bf16 %v1339_v4, %v1338_v2 }
 0x121   :  { %v2473_v12 = vpack.c.bf16 %v1273_v8, %v1272_v5  ;;  %v2633_v13 = vpack.c.bf16 %v1337_v9, %v1336_v7  ;;  %v2902_v14 = vpop.f32.mrb[28].mxu0  ;;  %v2966_v15 = vpop.f32.mrb[28].mxu1 }
 0x122   :  { %2742 = vst [vmem:[%s3700_s3 + $0x68] sm:$0xff] %v2478_v10   ;;  %2774 = vst [vmem:[%s3700_s3 + $0x168] sm:$0xff] %v2638_v11   ;;  %v858_v16 = vadd.f32 %v2902_v14, %v3375_v6  ;;  %v1114_v17 = vadd.f32 %v2966_v15, %v3375_v6  ;;  %v849_v18 = vpop.f32.mrb[29].mxu0  ;;  %v1105_v19 = vpop.f32.mrb[29].mxu1 }
 0x123   :  { %2741 = vst [vmem:[%s3700_s3 + $0x60] sm:$0xff] %v2473_v12   ;;  %2773 = vst [vmem:[%s3700_s3 + $0x160] sm:$0xff] %v2633_v13   ;;  %v850_v20 = vadd.f32 %v3375_v6, %v849_v18  ;;  %v1106_v21 = vadd.f32 %v3375_v6, %v1105_v19  ;;  %v2903_v22 = vpop.f32.mrb[30].mxu0  ;;  %v2967_v23 = vpop.f32.mrb[30].mxu1 }
 0x124   :  { %v861_v24 = vadd.f32 %v2903_v22, %v3375_v6  ;;  %v1117_v25 = vadd.f32 %v2967_v23, %v3375_v6  ;;  %v852_v26 = vpop.f32.mrb[31].mxu0  ;;  %v1108_v27 = vpop.f32.mrb[31].mxu1  ;;  %v1278_v30 = vmax.f32 %v858_v16, 0.0  ;;  %v1342_v31 = vmax.f32 %v1114_v17, 0.0 }
 0x125   :  { %v853_v28 = vadd.f32 %v3375_v6, %v852_v26  ;;  %v1109_v29 = vadd.f32 %v3375_v6, %v1108_v27  ;;  %v1276_v34 = vmax.f32 %v850_v20, 0.0  ;;  %v1340_v35 = vmax.f32 %v1106_v21, 0.0 }
 0x126   :  { %v1279_v32 = vmax.f32 %v861_v24, 0.0  ;;  %v1343_v33 = vmax.f32 %v1117_v25, 0.0 }
 0x127   :  { %v1277_v36 = vmax.f32 %v853_v28, 0.0  ;;  %v1341_v37 = vmax.f32 %v1109_v29, 0.0 }
 0x128   :  { %v2488_v38 = vpack.c.bf16 %v1279_v32, %v1278_v30  ;;  %v2648_v39 = vpack.c.bf16 %v1343_v33, %v1342_v31 }
 0x129   :  { %v2483_v40 = vpack.c.bf16 %v1277_v36, %v1276_v34  ;;  %v2643_v41 = vpack.c.bf16 %v1341_v37, %v1340_v35  ;;  %v2906_v42 = vpop.f32.mrb[32].mxu0  ;;  %v2970_v43 = vpop.f32.mrb[32].mxu1 }
 0x12a   :  { %2744 = vst [vmem:[%s3700_s3 + $0x78] sm:$0xff] %v2488_v38   ;;  %2776 = vst [vmem:[%s3700_s3 + $0x178] sm:$0xff] %v2648_v39   ;;  %v874_v44 = vadd.f32 %v2906_v42, %v3375_v6  ;;  %v1130_v45 = vadd.f32 %v2970_v43, %v3375_v6  ;;  %v865_v46 = vpop.f32.mrb[33].mxu0  ;;  %v1121_v47 = vpop.f32.mrb[33].mxu1 }
 0x12b   :  { %2743 = vst [vmem:[%s3700_s3 + $0x70] sm:$0xff] %v2483_v40   ;;  %2775 = vst [vmem:[%s3700_s3 + $0x170] sm:$0xff] %v2643_v41   ;;  %v866_v48 = vadd.f32 %v3375_v6, %v865_v46  ;;  %v1122_v49 = vadd.f32 %v3375_v6, %v1121_v47  ;;  %v2907_v50 = vpop.f32.mrb[34].mxu0  ;;  %v2971_v51 = vpop.f32.mrb[34].mxu1 }
 0x12c   :  { %v877_v52 = vadd.f32 %v2907_v50, %v3375_v6  ;;  %v1133_v53 = vadd.f32 %v2971_v51, %v3375_v6  ;;  %v868_v54 = vpop.f32.mrb[35].mxu0  ;;  %v1124_v55 = vpop.f32.mrb[35].mxu1  ;;  %v1282_v58 = vmax.f32 %v874_v44, 0.0  ;;  %v1346_v59 = vmax.f32 %v1130_v45, 0.0 }
 0x12d   :  { %v869_v56 = vadd.f32 %v3375_v6, %v868_v54  ;;  %v1125_v57 = vadd.f32 %v3375_v6, %v1124_v55  ;;  %v1280_v62 = vmax.f32 %v866_v48, 0.0  ;;  %v1344_v63 = vmax.f32 %v1122_v49, 0.0 }
 0x12e   :  { %v1283_v60 = vmax.f32 %v877_v52, 0.0  ;;  %v1347_v61 = vmax.f32 %v1133_v53, 0.0 }
 0x12f   :  { %v1281_v0 = vmax.f32 %v869_v56, 0.0  ;;  %v1345_v1 = vmax.f32 %v1125_v57, 0.0 }
 0x130   :  { %v2498_v2 = vpack.c.bf16 %v1283_v60, %v1282_v58  ;;  %v2658_v3 = vpack.c.bf16 %v1347_v61, %v1346_v59 }
 0x131   :  { %v2493_v4 = vpack.c.bf16 %v1281_v0, %v1280_v62  ;;  %v2653_v5 = vpack.c.bf16 %v1345_v1, %v1344_v63  ;;  %v2910_v7 = vpop.f32.mrb[36].mxu0  ;;  %v2974_v8 = vpop.f32.mrb[36].mxu1 }
 0x132   :  { %2746 = vst [vmem:[%s3700_s3 + $0x88] sm:$0xff] %v2498_v2   ;;  %2778 = vst [vmem:[%s3700_s3 + $0x188] sm:$0xff] %v2658_v3   ;;  %v890_v9 = vadd.f32 %v2910_v7, %v3375_v6  ;;  %v1146_v10 = vadd.f32 %v2974_v8, %v3375_v6  ;;  %v881_v11 = vpop.f32.mrb[37].mxu0  ;;  %v1137_v12 = vpop.f32.mrb[37].mxu1 }
 0x133   :  { %2745 = vst [vmem:[%s3700_s3 + $0x80] sm:$0xff] %v2493_v4   ;;  %2777 = vst [vmem:[%s3700_s3 + $0x180] sm:$0xff] %v2653_v5   ;;  %v882_v13 = vadd.f32 %v3375_v6, %v881_v11  ;;  %v1138_v14 = vadd.f32 %v3375_v6, %v1137_v12  ;;  %v2911_v15 = vpop.f32.mrb[38].mxu0  ;;  %v2975_v16 = vpop.f32.mrb[38].mxu1 }
 0x134   :  { %v893_v17 = vadd.f32 %v2911_v15, %v3375_v6  ;;  %v1149_v18 = vadd.f32 %v2975_v16, %v3375_v6  ;;  %v884_v19 = vpop.f32.mrb[39].mxu0  ;;  %v1140_v20 = vpop.f32.mrb[39].mxu1  ;;  %v1286_v23 = vmax.f32 %v890_v9, 0.0  ;;  %v1350_v24 = vmax.f32 %v1146_v10, 0.0 }
 0x135   :  { %v885_v21 = vadd.f32 %v3375_v6, %v884_v19  ;;  %v1141_v22 = vadd.f32 %v3375_v6, %v1140_v20  ;;  %v1284_v27 = vmax.f32 %v882_v13, 0.0  ;;  %v1348_v28 = vmax.f32 %v1138_v14, 0.0 }
 0x136   :  { %v1287_v25 = vmax.f32 %v893_v17, 0.0  ;;  %v1351_v26 = vmax.f32 %v1149_v18, 0.0 }
 0x137   :  { %v1285_v29 = vmax.f32 %v885_v21, 0.0  ;;  %v1349_v30 = vmax.f32 %v1141_v22, 0.0 }
 0x138   :  { %v2508_v31 = vpack.c.bf16 %v1287_v25, %v1286_v23  ;;  %v2668_v32 = vpack.c.bf16 %v1351_v26, %v1350_v24 }
 0x139   :  { %v2503_v33 = vpack.c.bf16 %v1285_v29, %v1284_v27  ;;  %v2663_v34 = vpack.c.bf16 %v1349_v30, %v1348_v28  ;;  %v2914_v35 = vpop.f32.mrb[40].mxu0  ;;  %v2978_v36 = vpop.f32.mrb[40].mxu1 }
 0x13a   :  { %2748 = vst [vmem:[%s3700_s3 + $0x98] sm:$0xff] %v2508_v31   ;;  %2780 = vst [vmem:[%s3700_s3 + $0x198] sm:$0xff] %v2668_v32   ;;  %v906_v37 = vadd.f32 %v2914_v35, %v3375_v6  ;;  %v1162_v38 = vadd.f32 %v2978_v36, %v3375_v6  ;;  %v897_v39 = vpop.f32.mrb[41].mxu0  ;;  %v1153_v40 = vpop.f32.mrb[41].mxu1 }
 0x13b   :  { %2747 = vst [vmem:[%s3700_s3 + $0x90] sm:$0xff] %v2503_v33   ;;  %2779 = vst [vmem:[%s3700_s3 + $0x190] sm:$0xff] %v2663_v34   ;;  %v898_v41 = vadd.f32 %v3375_v6, %v897_v39  ;;  %v1154_v42 = vadd.f32 %v3375_v6, %v1153_v40  ;;  %v2915_v43 = vpop.f32.mrb[42].mxu0  ;;  %v2979_v44 = vpop.f32.mrb[42].mxu1 }
 0x13c   :  { %v909_v45 = vadd.f32 %v2915_v43, %v3375_v6  ;;  %v1165_v46 = vadd.f32 %v2979_v44, %v3375_v6  ;;  %v900_v47 = vpop.f32.mrb[43].mxu0  ;;  %v1156_v48 = vpop.f32.mrb[43].mxu1  ;;  %v1290_v51 = vmax.f32 %v906_v37, 0.0  ;;  %v1354_v52 = vmax.f32 %v1162_v38, 0.0 }
 0x13d   :  { %v901_v49 = vadd.f32 %v3375_v6, %v900_v47  ;;  %v1157_v50 = vadd.f32 %v3375_v6, %v1156_v48  ;;  %v1288_v55 = vmax.f32 %v898_v41, 0.0  ;;  %v1352_v56 = vmax.f32 %v1154_v42, 0.0 }
 0x13e   :  { %v1291_v53 = vmax.f32 %v909_v45, 0.0  ;;  %v1355_v54 = vmax.f32 %v1165_v46, 0.0 }
 0x13f   :  { %v1289_v57 = vmax.f32 %v901_v49, 0.0  ;;  %v1353_v58 = vmax.f32 %v1157_v50, 0.0 }
 0x140   :  { %v2518_v59 = vpack.c.bf16 %v1291_v53, %v1290_v51  ;;  %v2678_v60 = vpack.c.bf16 %v1355_v54, %v1354_v52 }
 0x141   :  { %v2513_v61 = vpack.c.bf16 %v1289_v57, %v1288_v55  ;;  %v2673_v62 = vpack.c.bf16 %v1353_v58, %v1352_v56  ;;  %v2918_v63 = vpop.f32.mrb[44].mxu0  ;;  %v2982_v0 = vpop.f32.mrb[44].mxu1 }
 0x142   :  { %2750 = vst [vmem:[%s3700_s3 + $0xa8] sm:$0xff] %v2518_v59   ;;  %2782 = vst [vmem:[%s3700_s3 + $0x1a8] sm:$0xff] %v2678_v60   ;;  %v922_v1 = vadd.f32 %v2918_v63, %v3375_v6  ;;  %v1178_v2 = vadd.f32 %v2982_v0, %v3375_v6  ;;  %v913_v3 = vpop.f32.mrb[45].mxu0  ;;  %v1169_v4 = vpop.f32.mrb[45].mxu1 }
 0x143   :  { %2749 = vst [vmem:[%s3700_s3 + $0xa0] sm:$0xff] %v2513_v61   ;;  %2781 = vst [vmem:[%s3700_s3 + $0x1a0] sm:$0xff] %v2673_v62   ;;  %v914_v5 = vadd.f32 %v3375_v6, %v913_v3  ;;  %v1170_v7 = vadd.f32 %v3375_v6, %v1169_v4  ;;  %v2919_v8 = vpop.f32.mrb[46].mxu0  ;;  %v2983_v9 = vpop.f32.mrb[46].mxu1 }
 0x144   :  { %v925_v10 = vadd.f32 %v2919_v8, %v3375_v6  ;;  %v1181_v11 = vadd.f32 %v2983_v9, %v3375_v6  ;;  %v916_v12 = vpop.f32.mrb[47].mxu0  ;;  %v1172_v13 = vpop.f32.mrb[47].mxu1  ;;  %v1294_v16 = vmax.f32 %v922_v1, 0.0  ;;  %v1358_v17 = vmax.f32 %v1178_v2, 0.0 }
 0x145   :  { %v917_v14 = vadd.f32 %v3375_v6, %v916_v12  ;;  %v1173_v15 = vadd.f32 %v3375_v6, %v1172_v13  ;;  %v1292_v20 = vmax.f32 %v914_v5, 0.0  ;;  %v1356_v21 = vmax.f32 %v1170_v7, 0.0 }
 0x146   :  { %v1295_v18 = vmax.f32 %v925_v10, 0.0  ;;  %v1359_v19 = vmax.f32 %v1181_v11, 0.0 }
 0x147   :  { %v1293_v22 = vmax.f32 %v917_v14, 0.0  ;;  %v1357_v23 = vmax.f32 %v1173_v15, 0.0 }
 0x148   :  { %v2528_v24 = vpack.c.bf16 %v1295_v18, %v1294_v16  ;;  %v2688_v25 = vpack.c.bf16 %v1359_v19, %v1358_v17 }
 0x149   :  { %v2523_v26 = vpack.c.bf16 %v1293_v22, %v1292_v20  ;;  %v2683_v27 = vpack.c.bf16 %v1357_v23, %v1356_v21  ;;  %v2922_v28 = vpop.f32.mrb[48].mxu0  ;;  %v2986_v29 = vpop.f32.mrb[48].mxu1 }
 0x14a   :  { %2752 = vst [vmem:[%s3700_s3 + $0xb8] sm:$0xff] %v2528_v24   ;;  %2784 = vst [vmem:[%s3700_s3 + $0x1b8] sm:$0xff] %v2688_v25   ;;  %v938_v30 = vadd.f32 %v2922_v28, %v3375_v6  ;;  %v1194_v31 = vadd.f32 %v2986_v29, %v3375_v6  ;;  %v929_v32 = vpop.f32.mrb[49].mxu0  ;;  %v1185_v33 = vpop.f32.mrb[49].mxu1 }
 0x14b   :  { %2751 = vst [vmem:[%s3700_s3 + $0xb0] sm:$0xff] %v2523_v26   ;;  %2783 = vst [vmem:[%s3700_s3 + $0x1b0] sm:$0xff] %v2683_v27   ;;  %v930_v34 = vadd.f32 %v3375_v6, %v929_v32  ;;  %v1186_v35 = vadd.f32 %v3375_v6, %v1185_v33  ;;  %v2923_v36 = vpop.f32.mrb[50].mxu0  ;;  %v2987_v37 = vpop.f32.mrb[50].mxu1 }
 0x14c   :  { %v941_v38 = vadd.f32 %v2923_v36, %v3375_v6  ;;  %v1197_v39 = vadd.f32 %v2987_v37, %v3375_v6  ;;  %v932_v40 = vpop.f32.mrb[51].mxu0  ;;  %v1188_v41 = vpop.f32.mrb[51].mxu1  ;;  %v1298_v44 = vmax.f32 %v938_v30, 0.0  ;;  %v1362_v45 = vmax.f32 %v1194_v31, 0.0 }
 0x14d   :  { %v933_v42 = vadd.f32 %v3375_v6, %v932_v40  ;;  %v1189_v43 = vadd.f32 %v3375_v6, %v1188_v41  ;;  %v1296_v48 = vmax.f32 %v930_v34, 0.0  ;;  %v1360_v49 = vmax.f32 %v1186_v35, 0.0 }
 0x14e   :  { %v1299_v46 = vmax.f32 %v941_v38, 0.0  ;;  %v1363_v47 = vmax.f32 %v1197_v39, 0.0 }
 0x14f   :  { %v1297_v50 = vmax.f32 %v933_v42, 0.0  ;;  %v1361_v51 = vmax.f32 %v1189_v43, 0.0 }
 0x150   :  { %v2538_v52 = vpack.c.bf16 %v1299_v46, %v1298_v44  ;;  %v2698_v53 = vpack.c.bf16 %v1363_v47, %v1362_v45 }
 0x151   :  { %v2533_v54 = vpack.c.bf16 %v1297_v50, %v1296_v48  ;;  %v2693_v55 = vpack.c.bf16 %v1361_v51, %v1360_v49  ;;  %v2926_v56 = vpop.f32.mrb[52].mxu0  ;;  %v2990_v57 = vpop.f32.mrb[52].mxu1 }
 0x152   :  { %2754 = vst [vmem:[%s3700_s3 + $0xc8] sm:$0xff] %v2538_v52   ;;  %2786 = vst [vmem:[%s3700_s3 + $0x1c8] sm:$0xff] %v2698_v53   ;;  %v954_v58 = vadd.f32 %v2926_v56, %v3375_v6  ;;  %v1210_v59 = vadd.f32 %v2990_v57, %v3375_v6  ;;  %v945_v60 = vpop.f32.mrb[53].mxu0  ;;  %v1201_v61 = vpop.f32.mrb[53].mxu1 }
 0x153   :  { %2753 = vst [vmem:[%s3700_s3 + $0xc0] sm:$0xff] %v2533_v54   ;;  %2785 = vst [vmem:[%s3700_s3 + $0x1c0] sm:$0xff] %v2693_v55   ;;  %v946_v62 = vadd.f32 %v3375_v6, %v945_v60  ;;  %v1202_v63 = vadd.f32 %v3375_v6, %v1201_v61  ;;  %v2927_v0 = vpop.f32.mrb[54].mxu0  ;;  %v2991_v1 = vpop.f32.mrb[54].mxu1 }
 0x154   :  { %v957_v2 = vadd.f32 %v2927_v0, %v3375_v6  ;;  %v1213_v3 = vadd.f32 %v2991_v1, %v3375_v6  ;;  %v948_v4 = vpop.f32.mrb[55].mxu0  ;;  %v1204_v5 = vpop.f32.mrb[55].mxu1  ;;  %v1302_v9 = vmax.f32 %v954_v58, 0.0  ;;  %v1366_v10 = vmax.f32 %v1210_v59, 0.0 }
 0x155   :  { %v949_v7 = vadd.f32 %v3375_v6, %v948_v4  ;;  %v1205_v8 = vadd.f32 %v3375_v6, %v1204_v5  ;;  %v1300_v13 = vmax.f32 %v946_v62, 0.0  ;;  %v1364_v14 = vmax.f32 %v1202_v63, 0.0 }
 0x156   :  { %v1303_v11 = vmax.f32 %v957_v2, 0.0  ;;  %v1367_v12 = vmax.f32 %v1213_v3, 0.0 }
 0x157   :  { %v1301_v15 = vmax.f32 %v949_v7, 0.0  ;;  %v1365_v16 = vmax.f32 %v1205_v8, 0.0 }
 0x158   :  { %v2548_v17 = vpack.c.bf16 %v1303_v11, %v1302_v9  ;;  %v2708_v18 = vpack.c.bf16 %v1367_v12, %v1366_v10 }
 0x159   :  { %v2543_v19 = vpack.c.bf16 %v1301_v15, %v1300_v13  ;;  %v2703_v20 = vpack.c.bf16 %v1365_v16, %v1364_v14  ;;  %v2930_v21 = vpop.f32.mrb[56].mxu0  ;;  %v2994_v22 = vpop.f32.mrb[56].mxu1 }
 0x15a   :  { %2756 = vst [vmem:[%s3700_s3 + $0xd8] sm:$0xff] %v2548_v17   ;;  %2788 = vst [vmem:[%s3700_s3 + $0x1d8] sm:$0xff] %v2708_v18   ;;  %v970_v23 = vadd.f32 %v2930_v21, %v3375_v6  ;;  %v1226_v24 = vadd.f32 %v2994_v22, %v3375_v6  ;;  %v961_v25 = vpop.f32.mrb[57].mxu0  ;;  %v1217_v26 = vpop.f32.mrb[57].mxu1 }
 0x15b   :  { %2755 = vst [vmem:[%s3700_s3 + $0xd0] sm:$0xff] %v2543_v19   ;;  %2787 = vst [vmem:[%s3700_s3 + $0x1d0] sm:$0xff] %v2703_v20   ;;  %v962_v27 = vadd.f32 %v3375_v6, %v961_v25  ;;  %v1218_v28 = vadd.f32 %v3375_v6, %v1217_v26  ;;  %v2931_v29 = vpop.f32.mrb[58].mxu0  ;;  %v2995_v30 = vpop.f32.mrb[58].mxu1 }
 0x15c   :  { %v973_v31 = vadd.f32 %v2931_v29, %v3375_v6  ;;  %v1229_v32 = vadd.f32 %v2995_v30, %v3375_v6  ;;  %v964_v33 = vpop.f32.mrb[59].mxu0  ;;  %v1220_v34 = vpop.f32.mrb[59].mxu1  ;;  %v1306_v37 = vmax.f32 %v970_v23, 0.0  ;;  %v1370_v38 = vmax.f32 %v1226_v24, 0.0 }
 0x15d   :  { %v965_v35 = vadd.f32 %v3375_v6, %v964_v33  ;;  %v1221_v36 = vadd.f32 %v3375_v6, %v1220_v34  ;;  %v1304_v41 = vmax.f32 %v962_v27, 0.0  ;;  %v1368_v42 = vmax.f32 %v1218_v28, 0.0 }
 0x15e   :  { %v1307_v39 = vmax.f32 %v973_v31, 0.0  ;;  %v1371_v40 = vmax.f32 %v1229_v32, 0.0 }
 0x15f   :  { %v1305_v43 = vmax.f32 %v965_v35, 0.0  ;;  %v1369_v44 = vmax.f32 %v1221_v36, 0.0 }
 0x160   :  { %v2558_v45 = vpack.c.bf16 %v1307_v39, %v1306_v37  ;;  %v2718_v46 = vpack.c.bf16 %v1371_v40, %v1370_v38 }
 0x161   :  { %v2553_v47 = vpack.c.bf16 %v1305_v43, %v1304_v41  ;;  %v2713_v48 = vpack.c.bf16 %v1369_v44, %v1368_v42  ;;  %v2934_v49 = vpop.f32.mrb[60].mxu0  ;;  %v2998_v50 = vpop.f32.mrb[60].mxu1 }
 0x162   :  { %2758 = vst [vmem:[%s3700_s3 + $0xe8] sm:$0xff] %v2558_v45   ;;  %2790 = vst [vmem:[%s3700_s3 + $0x1e8] sm:$0xff] %v2718_v46   ;;  %v986_v51 = vadd.f32 %v2934_v49, %v3375_v6  ;;  %v1242_v52 = vadd.f32 %v2998_v50, %v3375_v6  ;;  %v977_v53 = vpop.f32.mrb[61].mxu0  ;;  %v1233_v54 = vpop.f32.mrb[61].mxu1 }
 0x163   :  { %2757 = vst [vmem:[%s3700_s3 + $0xe0] sm:$0xff] %v2553_v47   ;;  %2789 = vst [vmem:[%s3700_s3 + $0x1e0] sm:$0xff] %v2713_v48   ;;  %v978_v55 = vadd.f32 %v3375_v6, %v977_v53  ;;  %v1234_v56 = vadd.f32 %v3375_v6, %v1233_v54  ;;  %v2935_v57 = vpop.f32.mrb[62].mxu0  ;;  %v2999_v58 = vpop.f32.mrb[62].mxu1 }
 0x164   :  { %v989_v59 = vadd.f32 %v2935_v57, %v3375_v6  ;;  %v1245_v60 = vadd.f32 %v2999_v58, %v3375_v6  ;;  %v980_v61 = vpop.f32.mrb[63].mxu0  ;;  %v1236_v62 = vpop.f32.mrb[63].mxu1  ;;  %v1310_v1 = vmax.f32 %v986_v51, 0.0  ;;  %v1374_v2 = vmax.f32 %v1242_v52, 0.0 }
 0x165   :  { %v981_v63 = vadd.f32 %v3375_v6, %v980_v61  ;;  %v1237_v0 = vadd.f32 %v3375_v6, %v1236_v62  ;;  %v1308_v5 = vmax.f32 %v978_v55, 0.0  ;;  %v1372_v7 = vmax.f32 %v1234_v56, 0.0 }
 0x166   :  { %v1311_v3 = vmax.f32 %v989_v59, 0.0  ;;  %v1375_v4 = vmax.f32 %v1245_v60, 0.0 }
 0x167   :  { %v1309_v8 = vmax.f32 %v981_v63, 0.0  ;;  %v1373_v9 = vmax.f32 %v1237_v0, 0.0 }
 0x168   :  { %v2568_v10 = vpack.c.bf16 %v1311_v3, %v1310_v1  ;;  %v2728_v11 = vpack.c.bf16 %v1375_v4, %v1374_v2 }
 0x169   :  { %v2563_v12 = vpack.c.bf16 %v1309_v8, %v1308_v5  ;;  %v2723_v13 = vpack.c.bf16 %v1373_v9, %v1372_v7 }
 0x16a   :  { %2760 = vst [vmem:[%s3700_s3 + $0xf8] sm:$0xff] %v2568_v10   ;;  %2792 = vst [vmem:[%s3700_s3 + $0x1f8] sm:$0xff] %v2728_v11  }
 0x16b   :  { %2759 = vst [vmem:[%s3700_s3 + $0xf0] sm:$0xff] %v2563_v12   ;;  %2791 = vst [vmem:[%s3700_s3 + $0x1f0] sm:$0xff] %v2723_v13  }

// kernel: color_transform_d.7
= control target key start
LH: loop header
LB: loop body
LE: loop exit
PB: predicated region body
PF: predicated region fallthrough
CT: control target
= control target key end

     0   :  { %s1350_s12 = smov 0   ;;  %s1352_s13 = smov 0   ;;  %s1634_s0 = inlined_call_operand.vmem [shape: bf16[2,8,2,8,256], index: 0, kind: input, shape index: {}]   ;;  %s1635_s1 = inlined_call_operand.vmem [shape: bf16[512,256], index: 1, kind: input, shape index: {}]   ;;  %s1636_s2 = inlined_call_operand.vmem [shape: f32[1,256], index: 2, kind: input, shape index: {}]   ;;  %s1637_s3 = inlined_call_operand.vmem [shape: bf16[2,64,256], index: 3, kind: output, shape index: {}]  }
   0x1   :  { %s1354_s14 = smov 0  }
   0x2 LB: > { %s25_s15 = sadd.s32 1, %s1324_s13  ;;  %p1025_p0 = scmp.ge.s32.totalorder %s1328_s14, 1  ;;  %s1328_s14 = sphi %s1354_s14, %s13_s14   ;;  %s1324_s13 = sphi %s1352_s13, %s1639_s13   ;;  %s1320_s12 = sphi %s1350_s12, %s1638_s12  }
   0x3   : > { %p27_p1 = scmp.ge.s32.totalorder %s25_s15, 2  ;;  %p159_p2 = scmp.lt.s32.totalorder %s1328_s14, 3 }
   0x5   : > { %s1641_s15 = smov (%p27_p1, %s25_s15), 0  ;;  %p160_p3 = pnand %p1025_p0, %p159_p2 }
   0x6   : > { %v1186_v0 = vld [vmem:[%s1635_s1 + $0x4] ss:$8 sps:$4 sm:$0xff] (!%p160_p3)   ;;  %v1190_v2 = vld [vmem:[%s1635_s1] ss:$8 sps:$4 sm:$0xff] (!%p160_p3)   ;;  %v1192_v4 = vld [vmem:[%s1635_s1 + $0x14] ss:$8 sps:$4 sm:$0xff] (!%p160_p3)  }
   0x7   : > { %163 = sbr.rel (%p160_p3) target bundleno = 319 (0x13f), region = 32  ;;  %v1188_v1 = vld [vmem:[%s1635_s1 + $0x104] ss:$8 sps:$4 sm:$0xff] (!%p160_p3)   ;;  %707 = vmatprep.subr.bf16.mxu1 (!%p160_p3), %v1186_v0  ;;  %v1191_v3 = vld [vmem:[%s1635_s1 + $0x100] ss:$8 sps:$4 sm:$0xff] (!%p160_p3)   ;;  %p194_p4 = scmp.lt.s32.totalorder (!%p160_p3), %s1320_s12, 1 }
   0x8   : > { %780 = vmatprep.subr.bf16.mxu0 (!%p160_p3), %v1188_v1  ;;  %708 = vmatpush1.bf16.msra.mxu1 (!%p160_p3), %v1190_v2  ;;  %v1194_v5 = vld [vmem:[%s1635_s1 + $0x114] ss:$8 sps:$4 sm:$0xff] (!%p160_p3)   ;;  %v1196_v6 = vld [vmem:[%s1635_s1 + $0x10] ss:$8 sps:$4 sm:$0xff] (!%p160_p3)   ;;  %v1198_v8 = vld [vmem:[%s1635_s1 + $0x24] ss:$8 sps:$4 sm:$0xff] (!%p160_p3)  }
   0x9   : > { %781 = vmatpush1.bf16.msra.mxu0 (!%p160_p3), %v1191_v3  ;;  %709 = vmatprep.subr.bf16.mxu1 (!%p160_p3), %v1192_v4  ;;  %v1197_v7 = vld [vmem:[%s1635_s1 + $0x110] ss:$8 sps:$4 sm:$0xff] (!%p160_p3)   ;;  %v1200_v9 = vld [vmem:[%s1635_s1 + $0x124] ss:$8 sps:$4 sm:$0xff] (!%p160_p3)   ;;  %v1202_v10 = vld [vmem:[%s1635_s1 + $0x20] ss:$8 sps:$4 sm:$0xff] (!%p160_p3)  }
   0xa   : > { %782 = vmatprep.subr.bf16.mxu0 (!%p160_p3), %v1194_v5  ;;  %v1203_v11 = vld [vmem:[%s1635_s1 + $0x120] ss:$8 sps:$4 sm:$0xff] (!%p160_p3)   ;;  %v1204_v12 = vld [vmem:[%s1635_s1 + $0x34] ss:$8 sps:$4 sm:$0xff] (!%p160_p3)   ;;  %v1208_v14 = vld [vmem:[%s1635_s1 + $0x30] ss:$8 sps:$4 sm:$0xff] (!%p160_p3)  }
   0xb   : > { %v1206_v13 = vld [vmem:[%s1635_s1 + $0x134] ss:$8 sps:$4 sm:$0xff] (!%p160_p3)   ;;  %v1209_v15 = vld [vmem:[%s1635_s1 + $0x130] ss:$8 sps:$4 sm:$0xff] (!%p160_p3)   ;;  %v1210_v16 = vld [vmem:[%s1635_s1 + $0x44] ss:$8 sps:$4 sm:$0xff] (!%p160_p3)  }
   0xc   : > { %710 = vmatpush1.bf16.msra.mxu1 (!%p160_p3), %v1196_v6  ;;  %v1212_v17 = vld [vmem:[%s1635_s1 + $0x144] ss:$8 sps:$4 sm:$0xff] (!%p160_p3)   ;;  %v1214_v18 = vld [vmem:[%s1635_s1 + $0x40] ss:$8 sps:$4 sm:$0xff] (!%p160_p3)   ;;  %v1216_v20 = vld [vmem:[%s1635_s1 + $0x54] ss:$8 sps:$4 sm:$0xff] (!%p160_p3)  }
   0xd   : > { %783 = vmatpush1.bf16.msra.mxu0 (!%p160_p3), %v1197_v7  ;;  %711 = vmatprep.subr.bf16.mxu1 (!%p160_p3), %v1198_v8  ;;  %v1215_v19 = vld [vmem:[%s1635_s1 + $0x140] ss:$8 sps:$4 sm:$0xff] (!%p160_p3)   ;;  %v1218_v21 = vld [vmem:[%s1635_s1 + $0x154] ss:$8 sps:$4 sm:$0xff] (!%p160_p3)   ;;  %v1220_v22 = vld [vmem:[%s1635_s1 + $0x50] ss:$8 sps:$4 sm:$0xff] (!%p160_p3)  }
   0xe   : > { %784 = vmatprep.subr.bf16.mxu0 %v1200_v9  ;;  %v1221_v23 = vld [vmem:[%s1635_s1 + $0x150] ss:$8 sps:$4 sm:$0xff]   ;;  %v1222_v24 = vld [vmem:[%s1635_s1 + $0x64] ss:$8 sps:$4 sm:$0xff]   ;;  %v1226_v26 = vld [vmem:[%s1635_s1 + $0x60] ss:$8 sps:$4 sm:$0xff]  }
   0xf   : > { %v1224_v25 = vld [vmem:[%s1635_s1 + $0x164] ss:$8 sps:$4 sm:$0xff]   ;;  %v1227_v27 = vld [vmem:[%s1635_s1 + $0x160] ss:$8 sps:$4 sm:$0xff]   ;;  %v1228_v28 = vld [vmem:[%s1635_s1 + $0x74] ss:$8 sps:$4 sm:$0xff]  }
  0x10   : > { %712 = vmatpush1.bf16.msra.mxu1 %v1202_v10  ;;  %v1230_v29 = vld [vmem:[%s1635_s1 + $0x174] ss:$8 sps:$4 sm:$0xff]   ;;  %v1232_v30 = vld [vmem:[%s1635_s1 + $0x70] ss:$8 sps:$4 sm:$0xff]   ;;  %v1234_v32 = vld [vmem:[%s1635_s1 + $0x84] ss:$8 sps:$4 sm:$0xff]  }
  0x11   : > { %785 = vmatpush1.bf16.msra.mxu0 %v1203_v11  ;;  %713 = vmatprep.subr.bf16.mxu1 %v1204_v12  ;;  %v1233_v31 = vld [vmem:[%s1635_s1 + $0x170] ss:$8 sps:$4 sm:$0xff]   ;;  %v1236_v33 = vld [vmem:[%s1635_s1 + $0x184] ss:$8 sps:$4 sm:$0xff]   ;;  %v1238_v34 = vld [vmem:[%s1635_s1 + $0x80] ss:$8 sps:$4 sm:$0xff]  }
  0x12   : > { %786 = vmatprep.subr.bf16.mxu0 %v1206_v13  ;;  %v1239_v35 = vld [vmem:[%s1635_s1 + $0x180] ss:$8 sps:$4 sm:$0xff]   ;;  %v1240_v36 = vld [vmem:[%s1635_s1 + $0x94] ss:$8 sps:$4 sm:$0xff]   ;;  %s1643_s12 = smov (!%p194_p4, %s1320_s12), 1 }
  0x13   : > { %v1242_v37 = vld [vmem:[%s1635_s1 + $0x194] ss:$8 sps:$4 sm:$0xff]   ;;  %v1244_v38 = vld [vmem:[%s1635_s1 + $0x90] ss:$8 sps:$4 sm:$0xff]   ;;  %v1246_v40 = vld [vmem:[%s1635_s1 + $0xa4] ss:$8 sps:$4 sm:$0xff]  }
  0x14   : > { %714 = vmatpush1.bf16.msra.mxu1 %v1208_v14  ;;  %v1245_v39 = vld [vmem:[%s1635_s1 + $0x190] ss:$8 sps:$4 sm:$0xff]   ;;  %v1248_v41 = vld [vmem:[%s1635_s1 + $0x1a4] ss:$8 sps:$4 sm:$0xff]   ;;  %s1120_s4 = sshll.u32 %s1643_s12, 7 }
  0x15   : > { %787 = vmatpush1.bf16.msra.mxu0 %v1209_v15  ;;  %715 = vmatprep.subr.bf16.mxu1 %v1210_v16  ;;  %v1250_v42 = vld [vmem:[%s1635_s1 + $0xa0] ss:$8 sps:$4 sm:$0xff]   ;;  %v1252_v44 = vld [vmem:[%s1635_s1 + $0xb4] ss:$8 sps:$4 sm:$0xff]   ;;  %s1513_s17 = scalar_lea.vmem %s1634_s0, %s1120_s4  ;;  %v1256_v46 = vld [vmem:[%s1635_s1 + $0xb0] ss:$8 sps:$4 sm:$0xff]   ;;  %v345_v16 = vlaneseq }
  0x16   : > { %788 = vmatprep.subr.bf16.mxu0 %v1212_v17  ;;  %v1251_v43 = vld [vmem:[%s1635_s1 + $0x1a0] ss:$8 sps:$4 sm:$0xff]   ;;  %v1254_v45 = vld [vmem:[%s1635_s1 + $0x1b4] ss:$8 sps:$4 sm:$0xff]   ;;  %v1257_v47 = vld [vmem:[%s1635_s1 + $0x1b0] ss:$8 sps:$4 sm:$0xff]  }
  0x17   : > { %v1258_v48 = vld [vmem:[%s1635_s1 + $0xc4] ss:$8 sps:$4 sm:$0xff]   ;;  %v1262_v52 = vld [vmem:[%s1635_s1 + $0xc0] ss:$8 sps:$4 sm:$0xff]   ;;  %v1264_v54 = vld [vmem:[%s1635_s1 + $0xd4] ss:$8 sps:$4 sm:$0xff]  }
  0x18   : > { %716 = vmatpush1.bf16.msra.mxu1 %v1214_v18  ;;  %v1284_v49 = vld [vmem:[%s1513_s17 + $0x4] ss:$16 sps:$4 sm:$0xff]   ;;  %v1287_v51 = vld [vmem:[%s1513_s17 + $0xc] ss:$16 sps:$4 sm:$0xff]   ;;  %v1263_v53 = vld [vmem:[%s1635_s1 + $0x1c0] ss:$8 sps:$4 sm:$0xff]  }
  0x19   : > { %789 = vmatpush1.bf16.msra.mxu0 %v1215_v19  ;;  %717 = vmatprep.subr.bf16.mxu1 %v1216_v20  ;;  %v1260_v50 = vld [vmem:[%s1635_s1 + $0x1c4] ss:$8 sps:$4 sm:$0xff]   ;;  %v1266_v55 = vld [vmem:[%s1635_s1 + $0x1d4] ss:$8 sps:$4 sm:$0xff]   ;;  %v1268_v56 = vld [vmem:[%s1635_s1 + $0xd0] ss:$8 sps:$4 sm:$0xff]  }
  0x1a   : > { %790 = vmatprep.subr.bf16.mxu0 %v1218_v21  ;;  %739 = vmatprep.mubr.bf16.mxu1 %v1284_v49  ;;  %v1269_v57 = vld [vmem:[%s1635_s1 + $0x1d0] ss:$8 sps:$4 sm:$0xff]   ;;  %v1270_v58 = vld [vmem:[%s1635_s1 + $0xe4] ss:$8 sps:$4 sm:$0xff]   ;;  %v1274_v60 = vld [vmem:[%s1635_s1 + $0xe0] ss:$8 sps:$4 sm:$0xff]  }
  0x1b   : > { %812 = vmatprep.mubr.bf16.mxu0 %v1287_v51  ;;  %v1272_v59 = vld [vmem:[%s1635_s1 + $0x1e4] ss:$8 sps:$4 sm:$0xff]   ;;  %v1275_v61 = vld [vmem:[%s1635_s1 + $0x1e0] ss:$8 sps:$4 sm:$0xff]   ;;  %v1276_v62 = vld [vmem:[%s1635_s1 + $0xf4] ss:$8 sps:$4 sm:$0xff]  }
  0x1c   : > { %718 = vmatpush1.bf16.msra.mxu1 %v1220_v22  ;;  %v1278_v63 = vld [vmem:[%s1635_s1 + $0x1f4] ss:$8 sps:$4 sm:$0xff]   ;;  %v1280_v0 = vld [vmem:[%s1635_s1 + $0xf0] ss:$8 sps:$4 sm:$0xff]   ;;  %v346_v17 = vshrl.u32 %v345_v16, 7 }
  0x1d   : > { %791 = vmatpush1.bf16.msra.mxu0 %v1221_v23  ;;  %719 = vmatprep.subr.bf16.mxu1 %v1222_v24  ;;  %v1281_v1 = vld [vmem:[%s1635_s1 + $0x1f0] ss:$8 sps:$4 sm:$0xff]   ;;  %v1288_v4 = vld [vmem:[%s1513_s17 + $0x24] ss:$16 sps:$4 sm:$0xff]   ;;  %v1290_v5 = vld [vmem:[%s1513_s17 + $0x2c] ss:$16 sps:$4 sm:$0xff]  }
  0x1e   : > { %792 = vmatprep.subr.bf16.mxu0 %v1224_v25  ;;  %v1282_v2 = vld [vmem:[%s1513_s17] ss:$16 sps:$4 sm:$0xff]   ;;  %v1285_v3 = vld [vmem:[%s1513_s17 + $0x8] ss:$16 sps:$4 sm:$0xff]   ;;  %v1294_v8 = vld [vmem:[%s1513_s17 + $0x44] ss:$16 sps:$4 sm:$0xff]  }
  0x1f   : > { %v1292_v6 = vld [vmem:[%s1513_s17 + $0x20] ss:$16 sps:$4 sm:$0xff]   ;;  %v1293_v7 = vld [vmem:[%s1513_s17 + $0x28] ss:$16 sps:$4 sm:$0xff]   ;;  %v1296_v9 = vld [vmem:[%s1513_s17 + $0x4c] ss:$16 sps:$4 sm:$0xff]  }
  0x20   : > { %720 = vmatpush1.bf16.msra.mxu1 %v1226_v26  ;;  %v1298_v10 = vld [vmem:[%s1513_s17 + $0x40] ss:$16 sps:$4 sm:$0xff]   ;;  %v1299_v11 = vld [vmem:[%s1513_s17 + $0x48] ss:$16 sps:$4 sm:$0xff]   ;;  %v1300_v12 = vld [vmem:[%s1513_s17 + $0x64] ss:$16 sps:$4 sm:$0xff]  }
  0x21   : > { %793 = vmatpush1.bf16.msra.mxu0 %v1227_v27  ;;  %721 = vmatprep.subr.bf16.mxu1 %v1228_v28  ;;  %v1302_v13 = vld [vmem:[%s1513_s17 + $0x6c] ss:$16 sps:$4 sm:$0xff]   ;;  %v1304_v14 = vld [vmem:[%s1513_s17 + $0x60] ss:$16 sps:$4 sm:$0xff]   ;;  %v1305_v15 = vld [vmem:[%s1513_s17 + $0x68] ss:$16 sps:$4 sm:$0xff]  }
  0x22   : > { %794 = vmatprep.subr.bf16.mxu0 %v1230_v29  ;;  %v347_v18 = vsub.s32 0, %v346_v17  ;;  %v343_v19 = vld [vmem:[%s1636_s2] sm:$0x3]  ;;  %v351_v20 = vsub.s32 1, %v346_v17  ;;  %s1121_s17 = sshll.u32 %s1643_s12, 6 }
  0x23   : > { %s1603_s11 = scalar_lea.vmem %s1637_s3, %s1121_s17 }
  0x24   : > { %722 = vmatpush1.bf16.msra.mxu1 %v1232_v30  ;;  %v1591_v21 = vrot.slane %v343_v19, %v347_v18  ;;  %v1593_v22 = vrot.slane %v343_v19, %v351_v20 }
  0x25   : > { %795 = vmatpush1.bf16.msra.mxu0 %v1233_v31  ;;  %723 = vmatprep.subr.bf16.mxu1 %v1234_v32 }
  0x26   : > { %796 = vmatprep.subr.bf16.mxu0 %v1236_v33 }
  0x28   : > { %724 = vmatpush1.bf16.msra.mxu1 %v1238_v34 }
  0x29   : > { %797 = vmatpush1.bf16.msra.mxu0 %v1239_v35  ;;  %725 = vmatprep.subr.bf16.mxu1 %v1240_v36 }
  0x2a   : > { %798 = vmatprep.subr.bf16.mxu0 %v1242_v37 }
  0x2c   : > { %726 = vmatpush1.bf16.msra.mxu1 %v1244_v38 }
  0x2d   : > { %799 = vmatpush1.bf16.msra.mxu0 %v1245_v39  ;;  %727 = vmatprep.subr.bf16.mxu1 %v1246_v40 }
  0x2e   : > { %800 = vmatprep.subr.bf16.mxu0 %v1248_v41 }
  0x30   : > { %728 = vmatpush1.bf16.msra.mxu1 %v1250_v42 }
  0x31   : > { %801 = vmatpush1.bf16.msra.mxu0 %v1251_v43  ;;  %729 = vmatprep.subr.bf16.mxu1 %v1252_v44 }
  0x32   : > { %802 = vmatprep.subr.bf16.mxu0 %v1254_v45 }
  0x34   : > { %730 = vmatpush1.bf16.msra.mxu1 %v1256_v46 }
  0x35   : > { %803 = vmatpush1.bf16.msra.mxu0 %v1257_v47  ;;  %731 = vmatprep.subr.bf16.mxu1 %v1258_v48 }
  0x36   : > { %804 = vmatprep.subr.bf16.mxu0 %v1260_v50 }
  0x38   : > { %732 = vmatpush1.bf16.msra.mxu1 %v1262_v52 }
  0x39   : > { %805 = vmatpush1.bf16.msra.mxu0 %v1263_v53  ;;  %733 = vmatprep.subr.bf16.mxu1 %v1264_v54 }
  0x3a   : > { %806 = vmatprep.subr.bf16.mxu0 %v1266_v55 }
  0x3c   : > { %734 = vmatpush1.bf16.msra.mxu1 %v1268_v56 }
  0x3d   : > { %807 = vmatpush1.bf16.msra.mxu0 %v1269_v57  ;;  %735 = vmatprep.subr.bf16.mxu1 %v1270_v58 }
  0x3e   : > { %808 = vmatprep.subr.bf16.mxu0 %v1272_v59 }
  0x40   : > { %736 = vmatpush1.bf16.msra.mxu1 %v1274_v60 }
  0x41   : > { %809 = vmatpush1.bf16.msra.mxu0 %v1275_v61  ;;  %737 = vmatprep.subr.bf16.mxu1 %v1276_v62 }
  0x42   : > { %810 = vmatprep.subr.bf16.mxu0 %v1278_v63 }
  0x44   : > { %738 = vmatpush1.bf16.msra.mxu1 %v1280_v0 }
  0x45   : > { %811 = vmatpush1.bf16.msra.mxu0 %v1281_v1 }
  0x47   : > { %740 = vmatmul.mubr.bf16.vlgmr.msra.gmra.mrb[0].mxu1 %v1282_v2 }
  0x48   : > { %813 = vmatmul.mubr.bf16.vlgmr.msra.gmra.mrb[0].mxu0 %v1285_v3  ;;  %749 = vmatprep.mubr.bf16.mxu1 %v1288_v4 }
  0x49   : > { %822 = vmatprep.mubr.bf16.mxu0 %v1290_v5 }
  0x4f   : > { %750 = vmatmul.mubr.bf16.gmra.mrb[4].mxu1 %v1292_v6 }
  0x50   : > { %823 = vmatmul.mubr.bf16.gmra.mrb[4].mxu0 %v1293_v7  ;;  %759 = vmatprep.mubr.bf16.mxu1 %v1294_v8 }
  0x51   : > { %832 = vmatprep.mubr.bf16.mxu0 %v1296_v9 }
  0x57   : > { %760 = vmatmul.mubr.bf16.gmra.mrb[8].mxu1 %v1298_v10 }
  0x58   : > { %833 = vmatmul.mubr.bf16.gmra.mrb[8].mxu0 %v1299_v11  ;;  %769 = vmatprep.mubr.bf16.mxu1 %v1300_v12 }
  0x59   : > { %842 = vmatprep.mubr.bf16.mxu0 %v1302_v13 }
  0x5f   : > { %770 = vmatmul.mubr.bf16.gmra.mrb[12].mxu1 %v1304_v14 }
  0x60   : > { %843 = vmatmul.mubr.bf16.gmra.mrb[12].mxu0 %v1305_v15 }
 0x11a   : > { %v741_v23 = vpop.f32.mrb[0].mxu1 }
 0x11b   : > { %v814_v24 = vpop.f32.mrb[0].mxu0  ;;  %v742_v25 = vadd.f32 %v741_v23, %v1591_v21  ;;  %v743_v26 = vpop.f32.mrb[1].mxu1 }
 0x11c   : > { %v816_v27 = vpop.f32.mrb[1].mxu0  ;;  %v744_v28 = vadd.f32 %v743_v26, %v1593_v22  ;;  %v745_v29 = vpop.f32.mrb[2].mxu1 }
 0x11d   : > { %v818_v30 = vpop.f32.mrb[2].mxu0  ;;  %v815_v31 = vadd.f32 %v814_v24, %v742_v25  ;;  %v746_v32 = vadd.f32 %v745_v29, %v1591_v21  ;;  %v747_v33 = vpop.f32.mrb[3].mxu1 }
 0x11e   : > { %v820_v34 = vpop.f32.mrb[3].mxu0  ;;  %v817_v35 = vadd.f32 %v816_v27, %v744_v28  ;;  %v748_v36 = vadd.f32 %v747_v33, %v1593_v22 }
 0x11f   : > { %v853_v37 = vmax.f32 %v815_v31, 0.0  ;;  %v819_v38 = vadd.f32 %v818_v30, %v746_v32 }
 0x120   : > { %v854_v39 = vmax.f32 %v817_v35, 0.0  ;;  %v821_v40 = vadd.f32 %v820_v34, %v748_v36 }
 0x121   : > { %v855_v41 = vmax.f32 %v819_v38, 0.0 }
 0x122   : > { %v1122_v42 = vpack.c.bf16 %v854_v39, %v853_v37  ;;  %v856_v43 = vmax.f32 %v821_v40, 0.0  ;;  %v751_v44 = vpop.f32.mrb[4].mxu1 }
 0x123   : > { %v824_v45 = vpop.f32.mrb[4].mxu0  ;;  %v752_v46 = vadd.f32 %v751_v44, %v1591_v21  ;;  %v753_v47 = vpop.f32.mrb[5].mxu1 }
 0x124   : > { %v826_v48 = vpop.f32.mrb[5].mxu0  ;;  %917 = vst [vmem:[%s1603_s11] sm:$0xff] %v1122_v42  ;;  %v1123_v49 = vpack.c.bf16 %v856_v43, %v855_v41  ;;  %v754_v50 = vadd.f32 %v753_v47, %v1593_v22  ;;  %v755_v51 = vpop.f32.mrb[6].mxu1 }
 0x125   : > { %v828_v52 = vpop.f32.mrb[6].mxu0  ;;  %v825_v53 = vadd.f32 %v824_v45, %v752_v46  ;;  %v756_v54 = vadd.f32 %v755_v51, %v1591_v21  ;;  %v757_v55 = vpop.f32.mrb[7].mxu1 }
 0x126   : > { %v830_v56 = vpop.f32.mrb[7].mxu0  ;;  %918 = vst [vmem:[%s1603_s11 + $0x8] sm:$0xff] %v1123_v49  ;;  %v827_v57 = vadd.f32 %v826_v48, %v754_v50  ;;  %v758_v58 = vadd.f32 %v757_v55, %v1593_v22 }
 0x127   : > { %v857_v59 = vmax.f32 %v825_v53, 0.0  ;;  %v829_v60 = vadd.f32 %v828_v52, %v756_v54 }
 0x128   : > { %v858_v61 = vmax.f32 %v827_v57, 0.0  ;;  %v831_v62 = vadd.f32 %v830_v56, %v758_v58 }
 0x129   : > { %v859_v63 = vmax.f32 %v829_v60, 0.0 }
 0x12a   : > { %v1124_v0 = vpack.c.bf16 %v858_v61, %v857_v59  ;;  %v860_v1 = vmax.f32 %v831_v62, 0.0  ;;  %v761_v2 = vpop.f32.mrb[8].mxu1 }
 0x12b   : > { %v834_v3 = vpop.f32.mrb[8].mxu0  ;;  %v762_v4 = vadd.f32 %v761_v2, %v1591_v21  ;;  %v763_v5 = vpop.f32.mrb[9].mxu1 }
 0x12c   : > { %v836_v6 = vpop.f32.mrb[9].mxu0  ;;  %919 = vst [vmem:[%s1603_s11 + $0x10] sm:$0xff] %v1124_v0  ;;  %v1125_v7 = vpack.c.bf16 %v860_v1, %v859_v63  ;;  %v764_v8 = vadd.f32 %v763_v5, %v1593_v22  ;;  %v765_v9 = vpop.f32.mrb[10].mxu1 }
 0x12d   : > { %v838_v10 = vpop.f32.mrb[10].mxu0  ;;  %v835_v11 = vadd.f32 %v834_v3, %v762_v4  ;;  %v766_v12 = vadd.f32 %v765_v9, %v1591_v21  ;;  %v767_v13 = vpop.f32.mrb[11].mxu1 }
 0x12e   : > { %v840_v14 = vpop.f32.mrb[11].mxu0  ;;  %920 = vst [vmem:[%s1603_s11 + $0x18] sm:$0xff] %v1125_v7  ;;  %v837_v15 = vadd.f32 %v836_v6, %v764_v8  ;;  %v768_v16 = vadd.f32 %v767_v13, %v1593_v22 }
 0x12f   : > { %v861_v17 = vmax.f32 %v835_v11, 0.0  ;;  %v839_v18 = vadd.f32 %v838_v10, %v766_v12 }
 0x130   : > { %v862_v19 = vmax.f32 %v837_v15, 0.0  ;;  %v841_v20 = vadd.f32 %v840_v14, %v768_v16 }
 0x131   : > { %v863_v23 = vmax.f32 %v839_v18, 0.0 }
 0x132   : > { %v1126_v24 = vpack.c.bf16 %v862_v19, %v861_v17  ;;  %v864_v25 = vmax.f32 %v841_v20, 0.0  ;;  %v771_v26 = vpop.f32.mrb[12].mxu1 }
 0x133   : > { %v844_v27 = vpop.f32.mrb[12].mxu0  ;;  %v772_v28 = vadd.f32 %v771_v26, %v1591_v21  ;;  %v773_v29 = vpop.f32.mrb[13].mxu1 }
 0x134   : > { %v846_v30 = vpop.f32.mrb[13].mxu0  ;;  %921 = vst [vmem:[%s1603_s11 + $0x20] sm:$0xff] %v1126_v24  ;;  %v1127_v31 = vpack.c.bf16 %v864_v25, %v863_v23  ;;  %v774_v32 = vadd.f32 %v773_v29, %v1593_v22  ;;  %v775_v33 = vpop.f32.mrb[14].mxu1 }
 0x135   : > { %v848_v34 = vpop.f32.mrb[14].mxu0  ;;  %v845_v35 = vadd.f32 %v844_v27, %v772_v28  ;;  %v776_v36 = vadd.f32 %v775_v33, %v1591_v21  ;;  %v777_v37 = vpop.f32.mrb[15].mxu1 }
 0x136   : > { %v850_v38 = vpop.f32.mrb[15].mxu0  ;;  %922 = vst [vmem:[%s1603_s11 + $0x28] sm:$0xff] %v1127_v31  ;;  %v847_v39 = vadd.f32 %v846_v30, %v774_v32  ;;  %v778_v40 = vadd.f32 %v777_v37, %v1593_v22 }
 0x137   : > { %v865_v41 = vmax.f32 %v845_v35, 0.0  ;;  %v849_v42 = vadd.f32 %v848_v34, %v776_v36 }
 0x138   : > { %v866_v43 = vmax.f32 %v847_v39, 0.0  ;;  %v851_v44 = vadd.f32 %v850_v38, %v778_v40 }
 0x139   : > { %v867_v45 = vmax.f32 %v849_v42, 0.0 }
 0x13a   : > { %v1128_v46 = vpack.c.bf16 %v866_v43, %v865_v41  ;;  %v868_v47 = vmax.f32 %v851_v44, 0.0 }
 0x13c   : > { %923 = vst [vmem:[%s1603_s11 + $0x30] sm:$0xff] %v1128_v46  ;;  %v1129_v48 = vpack.c.bf16 %v868_v47, %v867_v45 }
 0x13e   : > { %924 = vst [vmem:[%s1603_s11 + $0x38] sm:$0xff] %v1129_v48 }
 0x13f PF: > { %s13_s14 = sadd.s32 1, %s1328_s14   ;;  %s1638_s12 = smov %s1324_s13 }
 0x140   : > { %p10_p5 = scmp.ge.s32.totalorder %s13_s14, 4   ;;  %s1639_s13 = smov %s1641_s15 }
 0x142   :  { %12 = sbr.rel (!%p10_p5) target bundleno = 2 (0x2), region = 62 }

// kernel: color_transform_d.8
= control target key start
LH: loop header
LB: loop body
LE: loop exit
PB: predicated region body
PF: predicated region fallthrough
CT: control target
= control target key end

     0   :  { %s3791_s1 = inlined_call_operand.vmem [shape: bf16[1024,512], index: 1, kind: input, shape index: {}]   ;;  %s3792_s0 = inlined_call_operand.vmem [shape: bf16[32,1024], index: 0, kind: input, shape index: {}]   ;;  %s3793_s2 = inlined_call_operand.vmem [shape: f32[1,512], index: 2, kind: input, shape index: {}]   ;;  %s3794_s3 = inlined_call_operand.vmem [shape: bf16[32,512], index: 3, kind: output, shape index: {}]  }
   0x1   :  { %v2520_v0 = vld [vmem:[%s3791_s1 + $0x4] ss:$16 sps:$4 sm:$0xff]   ;;  %v2522_v1 = vld [vmem:[%s3791_s1 + $0xc] ss:$16 sps:$4 sm:$0xff]   ;;  %v2524_v2 = vld [vmem:[%s3791_s1] ss:$16 sps:$4 sm:$0xff]  }
   0x2   :  { %1668 = vmatprep.subr.bf16.mxu0 %v2520_v0  ;;  %v2525_v3 = vld [vmem:[%s3791_s1 + $0x8] ss:$16 sps:$4 sm:$0xff]   ;;  %1880 = vmatprep.subr.bf16.mxu1 %v2522_v1  ;;  %v2526_v4 = vld [vmem:[%s3791_s1 + $0x24] ss:$16 sps:$4 sm:$0xff]   ;;  %v2528_v5 = vld [vmem:[%s3791_s1 + $0x2c] ss:$16 sps:$4 sm:$0xff]  }
   0x3   :  { %1669 = vmatpush1.bf16.msra.mxu0 %v2524_v2  ;;  %1881 = vmatpush1.bf16.msra.mxu1 %v2525_v3  ;;  %v2530_v6 = vld [vmem:[%s3791_s1 + $0x20] ss:$16 sps:$4 sm:$0xff]   ;;  %v2531_v7 = vld [vmem:[%s3791_s1 + $0x28] ss:$16 sps:$4 sm:$0xff]   ;;  %v2532_v8 = vld [vmem:[%s3791_s1 + $0x44] ss:$16 sps:$4 sm:$0xff]  }
   0x4   :  { %1670 = vmatprep.subr.bf16.mxu0 %v2526_v4  ;;  %1882 = vmatprep.subr.bf16.mxu1 %v2528_v5  ;;  %v2534_v9 = vld [vmem:[%s3791_s1 + $0x4c] ss:$16 sps:$4 sm:$0xff]   ;;  %v2536_v10 = vld [vmem:[%s3791_s1 + $0x40] ss:$16 sps:$4 sm:$0xff]   ;;  %v2537_v11 = vld [vmem:[%s3791_s1 + $0x48] ss:$16 sps:$4 sm:$0xff]  }
   0x5   :  { %v2538_v12 = vld [vmem:[%s3791_s1 + $0x64] ss:$16 sps:$4 sm:$0xff]   ;;  %v2540_v13 = vld [vmem:[%s3791_s1 + $0x6c] ss:$16 sps:$4 sm:$0xff]   ;;  %v2542_v14 = vld [vmem:[%s3791_s1 + $0x60] ss:$16 sps:$4 sm:$0xff]  }
   0x6   :  { %v2543_v15 = vld [vmem:[%s3791_s1 + $0x68] ss:$16 sps:$4 sm:$0xff]   ;;  %v2544_v16 = vld [vmem:[%s3791_s1 + $0x84] ss:$16 sps:$4 sm:$0xff]   ;;  %v2546_v17 = vld [vmem:[%s3791_s1 + $0x8c] ss:$16 sps:$4 sm:$0xff]  }
   0x7   :  { %1671 = vmatpush1.bf16.msra.mxu0 %v2530_v6  ;;  %1883 = vmatpush1.bf16.msra.mxu1 %v2531_v7  ;;  %v2548_v18 = vld [vmem:[%s3791_s1 + $0x80] ss:$16 sps:$4 sm:$0xff]   ;;  %v2549_v19 = vld [vmem:[%s3791_s1 + $0x88] ss:$16 sps:$4 sm:$0xff]   ;;  %v2550_v20 = vld [vmem:[%s3791_s1 + $0xa4] ss:$16 sps:$4 sm:$0xff]  }
   0x8   :  { %1672 = vmatprep.subr.bf16.mxu0 %v2532_v8  ;;  %1884 = vmatprep.subr.bf16.mxu1 %v2534_v9  ;;  %v2552_v21 = vld [vmem:[%s3791_s1 + $0xac] ss:$16 sps:$4 sm:$0xff]   ;;  %v2554_v22 = vld [vmem:[%s3791_s1 + $0xa0] ss:$16 sps:$4 sm:$0xff]   ;;  %v2555_v23 = vld [vmem:[%s3791_s1 + $0xa8] ss:$16 sps:$4 sm:$0xff]  }
   0x9   :  { %v2556_v24 = vld [vmem:[%s3791_s1 + $0xc4] ss:$16 sps:$4 sm:$0xff]   ;;  %v2558_v25 = vld [vmem:[%s3791_s1 + $0xcc] ss:$16 sps:$4 sm:$0xff]   ;;  %v2560_v26 = vld [vmem:[%s3791_s1 + $0xc0] ss:$16 sps:$4 sm:$0xff]  }
   0xa   :  { %v2561_v27 = vld [vmem:[%s3791_s1 + $0xc8] ss:$16 sps:$4 sm:$0xff]   ;;  %v2562_v28 = vld [vmem:[%s3791_s1 + $0xe4] ss:$16 sps:$4 sm:$0xff]   ;;  %v2564_v29 = vld [vmem:[%s3791_s1 + $0xec] ss:$16 sps:$4 sm:$0xff]  }
   0xb   :  { %1673 = vmatpush1.bf16.msra.mxu0 %v2536_v10  ;;  %1885 = vmatpush1.bf16.msra.mxu1 %v2537_v11  ;;  %v2566_v30 = vld [vmem:[%s3791_s1 + $0xe0] ss:$16 sps:$4 sm:$0xff]   ;;  %v2567_v31 = vld [vmem:[%s3791_s1 + $0xe8] ss:$16 sps:$4 sm:$0xff]   ;;  %v2568_v32 = vld [vmem:[%s3791_s1 + $0x104] ss:$16 sps:$4 sm:$0xff]  }
   0xc   :  { %1674 = vmatprep.subr.bf16.mxu0 %v2538_v12  ;;  %1886 = vmatprep.subr.bf16.mxu1 %v2540_v13  ;;  %v2570_v33 = vld [vmem:[%s3791_s1 + $0x10c] ss:$16 sps:$4 sm:$0xff]   ;;  %v2572_v34 = vld [vmem:[%s3791_s1 + $0x100] ss:$16 sps:$4 sm:$0xff]   ;;  %v2573_v35 = vld [vmem:[%s3791_s1 + $0x108] ss:$16 sps:$4 sm:$0xff]  }
   0xd   :  { %v2574_v36 = vld [vmem:[%s3791_s1 + $0x124] ss:$16 sps:$4 sm:$0xff]   ;;  %v2576_v37 = vld [vmem:[%s3791_s1 + $0x12c] ss:$16 sps:$4 sm:$0xff]   ;;  %v2578_v38 = vld [vmem:[%s3791_s1 + $0x120] ss:$16 sps:$4 sm:$0xff]  }
   0xe   :  { %v2579_v39 = vld [vmem:[%s3791_s1 + $0x128] ss:$16 sps:$4 sm:$0xff]   ;;  %v2580_v40 = vld [vmem:[%s3791_s1 + $0x144] ss:$16 sps:$4 sm:$0xff]   ;;  %v2582_v41 = vld [vmem:[%s3791_s1 + $0x14c] ss:$16 sps:$4 sm:$0xff]  }
   0xf   :  { %1675 = vmatpush1.bf16.msra.mxu0 %v2542_v14  ;;  %1887 = vmatpush1.bf16.msra.mxu1 %v2543_v15  ;;  %v2584_v42 = vld [vmem:[%s3791_s1 + $0x140] ss:$16 sps:$4 sm:$0xff]   ;;  %v2585_v43 = vld [vmem:[%s3791_s1 + $0x148] ss:$16 sps:$4 sm:$0xff]   ;;  %v2586_v44 = vld [vmem:[%s3791_s1 + $0x164] ss:$16 sps:$4 sm:$0xff]  }
  0x10   :  { %1676 = vmatprep.subr.bf16.mxu0 %v2544_v16  ;;  %1888 = vmatprep.subr.bf16.mxu1 %v2546_v17  ;;  %v2588_v45 = vld [vmem:[%s3791_s1 + $0x16c] ss:$16 sps:$4 sm:$0xff]   ;;  %v14_v46 = vld [vmem:[%s3792_s0] sm:$0xff]  ;;  %v2591_v49 = vld [vmem:[%s3791_s1 + $0x168] ss:$16 sps:$4 sm:$0xff]  }
  0x11   :  { %v18_v47 = vld [vmem:[%s3792_s0 + $0x20] sm:$0xff]  ;;  %v2594_v52 = vld [vmem:[%s3791_s1 + $0x18c] ss:$16 sps:$4 sm:$0xff]   ;;  %v2597_v54 = vld [vmem:[%s3791_s1 + $0x188] ss:$16 sps:$4 sm:$0xff]  }
  0x12   :  { %v2590_v48 = vld [vmem:[%s3791_s1 + $0x160] ss:$16 sps:$4 sm:$0xff]   ;;  %v2169_v50 = vcombine.high %v14_v46, %v18_v47  ;;  %v2592_v51 = vld [vmem:[%s3791_s1 + $0x184] ss:$16 sps:$4 sm:$0xff]   ;;  %v2600_v56 = vld [vmem:[%s3791_s1 + $0x1ac] ss:$16 sps:$4 sm:$0xff]   ;;  %v2168_v5 = vcombine.low %v14_v46, %v18_v47 }
  0x13   :  { %1677 = vmatpush1.bf16.msra.mxu0 %v2548_v18  ;;  %1889 = vmatpush1.bf16.msra.mxu1 %v2549_v19  ;;  %v2596_v53 = vld [vmem:[%s3791_s1 + $0x180] ss:$16 sps:$4 sm:$0xff]   ;;  %v2598_v55 = vld [vmem:[%s3791_s1 + $0x1a4] ss:$16 sps:$4 sm:$0xff]   ;;  %v2603_v58 = vld [vmem:[%s3791_s1 + $0x1a8] ss:$16 sps:$4 sm:$0xff]  }
  0x14   :  { %1678 = vmatprep.subr.bf16.mxu0 %v2550_v20  ;;  %1890 = vmatprep.subr.bf16.mxu1 %v2552_v21  ;;  %v2602_v57 = vld [vmem:[%s3791_s1 + $0x1a0] ss:$16 sps:$4 sm:$0xff]   ;;  %v2604_v59 = vld [vmem:[%s3791_s1 + $0x1c4] ss:$16 sps:$4 sm:$0xff]   ;;  %v2606_v60 = vld [vmem:[%s3791_s1 + $0x1cc] ss:$16 sps:$4 sm:$0xff]  }
  0x15   :  { %1700 = vmatprep.mubr.bf16.mxu0 %v2169_v50  ;;  %1912 = vmatprep.mubr.bf16.mxu1 %v2169_v50  ;;  %v2608_v61 = vld [vmem:[%s3791_s1 + $0x1c0] ss:$16 sps:$4 sm:$0xff]   ;;  %v2609_v62 = vld [vmem:[%s3791_s1 + $0x1c8] ss:$16 sps:$4 sm:$0xff]   ;;  %v2610_v63 = vld [vmem:[%s3791_s1 + $0x1e4] ss:$16 sps:$4 sm:$0xff]  }
  0x16   :  { %v2612_v0 = vld [vmem:[%s3791_s1 + $0x1ec] ss:$16 sps:$4 sm:$0xff]   ;;  %v2614_v1 = vld [vmem:[%s3791_s1 + $0x1e0] ss:$16 sps:$4 sm:$0xff]   ;;  %v2615_v2 = vld [vmem:[%s3791_s1 + $0x1e8] ss:$16 sps:$4 sm:$0xff]  }
  0x17   :  { %1679 = vmatpush1.bf16.msra.mxu0 %v2554_v22  ;;  %1891 = vmatpush1.bf16.msra.mxu1 %v2555_v23  ;;  %v2618_v3 = vld [vmem:[%s3791_s1 + $0x204] ss:$16 sps:$4 sm:$0xff]   ;;  %v2621_v4 = vld [vmem:[%s3791_s1 + $0x20c] ss:$16 sps:$4 sm:$0xff]   ;;  %v2616_v6 = vld [vmem:[%s3791_s1 + $0x200] ss:$16 sps:$4 sm:$0xff]  }
  0x18   :  { %1680 = vmatprep.subr.bf16.mxu0 %v2556_v24  ;;  %1892 = vmatprep.subr.bf16.mxu1 %v2558_v25  ;;  %v2619_v7 = vld [vmem:[%s3791_s1 + $0x208] ss:$16 sps:$4 sm:$0xff]   ;;  %v2624_v8 = vld [vmem:[%s3791_s1 + $0x224] ss:$16 sps:$4 sm:$0xff]   ;;  %v2627_v9 = vld [vmem:[%s3791_s1 + $0x22c] ss:$16 sps:$4 sm:$0xff]  }
  0x19   :  { %v2622_v10 = vld [vmem:[%s3791_s1 + $0x220] ss:$16 sps:$4 sm:$0xff]   ;;  %v2625_v11 = vld [vmem:[%s3791_s1 + $0x228] ss:$16 sps:$4 sm:$0xff]   ;;  %v2630_v12 = vld [vmem:[%s3791_s1 + $0x244] ss:$16 sps:$4 sm:$0xff]  }
  0x1a   :  { %v2633_v13 = vld [vmem:[%s3791_s1 + $0x24c] ss:$16 sps:$4 sm:$0xff]   ;;  %v2628_v14 = vld [vmem:[%s3791_s1 + $0x240] ss:$16 sps:$4 sm:$0xff]   ;;  %v2631_v15 = vld [vmem:[%s3791_s1 + $0x248] ss:$16 sps:$4 sm:$0xff]  }
  0x1b   :  { %1681 = vmatpush1.bf16.msra.mxu0 %v2560_v26  ;;  %1893 = vmatpush1.bf16.msra.mxu1 %v2561_v27  ;;  %v2636_v16 = vld [vmem:[%s3791_s1 + $0x264] ss:$16 sps:$4 sm:$0xff]   ;;  %v2639_v17 = vld [vmem:[%s3791_s1 + $0x26c] ss:$16 sps:$4 sm:$0xff]   ;;  %v2634_v18 = vld [vmem:[%s3791_s1 + $0x260] ss:$16 sps:$4 sm:$0xff]  }
  0x1c   :  { %1682 = vmatprep.subr.bf16.mxu0 %v2562_v28  ;;  %1894 = vmatprep.subr.bf16.mxu1 %v2564_v29  ;;  %v2637_v19 = vld [vmem:[%s3791_s1 + $0x268] ss:$16 sps:$4 sm:$0xff]   ;;  %v2642_v20 = vld [vmem:[%s3791_s1 + $0x284] ss:$16 sps:$4 sm:$0xff]   ;;  %v2645_v21 = vld [vmem:[%s3791_s1 + $0x28c] ss:$16 sps:$4 sm:$0xff]  }
  0x1d   :  { %v2640_v22 = vld [vmem:[%s3791_s1 + $0x280] ss:$16 sps:$4 sm:$0xff]   ;;  %v2643_v23 = vld [vmem:[%s3791_s1 + $0x288] ss:$16 sps:$4 sm:$0xff]   ;;  %v2648_v24 = vld [vmem:[%s3791_s1 + $0x2a4] ss:$16 sps:$4 sm:$0xff]  }
  0x1e   :  { %v2651_v25 = vld [vmem:[%s3791_s1 + $0x2ac] ss:$16 sps:$4 sm:$0xff]   ;;  %v22_v26 = vld [vmem:[%s3792_s0 + $0x40] sm:$0xff]  ;;  %v2667_v46 = vld [vmem:[%s3791_s1 + $0x308] ss:$16 sps:$4 sm:$0xff]  }
  0x1f   :  { %1683 = vmatpush1.bf16.msra.mxu0 %v2566_v30  ;;  %1895 = vmatpush1.bf16.msra.mxu1 %v2567_v31  ;;  %v26_v27 = vld [vmem:[%s3792_s0 + $0x60] sm:$0xff]  ;;  %v2649_v30 = vld [vmem:[%s3791_s1 + $0x2a8] ss:$16 sps:$4 sm:$0xff]  }
  0x20   :  { %1684 = vmatprep.subr.bf16.mxu0 %v2568_v32  ;;  %1896 = vmatprep.subr.bf16.mxu1 %v2570_v33  ;;  %v2177_v28 = vcombine.high %v22_v26, %v26_v27  ;;  %v2646_v29 = vld [vmem:[%s3791_s1 + $0x2a0] ss:$16 sps:$4 sm:$0xff]   ;;  %v2176_v31 = vcombine.low %v22_v26, %v26_v27  ;;  %v2654_v32 = vld [vmem:[%s3791_s1 + $0x2c4] ss:$16 sps:$4 sm:$0xff]   ;;  %v2657_v33 = vld [vmem:[%s3791_s1 + $0x2cc] ss:$16 sps:$4 sm:$0xff]  }
  0x21   :  { %v2672_v47 = vld [vmem:[%s3791_s1 + $0x324] ss:$16 sps:$4 sm:$0xff]   ;;  %v2673_v50 = vld [vmem:[%s3791_s1 + $0x328] ss:$16 sps:$4 sm:$0xff]  }
  0x22   :  { %v3378_v27 = vld [vmem:[%s3792_s0 + $0x30] sm:$0xff] }
  0x23   :  { %1685 = vmatpush1.bf16.msra.mxu0 %v2572_v34  ;;  %1897 = vmatpush1.bf16.msra.mxu1 %v2573_v35  ;;  %v3209_v34 = vld [vmem:[%s3792_s0 + $0x8] sm:$0xff] }
  0x24   :  { %1686 = vmatprep.subr.bf16.mxu0 %v2574_v36  ;;  %1898 = vmatprep.subr.bf16.mxu1 %v2576_v37  ;;  %v3214_v35 = vld [vmem:[%s3792_s0 + $0x28] sm:$0xff]  ;;  %v2652_v36 = vld [vmem:[%s3791_s1 + $0x2c0] ss:$16 sps:$4 sm:$0xff]  }
  0x25   :  { %v2655_v37 = vld [vmem:[%s3791_s1 + $0x2c8] ss:$16 sps:$4 sm:$0xff]  }
  0x27   :  { %1687 = vmatpush1.bf16.msra.mxu0 %v2578_v38  ;;  %1899 = vmatpush1.bf16.msra.mxu1 %v2579_v39  ;;  %v2171_v38 = vcombine.high %v3209_v34, %v3214_v35  ;;  %v2660_v39 = vld [vmem:[%s3791_s1 + $0x2e4] ss:$16 sps:$4 sm:$0xff]  }
  0x28   :  { %1688 = vmatprep.subr.bf16.mxu0 %v2580_v40  ;;  %1900 = vmatprep.subr.bf16.mxu1 %v2582_v41  ;;  %v2663_v40 = vld [vmem:[%s3791_s1 + $0x2ec] ss:$16 sps:$4 sm:$0xff]   ;;  %v2658_v41 = vld [vmem:[%s3791_s1 + $0x2e0] ss:$16 sps:$4 sm:$0xff]  }
  0x2b   :  { %1689 = vmatpush1.bf16.msra.mxu0 %v2584_v42  ;;  %1901 = vmatpush1.bf16.msra.mxu1 %v2585_v43  ;;  %v2661_v42 = vld [vmem:[%s3791_s1 + $0x2e8] ss:$16 sps:$4 sm:$0xff]   ;;  %v2666_v43 = vld [vmem:[%s3791_s1 + $0x304] ss:$16 sps:$4 sm:$0xff]  }
  0x2c   :  { %1690 = vmatprep.subr.bf16.mxu0 %v2586_v44  ;;  %1902 = vmatprep.subr.bf16.mxu1 %v2588_v45  ;;  %v2669_v44 = vld [vmem:[%s3791_s1 + $0x30c] ss:$16 sps:$4 sm:$0xff]   ;;  %v2664_v45 = vld [vmem:[%s3791_s1 + $0x300] ss:$16 sps:$4 sm:$0xff]  }
  0x2f   :  { %1691 = vmatpush1.bf16.msra.mxu0 %v2590_v48  ;;  %1903 = vmatpush1.bf16.msra.mxu1 %v2591_v49  ;;  %v2675_v48 = vld [vmem:[%s3791_s1 + $0x32c] ss:$16 sps:$4 sm:$0xff]   ;;  %v2670_v49 = vld [vmem:[%s3791_s1 + $0x320] ss:$16 sps:$4 sm:$0xff]  }
  0x30   :  { %1692 = vmatprep.subr.bf16.mxu0 %v2592_v51  ;;  %1904 = vmatprep.subr.bf16.mxu1 %v2594_v52  ;;  %v2678_v51 = vld [vmem:[%s3791_s1 + $0x344] ss:$16 sps:$4 sm:$0xff]   ;;  %v2681_v52 = vld [vmem:[%s3791_s1 + $0x34c] ss:$16 sps:$4 sm:$0xff]  }
  0x33   :  { %1693 = vmatpush1.bf16.msra.mxu0 %v2596_v53  ;;  %1905 = vmatpush1.bf16.msra.mxu1 %v2597_v54  ;;  %v2676_v53 = vld [vmem:[%s3791_s1 + $0x340] ss:$16 sps:$4 sm:$0xff]   ;;  %v2679_v54 = vld [vmem:[%s3791_s1 + $0x348] ss:$16 sps:$4 sm:$0xff]  }
  0x34   :  { %1694 = vmatprep.subr.bf16.mxu0 %v2598_v55  ;;  %1906 = vmatprep.subr.bf16.mxu1 %v2600_v56  ;;  %v2684_v55 = vld [vmem:[%s3791_s1 + $0x364] ss:$16 sps:$4 sm:$0xff]   ;;  %v2687_v56 = vld [vmem:[%s3791_s1 + $0x36c] ss:$16 sps:$4 sm:$0xff]  }
  0x37   :  { %1695 = vmatpush1.bf16.msra.mxu0 %v2602_v57  ;;  %1907 = vmatpush1.bf16.msra.mxu1 %v2603_v58  ;;  %v2682_v57 = vld [vmem:[%s3791_s1 + $0x360] ss:$16 sps:$4 sm:$0xff]   ;;  %v2685_v58 = vld [vmem:[%s3791_s1 + $0x368] ss:$16 sps:$4 sm:$0xff]  }
  0x38   :  { %1696 = vmatprep.subr.bf16.mxu0 %v2604_v59  ;;  %1908 = vmatprep.subr.bf16.mxu1 %v2606_v60  ;;  %v2690_v59 = vld [vmem:[%s3791_s1 + $0x384] ss:$16 sps:$4 sm:$0xff]   ;;  %v2693_v60 = vld [vmem:[%s3791_s1 + $0x38c] ss:$16 sps:$4 sm:$0xff]  }
  0x3b   :  { %1697 = vmatpush1.bf16.msra.mxu0 %v2608_v61  ;;  %1909 = vmatpush1.bf16.msra.mxu1 %v2609_v62  ;;  %v2688_v61 = vld [vmem:[%s3791_s1 + $0x380] ss:$16 sps:$4 sm:$0xff]   ;;  %v2691_v62 = vld [vmem:[%s3791_s1 + $0x388] ss:$16 sps:$4 sm:$0xff]  }
  0x3c   :  { %1698 = vmatprep.subr.bf16.mxu0 %v2610_v63  ;;  %1910 = vmatprep.subr.bf16.mxu1 %v2612_v0  ;;  %v2696_v63 = vld [vmem:[%s3791_s1 + $0x3a4] ss:$16 sps:$4 sm:$0xff]   ;;  %v2699_v0 = vld [vmem:[%s3791_s1 + $0x3ac] ss:$16 sps:$4 sm:$0xff]  }
  0x3f   :  { %1699 = vmatpush1.bf16.msra.mxu0 %v2614_v1  ;;  %1911 = vmatpush1.bf16.msra.mxu1 %v2615_v2  ;;  %v2694_v1 = vld [vmem:[%s3791_s1 + $0x3a0] ss:$16 sps:$4 sm:$0xff]   ;;  %v2697_v2 = vld [vmem:[%s3791_s1 + $0x3a8] ss:$16 sps:$4 sm:$0xff]  }
  0x40   :  { %1721 = vmatprep.subr.bf16.mxu0 %v2618_v3  ;;  %1933 = vmatprep.subr.bf16.mxu1 %v2621_v4  ;;  %v2702_v3 = vld [vmem:[%s3791_s1 + $0x3c4] ss:$16 sps:$4 sm:$0xff]   ;;  %v2705_v4 = vld [vmem:[%s3791_s1 + $0x3cc] ss:$16 sps:$4 sm:$0xff]  }
  0x42   :  { %1701 = vmatmul.mubr.bf16.vlgmr.msra.gmra.mrb[0].mxu0 %v2168_v5  ;;  %1913 = vmatmul.mubr.bf16.vlgmr.msra.gmra.mrb[0].mxu1 %v2168_v5  ;;  %v2700_v5 = vld [vmem:[%s3791_s1 + $0x3c0] ss:$16 sps:$4 sm:$0xff]  }
  0x43   :  { %1722 = vmatpush1.bf16.msra.mxu0 %v2616_v6  ;;  %1934 = vmatpush1.bf16.msra.mxu1 %v2619_v7  ;;  %v2703_v6 = vld [vmem:[%s3791_s1 + $0x3c8] ss:$16 sps:$4 sm:$0xff]   ;;  %v2708_v7 = vld [vmem:[%s3791_s1 + $0x3e4] ss:$16 sps:$4 sm:$0xff]  }
  0x44   :  { %1723 = vmatprep.subr.bf16.mxu0 %v2624_v8  ;;  %1935 = vmatprep.subr.bf16.mxu1 %v2627_v9  ;;  %v2711_v8 = vld [vmem:[%s3791_s1 + $0x3ec] ss:$16 sps:$4 sm:$0xff]   ;;  %v2706_v9 = vld [vmem:[%s3791_s1 + $0x3e0] ss:$16 sps:$4 sm:$0xff]  }
  0x45   :  { %1710 = vmatprep.mubr.bf16.mxu0 %v2177_v28  ;;  %1922 = vmatprep.mubr.bf16.mxu1 %v2177_v28  ;;  %v2724_v28 = vld [vmem:[%s3791_s1 + $0x440] ss:$16 sps:$4 sm:$0xff]  }
  0x47   :  { %1724 = vmatpush1.bf16.msra.mxu0 %v2622_v10  ;;  %1936 = vmatpush1.bf16.msra.mxu1 %v2625_v11  ;;  %v2709_v10 = vld [vmem:[%s3791_s1 + $0x3e8] ss:$16 sps:$4 sm:$0xff]   ;;  %v2714_v11 = vld [vmem:[%s3791_s1 + $0x404] ss:$16 sps:$4 sm:$0xff]  }
  0x48   :  { %1725 = vmatprep.subr.bf16.mxu0 %v2630_v12  ;;  %1937 = vmatprep.subr.bf16.mxu1 %v2633_v13  ;;  %v2717_v12 = vld [vmem:[%s3791_s1 + $0x40c] ss:$16 sps:$4 sm:$0xff]   ;;  %v2712_v13 = vld [vmem:[%s3791_s1 + $0x400] ss:$16 sps:$4 sm:$0xff]  }
  0x4a   :  { %1711 = vmatmul.mubr.bf16.gmra.mrb[4].mxu0 %v2176_v31  ;;  %1923 = vmatmul.mubr.bf16.gmra.mrb[4].mxu1 %v2176_v31  ;;  %v2735_v31 = vld [vmem:[%s3791_s1 + $0x46c] ss:$16 sps:$4 sm:$0xff]  }
  0x4b   :  { %1726 = vmatpush1.bf16.msra.mxu0 %v2628_v14  ;;  %1938 = vmatpush1.bf16.msra.mxu1 %v2631_v15  ;;  %v2715_v14 = vld [vmem:[%s3791_s1 + $0x408] ss:$16 sps:$4 sm:$0xff]   ;;  %v2170_v15 = vcombine.low %v3209_v34, %v3214_v35  ;;  %v2738_v35 = vld [vmem:[%s3791_s1 + $0x484] ss:$16 sps:$4 sm:$0xff]  }
  0x4c   :  { %1727 = vmatprep.subr.bf16.mxu0 %v2636_v16  ;;  %1939 = vmatprep.subr.bf16.mxu1 %v2639_v17  ;;  %v23_v16 = vld [vmem:[%s3792_s0 + $0x48] sm:$0xff] }
  0x4d   :  { %1753 = vmatprep.mubr.bf16.mxu0 %v2171_v38  ;;  %1965 = vmatprep.mubr.bf16.mxu1 %v2171_v38  ;;  %v27_v17 = vld [vmem:[%s3792_s0 + $0x68] sm:$0xff] }
  0x4e   :  { %v2178_v26 = vcombine.low %v23_v16, %v27_v17  ;;  %v2733_v34 = vld [vmem:[%s3791_s1 + $0x468] ss:$16 sps:$4 sm:$0xff]  }
  0x4f   :  { %1728 = vmatpush1.bf16.msra.mxu0 %v2634_v18  ;;  %1940 = vmatpush1.bf16.msra.mxu1 %v2637_v19  ;;  %v2720_v18 = vld [vmem:[%s3791_s1 + $0x424] ss:$16 sps:$4 sm:$0xff]   ;;  %v2723_v19 = vld [vmem:[%s3791_s1 + $0x42c] ss:$16 sps:$4 sm:$0xff]   ;;  %v2739_v38 = vld [vmem:[%s3791_s1 + $0x488] ss:$16 sps:$4 sm:$0xff]  }
  0x50   :  { %1729 = vmatprep.subr.bf16.mxu0 %v2642_v20  ;;  %1941 = vmatprep.subr.bf16.mxu1 %v2645_v21  ;;  %v2179_v20 = vcombine.high %v23_v16, %v27_v17  ;;  %v2718_v21 = vld [vmem:[%s3791_s1 + $0x420] ss:$16 sps:$4 sm:$0xff]   ;;  %v2807_v16 = vld [vmem:[%s3791_s1 + $0x5ec] ss:$16 sps:$4 sm:$0xff]  }
  0x51   :  { %v2802_v17 = vld [vmem:[%s3791_s1 + $0x5e0] ss:$16 sps:$4 sm:$0xff]  }
  0x53   :  { %1730 = vmatpush1.bf16.msra.mxu0 %v2640_v22  ;;  %1942 = vmatpush1.bf16.msra.mxu1 %v2643_v23  ;;  %v2721_v22 = vld [vmem:[%s3791_s1 + $0x428] ss:$16 sps:$4 sm:$0xff]   ;;  %v2726_v23 = vld [vmem:[%s3791_s1 + $0x444] ss:$16 sps:$4 sm:$0xff]  }
  0x54   :  { %1731 = vmatprep.subr.bf16.mxu0 %v2648_v24  ;;  %1943 = vmatprep.subr.bf16.mxu1 %v2651_v25  ;;  %v2729_v24 = vld [vmem:[%s3791_s1 + $0x44c] ss:$16 sps:$4 sm:$0xff]   ;;  %v3373_v25 = vld [vmem:[%s3792_s0 + $0x10] sm:$0xff] }
  0x57   :  { %1732 = vmatpush1.bf16.msra.mxu0 %v2646_v29  ;;  %1944 = vmatpush1.bf16.msra.mxu1 %v2649_v30  ;;  %v2727_v29 = vld [vmem:[%s3791_s1 + $0x448] ss:$16 sps:$4 sm:$0xff]   ;;  %v2732_v30 = vld [vmem:[%s3791_s1 + $0x464] ss:$16 sps:$4 sm:$0xff]  }
  0x58   :  { %1733 = vmatprep.subr.bf16.mxu0 %v2654_v32  ;;  %1945 = vmatprep.subr.bf16.mxu1 %v2657_v33  ;;  %v2173_v32 = vcombine.high %v3373_v25, %v3378_v27  ;;  %v2730_v33 = vld [vmem:[%s3791_s1 + $0x460] ss:$16 sps:$4 sm:$0xff]  }
  0x5b   :  { %1734 = vmatpush1.bf16.msra.mxu0 %v2652_v36  ;;  %1946 = vmatpush1.bf16.msra.mxu1 %v2655_v37  ;;  %v2741_v36 = vld [vmem:[%s3791_s1 + $0x48c] ss:$16 sps:$4 sm:$0xff]   ;;  %v2736_v37 = vld [vmem:[%s3791_s1 + $0x480] ss:$16 sps:$4 sm:$0xff]  }
  0x5c   :  { %1735 = vmatprep.subr.bf16.mxu0 %v2660_v39  ;;  %1947 = vmatprep.subr.bf16.mxu1 %v2663_v40  ;;  %v2744_v39 = vld [vmem:[%s3791_s1 + $0x4a4] ss:$16 sps:$4 sm:$0xff]   ;;  %v2747_v40 = vld [vmem:[%s3791_s1 + $0x4ac] ss:$16 sps:$4 sm:$0xff]  }
  0x5f   :  { %1736 = vmatpush1.bf16.msra.mxu0 %v2658_v41  ;;  %1948 = vmatpush1.bf16.msra.mxu1 %v2661_v42  ;;  %v2742_v41 = vld [vmem:[%s3791_s1 + $0x4a0] ss:$16 sps:$4 sm:$0xff]   ;;  %v2745_v42 = vld [vmem:[%s3791_s1 + $0x4a8] ss:$16 sps:$4 sm:$0xff]  }
  0x60   :  { %1737 = vmatprep.subr.bf16.mxu0 %v2666_v43  ;;  %1949 = vmatprep.subr.bf16.mxu1 %v2669_v44  ;;  %v2750_v43 = vld [vmem:[%s3791_s1 + $0x4c4] ss:$16 sps:$4 sm:$0xff]   ;;  %v2753_v44 = vld [vmem:[%s3791_s1 + $0x4cc] ss:$16 sps:$4 sm:$0xff]  }
  0x63   :  { %1738 = vmatpush1.bf16.msra.mxu0 %v2664_v45  ;;  %1950 = vmatpush1.bf16.msra.mxu1 %v2667_v46  ;;  %v2748_v45 = vld [vmem:[%s3791_s1 + $0x4c0] ss:$16 sps:$4 sm:$0xff]   ;;  %v2751_v46 = vld [vmem:[%s3791_s1 + $0x4c8] ss:$16 sps:$4 sm:$0xff]  }
  0x64   :  { %1739 = vmatprep.subr.bf16.mxu0 %v2672_v47  ;;  %1951 = vmatprep.subr.bf16.mxu1 %v2675_v48  ;;  %v2756_v47 = vld [vmem:[%s3791_s1 + $0x4e4] ss:$16 sps:$4 sm:$0xff]   ;;  %v2759_v48 = vld [vmem:[%s3791_s1 + $0x4ec] ss:$16 sps:$4 sm:$0xff]  }
  0x67   :  { %1740 = vmatpush1.bf16.msra.mxu0 %v2670_v49  ;;  %1952 = vmatpush1.bf16.msra.mxu1 %v2673_v50  ;;  %v2754_v49 = vld [vmem:[%s3791_s1 + $0x4e0] ss:$16 sps:$4 sm:$0xff]   ;;  %v2757_v50 = vld [vmem:[%s3791_s1 + $0x4e8] ss:$16 sps:$4 sm:$0xff]  }
  0x68   :  { %1741 = vmatprep.subr.bf16.mxu0 %v2678_v51  ;;  %1953 = vmatprep.subr.bf16.mxu1 %v2681_v52  ;;  %v2762_v51 = vld [vmem:[%s3791_s1 + $0x504] ss:$16 sps:$4 sm:$0xff]   ;;  %v2765_v52 = vld [vmem:[%s3791_s1 + $0x50c] ss:$16 sps:$4 sm:$0xff]  }
  0x6b   :  { %1742 = vmatpush1.bf16.msra.mxu0 %v2676_v53  ;;  %1954 = vmatpush1.bf16.msra.mxu1 %v2679_v54  ;;  %v2760_v53 = vld [vmem:[%s3791_s1 + $0x500] ss:$16 sps:$4 sm:$0xff]   ;;  %v2763_v54 = vld [vmem:[%s3791_s1 + $0x508] ss:$16 sps:$4 sm:$0xff]  }
  0x6c   :  { %1743 = vmatprep.subr.bf16.mxu0 %v2684_v55  ;;  %1955 = vmatprep.subr.bf16.mxu1 %v2687_v56  ;;  %v2768_v55 = vld [vmem:[%s3791_s1 + $0x524] ss:$16 sps:$4 sm:$0xff]   ;;  %v2771_v56 = vld [vmem:[%s3791_s1 + $0x52c] ss:$16 sps:$4 sm:$0xff]  }
  0x6f   :  { %1744 = vmatpush1.bf16.msra.mxu0 %v2682_v57  ;;  %1956 = vmatpush1.bf16.msra.mxu1 %v2685_v58  ;;  %v2766_v57 = vld [vmem:[%s3791_s1 + $0x520] ss:$16 sps:$4 sm:$0xff]   ;;  %v2769_v58 = vld [vmem:[%s3791_s1 + $0x528] ss:$16 sps:$4 sm:$0xff]  }
  0x70   :  { %1745 = vmatprep.subr.bf16.mxu0 %v2690_v59  ;;  %1957 = vmatprep.subr.bf16.mxu1 %v2693_v60  ;;  %v2774_v59 = vld [vmem:[%s3791_s1 + $0x544] ss:$16 sps:$4 sm:$0xff]   ;;  %v2777_v60 = vld [vmem:[%s3791_s1 + $0x54c] ss:$16 sps:$4 sm:$0xff]  }
  0x73   :  { %1746 = vmatpush1.bf16.msra.mxu0 %v2688_v61  ;;  %1958 = vmatpush1.bf16.msra.mxu1 %v2691_v62  ;;  %v2772_v61 = vld [vmem:[%s3791_s1 + $0x540] ss:$16 sps:$4 sm:$0xff]   ;;  %v2775_v62 = vld [vmem:[%s3791_s1 + $0x548] ss:$16 sps:$4 sm:$0xff]  }
  0x74   :  { %1747 = vmatprep.subr.bf16.mxu0 %v2696_v63  ;;  %1959 = vmatprep.subr.bf16.mxu1 %v2699_v0  ;;  %v2780_v63 = vld [vmem:[%s3791_s1 + $0x564] ss:$16 sps:$4 sm:$0xff]   ;;  %v2783_v0 = vld [vmem:[%s3791_s1 + $0x56c] ss:$16 sps:$4 sm:$0xff]  }
  0x77   :  { %1748 = vmatpush1.bf16.msra.mxu0 %v2694_v1  ;;  %1960 = vmatpush1.bf16.msra.mxu1 %v2697_v2  ;;  %v2778_v1 = vld [vmem:[%s3791_s1 + $0x560] ss:$16 sps:$4 sm:$0xff]   ;;  %v2781_v2 = vld [vmem:[%s3791_s1 + $0x568] ss:$16 sps:$4 sm:$0xff]  }
  0x78   :  { %1749 = vmatprep.subr.bf16.mxu0 %v2702_v3  ;;  %1961 = vmatprep.subr.bf16.mxu1 %v2705_v4  ;;  %v2786_v3 = vld [vmem:[%s3791_s1 + $0x584] ss:$16 sps:$4 sm:$0xff]   ;;  %v2789_v4 = vld [vmem:[%s3791_s1 + $0x58c] ss:$16 sps:$4 sm:$0xff]  }
  0x7b   :  { %1750 = vmatpush1.bf16.msra.mxu0 %v2700_v5  ;;  %1962 = vmatpush1.bf16.msra.mxu1 %v2703_v6  ;;  %v2784_v5 = vld [vmem:[%s3791_s1 + $0x580] ss:$16 sps:$4 sm:$0xff]   ;;  %v2787_v6 = vld [vmem:[%s3791_s1 + $0x588] ss:$16 sps:$4 sm:$0xff]  }
  0x7c   :  { %1751 = vmatprep.subr.bf16.mxu0 %v2708_v7  ;;  %1963 = vmatprep.subr.bf16.mxu1 %v2711_v8  ;;  %v2792_v7 = vld [vmem:[%s3791_s1 + $0x5a4] ss:$16 sps:$4 sm:$0xff]   ;;  %v2795_v8 = vld [vmem:[%s3791_s1 + $0x5ac] ss:$16 sps:$4 sm:$0xff]  }
  0x7f   :  { %1752 = vmatpush1.bf16.msra.mxu0 %v2706_v9  ;;  %1964 = vmatpush1.bf16.msra.mxu1 %v2709_v10  ;;  %v2790_v9 = vld [vmem:[%s3791_s1 + $0x5a0] ss:$16 sps:$4 sm:$0xff]   ;;  %v2793_v10 = vld [vmem:[%s3791_s1 + $0x5a8] ss:$16 sps:$4 sm:$0xff]  }
  0x80   :  { %1774 = vmatprep.subr.bf16.mxu0 %v2714_v11  ;;  %1986 = vmatprep.subr.bf16.mxu1 %v2717_v12  ;;  %v2798_v11 = vld [vmem:[%s3791_s1 + $0x5c4] ss:$16 sps:$4 sm:$0xff]   ;;  %v2801_v12 = vld [vmem:[%s3791_s1 + $0x5cc] ss:$16 sps:$4 sm:$0xff]  }
  0x82   :  { %1754 = vmatmul.mubr.bf16.vlgmr.msra.gmra.mrb[0].mxu0 %v2170_v15  ;;  %1966 = vmatmul.mubr.bf16.vlgmr.msra.gmra.mrb[0].mxu1 %v2170_v15  ;;  %v2804_v15 = vld [vmem:[%s3791_s1 + $0x5e4] ss:$16 sps:$4 sm:$0xff]  }
  0x83   :  { %1775 = vmatpush1.bf16.msra.mxu0 %v2712_v13  ;;  %1987 = vmatpush1.bf16.msra.mxu1 %v2715_v14  ;;  %v2796_v13 = vld [vmem:[%s3791_s1 + $0x5c0] ss:$16 sps:$4 sm:$0xff]   ;;  %v2799_v14 = vld [vmem:[%s3791_s1 + $0x5c8] ss:$16 sps:$4 sm:$0xff]  }
  0x84   :  { %1776 = vmatprep.subr.bf16.mxu0 %v2720_v18  ;;  %1988 = vmatprep.subr.bf16.mxu1 %v2723_v19  ;;  %v2805_v18 = vld [vmem:[%s3791_s1 + $0x5e8] ss:$16 sps:$4 sm:$0xff]   ;;  %v2810_v19 = vld [vmem:[%s3791_s1 + $0x604] ss:$16 sps:$4 sm:$0xff]  }
  0x85   :  { %1763 = vmatprep.mubr.bf16.mxu0 %v2179_v20  ;;  %1975 = vmatprep.mubr.bf16.mxu1 %v2179_v20  ;;  %v2813_v20 = vld [vmem:[%s3791_s1 + $0x60c] ss:$16 sps:$4 sm:$0xff]  }
  0x87   :  { %1777 = vmatpush1.bf16.msra.mxu0 %v2718_v21  ;;  %1989 = vmatpush1.bf16.msra.mxu1 %v2721_v22  ;;  %v2172_v21 = vcombine.low %v3373_v25, %v3378_v27  ;;  %v24_v22 = vld [vmem:[%s3792_s0 + $0x50] sm:$0xff]  ;;  %v2819_v27 = vld [vmem:[%s3791_s1 + $0x62c] ss:$16 sps:$4 sm:$0xff]  }
  0x88   :  { %1778 = vmatprep.subr.bf16.mxu0 %v2726_v23  ;;  %1990 = vmatprep.subr.bf16.mxu1 %v2729_v24  ;;  %v28_v23 = vld [vmem:[%s3792_s0 + $0x70] sm:$0xff] }
  0x89   :  { %v2808_v24 = vld [vmem:[%s3791_s1 + $0x600] ss:$16 sps:$4 sm:$0xff]   ;;  %v2816_v25 = vld [vmem:[%s3791_s1 + $0x624] ss:$16 sps:$4 sm:$0xff]  }
  0x8a   :  { %1764 = vmatmul.mubr.bf16.gmra.mrb[4].mxu0 %v2178_v26  ;;  %1976 = vmatmul.mubr.bf16.gmra.mrb[4].mxu1 %v2178_v26  ;;  %v2811_v26 = vld [vmem:[%s3791_s1 + $0x608] ss:$16 sps:$4 sm:$0xff]  }
  0x8b   :  { %1779 = vmatpush1.bf16.msra.mxu0 %v2724_v28  ;;  %1991 = vmatpush1.bf16.msra.mxu1 %v2727_v29  ;;  %v2181_v28 = vcombine.high %v24_v22, %v28_v23  ;;  %v2814_v29 = vld [vmem:[%s3791_s1 + $0x620] ss:$16 sps:$4 sm:$0xff]  }
  0x8c   :  { %1780 = vmatprep.subr.bf16.mxu0 %v2732_v30  ;;  %1992 = vmatprep.subr.bf16.mxu1 %v2735_v31  ;;  %v2817_v30 = vld [vmem:[%s3791_s1 + $0x628] ss:$16 sps:$4 sm:$0xff]   ;;  %v2822_v31 = vld [vmem:[%s3791_s1 + $0x644] ss:$16 sps:$4 sm:$0xff]  }
  0x8d   :  { %1806 = vmatprep.mubr.bf16.mxu0 %v2173_v32  ;;  %2018 = vmatprep.mubr.bf16.mxu1 %v2173_v32  ;;  %v2825_v32 = vld [vmem:[%s3791_s1 + $0x64c] ss:$16 sps:$4 sm:$0xff]  }
  0x8f   :  { %1781 = vmatpush1.bf16.msra.mxu0 %v2730_v33  ;;  %1993 = vmatpush1.bf16.msra.mxu1 %v2733_v34  ;;  %v2180_v33 = vcombine.low %v24_v22, %v28_v23  ;;  %v3585_v34 = vld [vmem:[%s3792_s0 + $0x18] sm:$0xff]  ;;  %v2900_v23 = vld [vmem:[%s3791_s1 + $0x7e4] ss:$16 sps:$4 sm:$0xff]  }
  0x90   :  { %1782 = vmatprep.subr.bf16.mxu0 %v2738_v35  ;;  %1994 = vmatprep.subr.bf16.mxu1 %v2741_v36  ;;  %v3590_v35 = vld [vmem:[%s3792_s0 + $0x38] sm:$0xff]  ;;  %v2820_v36 = vld [vmem:[%s3791_s1 + $0x640] ss:$16 sps:$4 sm:$0xff]  }
  0x91   :  { %v2895_v22 = vld [vmem:[%s3791_s1 + $0x7c8] ss:$16 sps:$4 sm:$0xff]  }
  0x93   :  { %1783 = vmatpush1.bf16.msra.mxu0 %v2736_v37  ;;  %1995 = vmatpush1.bf16.msra.mxu1 %v2739_v38  ;;  %v2823_v37 = vld [vmem:[%s3791_s1 + $0x648] ss:$16 sps:$4 sm:$0xff]   ;;  %v2828_v38 = vld [vmem:[%s3791_s1 + $0x664] ss:$16 sps:$4 sm:$0xff]  }
  0x94   :  { %1784 = vmatprep.subr.bf16.mxu0 %v2744_v39  ;;  %1996 = vmatprep.subr.bf16.mxu1 %v2747_v40  ;;  %v2831_v39 = vld [vmem:[%s3791_s1 + $0x66c] ss:$16 sps:$4 sm:$0xff]   ;;  %v2175_v40 = vcombine.high %v3585_v34, %v3590_v35 }
  0x97   :  { %1785 = vmatpush1.bf16.msra.mxu0 %v2742_v41  ;;  %1997 = vmatpush1.bf16.msra.mxu1 %v2745_v42  ;;  %v2826_v41 = vld [vmem:[%s3791_s1 + $0x660] ss:$16 sps:$4 sm:$0xff]   ;;  %v2829_v42 = vld [vmem:[%s3791_s1 + $0x668] ss:$16 sps:$4 sm:$0xff]  }
  0x98   :  { %1786 = vmatprep.subr.bf16.mxu0 %v2750_v43  ;;  %1998 = vmatprep.subr.bf16.mxu1 %v2753_v44  ;;  %v2834_v43 = vld [vmem:[%s3791_s1 + $0x684] ss:$16 sps:$4 sm:$0xff]   ;;  %v2837_v44 = vld [vmem:[%s3791_s1 + $0x68c] ss:$16 sps:$4 sm:$0xff]  }
  0x9b   :  { %1787 = vmatpush1.bf16.msra.mxu0 %v2748_v45  ;;  %1999 = vmatpush1.bf16.msra.mxu1 %v2751_v46  ;;  %v2832_v45 = vld [vmem:[%s3791_s1 + $0x680] ss:$16 sps:$4 sm:$0xff]   ;;  %v2835_v46 = vld [vmem:[%s3791_s1 + $0x688] ss:$16 sps:$4 sm:$0xff]  }
  0x9c   :  { %1788 = vmatprep.subr.bf16.mxu0 %v2756_v47  ;;  %2000 = vmatprep.subr.bf16.mxu1 %v2759_v48  ;;  %v2840_v47 = vld [vmem:[%s3791_s1 + $0x6a4] ss:$16 sps:$4 sm:$0xff]   ;;  %v2843_v48 = vld [vmem:[%s3791_s1 + $0x6ac] ss:$16 sps:$4 sm:$0xff]  }
  0x9f   :  { %1789 = vmatpush1.bf16.msra.mxu0 %v2754_v49  ;;  %2001 = vmatpush1.bf16.msra.mxu1 %v2757_v50  ;;  %v2838_v49 = vld [vmem:[%s3791_s1 + $0x6a0] ss:$16 sps:$4 sm:$0xff]   ;;  %v2841_v50 = vld [vmem:[%s3791_s1 + $0x6a8] ss:$16 sps:$4 sm:$0xff]  }
  0xa0   :  { %1790 = vmatprep.subr.bf16.mxu0 %v2762_v51  ;;  %2002 = vmatprep.subr.bf16.mxu1 %v2765_v52  ;;  %v2846_v51 = vld [vmem:[%s3791_s1 + $0x6c4] ss:$16 sps:$4 sm:$0xff]   ;;  %v2849_v52 = vld [vmem:[%s3791_s1 + $0x6cc] ss:$16 sps:$4 sm:$0xff]  }
  0xa3   :  { %1791 = vmatpush1.bf16.msra.mxu0 %v2760_v53  ;;  %2003 = vmatpush1.bf16.msra.mxu1 %v2763_v54  ;;  %v2844_v53 = vld [vmem:[%s3791_s1 + $0x6c0] ss:$16 sps:$4 sm:$0xff]   ;;  %v2847_v54 = vld [vmem:[%s3791_s1 + $0x6c8] ss:$16 sps:$4 sm:$0xff]  }
  0xa4   :  { %1792 = vmatprep.subr.bf16.mxu0 %v2768_v55  ;;  %2004 = vmatprep.subr.bf16.mxu1 %v2771_v56  ;;  %v2852_v55 = vld [vmem:[%s3791_s1 + $0x6e4] ss:$16 sps:$4 sm:$0xff]   ;;  %v2855_v56 = vld [vmem:[%s3791_s1 + $0x6ec] ss:$16 sps:$4 sm:$0xff]  }
  0xa7   :  { %1793 = vmatpush1.bf16.msra.mxu0 %v2766_v57  ;;  %2005 = vmatpush1.bf16.msra.mxu1 %v2769_v58  ;;  %v2850_v57 = vld [vmem:[%s3791_s1 + $0x6e0] ss:$16 sps:$4 sm:$0xff]   ;;  %v2853_v58 = vld [vmem:[%s3791_s1 + $0x6e8] ss:$16 sps:$4 sm:$0xff]  }
  0xa8   :  { %1794 = vmatprep.subr.bf16.mxu0 %v2774_v59  ;;  %2006 = vmatprep.subr.bf16.mxu1 %v2777_v60  ;;  %v2858_v59 = vld [vmem:[%s3791_s1 + $0x704] ss:$16 sps:$4 sm:$0xff]   ;;  %v2861_v60 = vld [vmem:[%s3791_s1 + $0x70c] ss:$16 sps:$4 sm:$0xff]  }
  0xab   :  { %1795 = vmatpush1.bf16.msra.mxu0 %v2772_v61  ;;  %2007 = vmatpush1.bf16.msra.mxu1 %v2775_v62  ;;  %v2856_v61 = vld [vmem:[%s3791_s1 + $0x700] ss:$16 sps:$4 sm:$0xff]   ;;  %v2859_v62 = vld [vmem:[%s3791_s1 + $0x708] ss:$16 sps:$4 sm:$0xff]  }
  0xac   :  { %1796 = vmatprep.subr.bf16.mxu0 %v2780_v63  ;;  %2008 = vmatprep.subr.bf16.mxu1 %v2783_v0  ;;  %v2864_v63 = vld [vmem:[%s3791_s1 + $0x724] ss:$16 sps:$4 sm:$0xff]   ;;  %v2867_v0 = vld [vmem:[%s3791_s1 + $0x72c] ss:$16 sps:$4 sm:$0xff]  }
  0xaf   :  { %1797 = vmatpush1.bf16.msra.mxu0 %v2778_v1  ;;  %2009 = vmatpush1.bf16.msra.mxu1 %v2781_v2  ;;  %v2862_v1 = vld [vmem:[%s3791_s1 + $0x720] ss:$16 sps:$4 sm:$0xff]   ;;  %v2865_v2 = vld [vmem:[%s3791_s1 + $0x728] ss:$16 sps:$4 sm:$0xff]  }
  0xb0   :  { %1798 = vmatprep.subr.bf16.mxu0 %v2786_v3  ;;  %2010 = vmatprep.subr.bf16.mxu1 %v2789_v4  ;;  %v2870_v3 = vld [vmem:[%s3791_s1 + $0x744] ss:$16 sps:$4 sm:$0xff]   ;;  %v2873_v4 = vld [vmem:[%s3791_s1 + $0x74c] ss:$16 sps:$4 sm:$0xff]  }
  0xb3   :  { %1799 = vmatpush1.bf16.msra.mxu0 %v2784_v5  ;;  %2011 = vmatpush1.bf16.msra.mxu1 %v2787_v6  ;;  %v2868_v5 = vld [vmem:[%s3791_s1 + $0x740] ss:$16 sps:$4 sm:$0xff]   ;;  %v2871_v6 = vld [vmem:[%s3791_s1 + $0x748] ss:$16 sps:$4 sm:$0xff]  }
  0xb4   :  { %1800 = vmatprep.subr.bf16.mxu0 %v2792_v7  ;;  %2012 = vmatprep.subr.bf16.mxu1 %v2795_v8  ;;  %v2876_v7 = vld [vmem:[%s3791_s1 + $0x764] ss:$16 sps:$4 sm:$0xff]   ;;  %v2879_v8 = vld [vmem:[%s3791_s1 + $0x76c] ss:$16 sps:$4 sm:$0xff]  }
  0xb7   :  { %1801 = vmatpush1.bf16.msra.mxu0 %v2790_v9  ;;  %2013 = vmatpush1.bf16.msra.mxu1 %v2793_v10  ;;  %v2874_v9 = vld [vmem:[%s3791_s1 + $0x760] ss:$16 sps:$4 sm:$0xff]   ;;  %v2877_v10 = vld [vmem:[%s3791_s1 + $0x768] ss:$16 sps:$4 sm:$0xff]  }
  0xb8   :  { %1802 = vmatprep.subr.bf16.mxu0 %v2798_v11  ;;  %2014 = vmatprep.subr.bf16.mxu1 %v2801_v12  ;;  %v2882_v11 = vld [vmem:[%s3791_s1 + $0x784] ss:$16 sps:$4 sm:$0xff]   ;;  %v2885_v12 = vld [vmem:[%s3791_s1 + $0x78c] ss:$16 sps:$4 sm:$0xff]  }
  0xbb   :  { %1803 = vmatpush1.bf16.msra.mxu0 %v2796_v13  ;;  %2015 = vmatpush1.bf16.msra.mxu1 %v2799_v14  ;;  %v2880_v13 = vld [vmem:[%s3791_s1 + $0x780] ss:$16 sps:$4 sm:$0xff]   ;;  %v2883_v14 = vld [vmem:[%s3791_s1 + $0x788] ss:$16 sps:$4 sm:$0xff]  }
  0xbc   :  { %1804 = vmatprep.subr.bf16.mxu0 %v2804_v15  ;;  %2016 = vmatprep.subr.bf16.mxu1 %v2807_v16  ;;  %v2888_v15 = vld [vmem:[%s3791_s1 + $0x7a4] ss:$16 sps:$4 sm:$0xff]   ;;  %v2891_v16 = vld [vmem:[%s3791_s1 + $0x7ac] ss:$16 sps:$4 sm:$0xff]  }
  0xbf   :  { %1805 = vmatpush1.bf16.msra.mxu0 %v2802_v17  ;;  %2017 = vmatpush1.bf16.msra.mxu1 %v2805_v18  ;;  %v2886_v17 = vld [vmem:[%s3791_s1 + $0x7a0] ss:$16 sps:$4 sm:$0xff]   ;;  %v2889_v18 = vld [vmem:[%s3791_s1 + $0x7a8] ss:$16 sps:$4 sm:$0xff]  }
  0xc0   :  { %1827 = vmatprep.subr.bf16.mxu0 %v2810_v19  ;;  %2039 = vmatprep.subr.bf16.mxu1 %v2813_v20  ;;  %v2894_v19 = vld [vmem:[%s3791_s1 + $0x7c4] ss:$16 sps:$4 sm:$0xff]   ;;  %v2897_v20 = vld [vmem:[%s3791_s1 + $0x7cc] ss:$16 sps:$4 sm:$0xff]  }
  0xc2   :  { %1807 = vmatmul.mubr.bf16.vlgmr.msra.gmra.mrb[0].mxu0 %v2172_v21  ;;  %2019 = vmatmul.mubr.bf16.vlgmr.msra.gmra.mrb[0].mxu1 %v2172_v21  ;;  %v2892_v21 = vld [vmem:[%s3791_s1 + $0x7c0] ss:$16 sps:$4 sm:$0xff]  }
  0xc3   :  { %1828 = vmatpush1.bf16.msra.mxu0 %v2808_v24  ;;  %2040 = vmatpush1.bf16.msra.mxu1 %v2811_v26  ;;  %v2903_v24 = vld [vmem:[%s3791_s1 + $0x7ec] ss:$16 sps:$4 sm:$0xff]   ;;  %v2898_v26 = vld [vmem:[%s3791_s1 + $0x7e0] ss:$16 sps:$4 sm:$0xff]  }
  0xc4   :  { %1829 = vmatprep.subr.bf16.mxu0 %v2816_v25  ;;  %2041 = vmatprep.subr.bf16.mxu1 %v2819_v27  ;;  %v2901_v25 = vld [vmem:[%s3791_s1 + $0x7e8] ss:$16 sps:$4 sm:$0xff]  }
  0xc5   :  { %1816 = vmatprep.mubr.bf16.mxu0 %v2181_v28  ;;  %2028 = vmatprep.mubr.bf16.mxu1 %v2181_v28  ;;  %v25_v27 = vld [vmem:[%s3792_s0 + $0x58] sm:$0xff] }
  0xc6   :  { %v29_v28 = vld [vmem:[%s3792_s0 + $0x78] sm:$0xff] }
  0xc7   :  { %1830 = vmatpush1.bf16.msra.mxu0 %v2814_v29  ;;  %2042 = vmatpush1.bf16.msra.mxu1 %v2817_v30  ;;  %v2174_v29 = vcombine.low %v3585_v34, %v3590_v35  ;;  %v2183_v30 = vcombine.high %v25_v27, %v29_v28 }
  0xc8   :  { %1831 = vmatprep.subr.bf16.mxu0 %v2822_v31  ;;  %2043 = vmatprep.subr.bf16.mxu1 %v2825_v32  ;;  %v2182_v31 = vcombine.low %v25_v27, %v29_v28  ;;  %v288_v32 = vlaneseq }
  0xca   :  { %1817 = vmatmul.mubr.bf16.gmra.mrb[4].mxu0 %v2180_v33  ;;  %2029 = vmatmul.mubr.bf16.gmra.mrb[4].mxu1 %v2180_v33  ;;  %v289_v33 = vshrl.u32 %v288_v32, 7 }
  0xcb   :  { %1832 = vmatpush1.bf16.msra.mxu0 %v2820_v36  ;;  %2044 = vmatpush1.bf16.msra.mxu1 %v2823_v37 }
  0xcc   :  { %1833 = vmatprep.subr.bf16.mxu0 %v2828_v38  ;;  %2045 = vmatprep.subr.bf16.mxu1 %v2831_v39  ;;  %v290_v36 = vsub.s32 0, %v289_v33  ;;  %v298_v37 = vsub.s32 2, %v289_v33  ;;  %v286_v38 = vld [vmem:[%s3793_s2] sm:$0xf]  ;;  %v294_v39 = vsub.s32 1, %v289_v33  ;;  %v302_v34 = vsub.s32 3, %v289_v33 }
  0xcd   :  { %1859 = vmatprep.mubr.bf16.mxu0 %v2175_v40  ;;  %2071 = vmatprep.mubr.bf16.mxu1 %v2175_v40 }
  0xce   :  { %v291_v35 = vrot.slane %v286_v38, %v290_v36  ;;  %v299_v40 = vrot.slane %v286_v38, %v298_v37 }
  0xcf   :  { %1834 = vmatpush1.bf16.msra.mxu0 %v2826_v41  ;;  %2046 = vmatpush1.bf16.msra.mxu1 %v2829_v42  ;;  %v295_v41 = vrot.slane %v286_v38, %v294_v39  ;;  %v303_v42 = vrot.slane %v286_v38, %v302_v34 }
  0xd0   :  { %1835 = vmatprep.subr.bf16.mxu0 %v2834_v43  ;;  %2047 = vmatprep.subr.bf16.mxu1 %v2837_v44 }
  0xd3   :  { %1836 = vmatpush1.bf16.msra.mxu0 %v2832_v45  ;;  %2048 = vmatpush1.bf16.msra.mxu1 %v2835_v46 }
  0xd4   :  { %1837 = vmatprep.subr.bf16.mxu0 %v2840_v47  ;;  %2049 = vmatprep.subr.bf16.mxu1 %v2843_v48 }
  0xd7   :  { %1838 = vmatpush1.bf16.msra.mxu0 %v2838_v49  ;;  %2050 = vmatpush1.bf16.msra.mxu1 %v2841_v50 }
  0xd8   :  { %1839 = vmatprep.subr.bf16.mxu0 %v2846_v51  ;;  %2051 = vmatprep.subr.bf16.mxu1 %v2849_v52 }
  0xdb   :  { %1840 = vmatpush1.bf16.msra.mxu0 %v2844_v53  ;;  %2052 = vmatpush1.bf16.msra.mxu1 %v2847_v54 }
  0xdc   :  { %1841 = vmatprep.subr.bf16.mxu0 %v2852_v55  ;;  %2053 = vmatprep.subr.bf16.mxu1 %v2855_v56 }
  0xdf   :  { %1842 = vmatpush1.bf16.msra.mxu0 %v2850_v57  ;;  %2054 = vmatpush1.bf16.msra.mxu1 %v2853_v58 }
  0xe0   :  { %1843 = vmatprep.subr.bf16.mxu0 %v2858_v59  ;;  %2055 = vmatprep.subr.bf16.mxu1 %v2861_v60 }
  0xe3   :  { %1844 = vmatpush1.bf16.msra.mxu0 %v2856_v61  ;;  %2056 = vmatpush1.bf16.msra.mxu1 %v2859_v62 }
  0xe4   :  { %1845 = vmatprep.subr.bf16.mxu0 %v2864_v63  ;;  %2057 = vmatprep.subr.bf16.mxu1 %v2867_v0 }
  0xe7   :  { %1846 = vmatpush1.bf16.msra.mxu0 %v2862_v1  ;;  %2058 = vmatpush1.bf16.msra.mxu1 %v2865_v2 }
  0xe8   :  { %1847 = vmatprep.subr.bf16.mxu0 %v2870_v3  ;;  %2059 = vmatprep.subr.bf16.mxu1 %v2873_v4 }
  0xeb   :  { %1848 = vmatpush1.bf16.msra.mxu0 %v2868_v5  ;;  %2060 = vmatpush1.bf16.msra.mxu1 %v2871_v6 }
  0xec   :  { %1849 = vmatprep.subr.bf16.mxu0 %v2876_v7  ;;  %2061 = vmatprep.subr.bf16.mxu1 %v2879_v8 }
  0xef   :  { %1850 = vmatpush1.bf16.msra.mxu0 %v2874_v9  ;;  %2062 = vmatpush1.bf16.msra.mxu1 %v2877_v10 }
  0xf0   :  { %1851 = vmatprep.subr.bf16.mxu0 %v2882_v11  ;;  %2063 = vmatprep.subr.bf16.mxu1 %v2885_v12 }
  0xf3   :  { %1852 = vmatpush1.bf16.msra.mxu0 %v2880_v13  ;;  %2064 = vmatpush1.bf16.msra.mxu1 %v2883_v14 }
  0xf4   :  { %1853 = vmatprep.subr.bf16.mxu0 %v2888_v15  ;;  %2065 = vmatprep.subr.bf16.mxu1 %v2891_v16 }
  0xf7   :  { %1854 = vmatpush1.bf16.msra.mxu0 %v2886_v17  ;;  %2066 = vmatpush1.bf16.msra.mxu1 %v2889_v18 }
  0xf8   :  { %1855 = vmatprep.subr.bf16.mxu0 %v2894_v19  ;;  %2067 = vmatprep.subr.bf16.mxu1 %v2897_v20 }
  0xfb   :  { %1856 = vmatpush1.bf16.msra.mxu0 %v2892_v21  ;;  %2068 = vmatpush1.bf16.msra.mxu1 %v2895_v22 }
  0xfc   :  { %1857 = vmatprep.subr.bf16.mxu0 %v2900_v23  ;;  %2069 = vmatprep.subr.bf16.mxu1 %v2903_v24 }
  0xff   :  { %1858 = vmatpush1.bf16.msra.mxu0 %v2898_v26  ;;  %2070 = vmatpush1.bf16.msra.mxu1 %v2901_v25 }
 0x102   :  { %1860 = vmatmul.mubr.bf16.vlgmr.msra.gmra.mrb[0].mxu0 %v2174_v29  ;;  %2072 = vmatmul.mubr.bf16.vlgmr.msra.gmra.mrb[0].mxu1 %v2174_v29 }
 0x103   :  { %1869 = vmatprep.mubr.bf16.mxu0 %v2183_v30  ;;  %2081 = vmatprep.mubr.bf16.mxu1 %v2183_v30 }
 0x10a   :  { %1870 = vmatmul.mubr.bf16.gmra.mrb[4].mxu0 %v2182_v31  ;;  %2082 = vmatmul.mubr.bf16.gmra.mrb[4].mxu1 %v2182_v31 }
 0x1d5   :  { %v1861_v43 = vpop.f32.mrb[0].mxu0  ;;  %v2073_v44 = vpop.f32.mrb[0].mxu1 }
 0x1d6   :  { %v2456_v45 = vadd.f32 %v1861_v43, %v291_v35  ;;  %v2464_v46 = vadd.f32 %v2073_v44, %v299_v40  ;;  %v1863_v47 = vpop.f32.mrb[1].mxu0  ;;  %v2075_v48 = vpop.f32.mrb[1].mxu1 }
 0x1d7   :  { %v2457_v49 = vadd.f32 %v1863_v47, %v295_v41  ;;  %v2465_v50 = vadd.f32 %v2075_v48, %v303_v42  ;;  %v1865_v51 = vpop.f32.mrb[2].mxu0  ;;  %v2077_v52 = vpop.f32.mrb[2].mxu1 }
 0x1d8   :  { %v2092_v53 = vmax.f32 %v2456_v45, 0.0  ;;  %v2094_v54 = vmax.f32 %v2464_v46, 0.0  ;;  %v2458_v55 = vadd.f32 %v1865_v51, %v291_v35  ;;  %v2466_v56 = vadd.f32 %v2077_v52, %v299_v40  ;;  %v1867_v57 = vpop.f32.mrb[3].mxu0  ;;  %v2079_v58 = vpop.f32.mrb[3].mxu1 }
 0x1d9   :  { %v2093_v59 = vmax.f32 %v2457_v49, 0.0  ;;  %v2095_v60 = vmax.f32 %v2465_v50, 0.0  ;;  %v2459_v61 = vadd.f32 %v1867_v57, %v295_v41  ;;  %v2467_v62 = vadd.f32 %v2079_v58, %v303_v42 }
 0x1da   :  { %v2096_v63 = vmax.f32 %v2458_v55, 0.0  ;;  %v2098_v0 = vmax.f32 %v2466_v56, 0.0 }
 0x1db   :  { %v2448_v1 = vpack.c.bf16 %v2093_v59, %v2092_v53  ;;  %v2449_v2 = vpack.c.bf16 %v2095_v60, %v2094_v54  ;;  %v2097_v3 = vmax.f32 %v2459_v61, 0.0  ;;  %v2099_v4 = vmax.f32 %v2467_v62, 0.0 }
 0x1dd   :  { %2156 = vst [vmem:[%s3794_s3] sm:$0xff] %v2448_v1  ;;  %2157 = vst [vmem:[%s3794_s3 + $0x8] sm:$0xff] %v2449_v2  ;;  %v2450_v5 = vpack.c.bf16 %v2097_v3, %v2096_v63  ;;  %v2451_v6 = vpack.c.bf16 %v2099_v4, %v2098_v0  ;;  %v1871_v7 = vpop.f32.mrb[4].mxu0  ;;  %v2083_v8 = vpop.f32.mrb[4].mxu1 }
 0x1de   :  { %v2460_v9 = vadd.f32 %v1871_v7, %v291_v35  ;;  %v2468_v10 = vadd.f32 %v2083_v8, %v299_v40  ;;  %v1873_v11 = vpop.f32.mrb[5].mxu0  ;;  %v2085_v12 = vpop.f32.mrb[5].mxu1 }
 0x1df   :  { %2158 = vst [vmem:[%s3794_s3 + $0x10] sm:$0xff] %v2450_v5  ;;  %2159 = vst [vmem:[%s3794_s3 + $0x18] sm:$0xff] %v2451_v6  ;;  %v2461_v13 = vadd.f32 %v1873_v11, %v295_v41  ;;  %v2469_v14 = vadd.f32 %v2085_v12, %v303_v42  ;;  %v1875_v15 = vpop.f32.mrb[6].mxu0  ;;  %v2087_v16 = vpop.f32.mrb[6].mxu1 }
 0x1e0   :  { %v2100_v17 = vmax.f32 %v2460_v9, 0.0  ;;  %v2102_v18 = vmax.f32 %v2468_v10, 0.0  ;;  %v2462_v19 = vadd.f32 %v1875_v15, %v291_v35  ;;  %v2470_v20 = vadd.f32 %v2087_v16, %v299_v40  ;;  %v1877_v21 = vpop.f32.mrb[7].mxu0  ;;  %v2089_v22 = vpop.f32.mrb[7].mxu1 }
 0x1e1   :  { %v2101_v23 = vmax.f32 %v2461_v13, 0.0  ;;  %v2103_v24 = vmax.f32 %v2469_v14, 0.0  ;;  %v2463_v26 = vadd.f32 %v1877_v21, %v295_v41  ;;  %v2471_v25 = vadd.f32 %v2089_v22, %v303_v42 }
 0x1e2   :  { %v2104_v27 = vmax.f32 %v2462_v19, 0.0  ;;  %v2106_v28 = vmax.f32 %v2470_v20, 0.0 }
 0x1e3   :  { %v2452_v29 = vpack.c.bf16 %v2101_v23, %v2100_v17  ;;  %v2453_v30 = vpack.c.bf16 %v2103_v24, %v2102_v18  ;;  %v2105_v31 = vmax.f32 %v2463_v26, 0.0  ;;  %v2107_v32 = vmax.f32 %v2471_v25, 0.0 }
 0x1e5   :  { %2160 = vst [vmem:[%s3794_s3 + $0x20] sm:$0xff] %v2452_v29  ;;  %2161 = vst [vmem:[%s3794_s3 + $0x28] sm:$0xff] %v2453_v30  ;;  %v2454_v33 = vpack.c.bf16 %v2105_v31, %v2104_v27  ;;  %v2455_v36 = vpack.c.bf16 %v2107_v32, %v2106_v28 }
 0x1e7   :  { %2162 = vst [vmem:[%s3794_s3 + $0x30] sm:$0xff] %v2454_v33  ;;  %2163 = vst [vmem:[%s3794_s3 + $0x38] sm:$0xff] %v2455_v36 }

// kernel: color_transform_d.9
= control target key start
LH: loop header
LB: loop body
LE: loop exit
PB: predicated region body
PF: predicated region fallthrough
CT: control target
= control target key end

     0   :  { %s6845_s1 = inlined_call_operand.vmem [shape: bf16[2048,512], index: 1, kind: input, shape index: {}]   ;;  %s6846_s0 = inlined_call_operand.vmem [shape: bf16[8,2048], index: 0, kind: input, shape index: {}]   ;;  %s6847_s2 = inlined_call_operand.vmem [shape: f32[1,512], index: 2, kind: input, shape index: {}]   ;;  %s6848_s3 = inlined_call_operand.vmem [shape: f32[8,512], index: 3, kind: output, shape index: {}]  }
   0x1   :  { %v4424_v0 = vld [vmem:[%s6845_s1 + $0x4] ss:$16 sps:$4 sm:$0xff]   ;;  %v4426_v1 = vld [vmem:[%s6845_s1 + $0xc] ss:$16 sps:$4 sm:$0xff]   ;;  %v4428_v2 = vld [vmem:[%s6845_s1] ss:$16 sps:$4 sm:$0xff]  }
   0x2   :  { %3172 = vmatprep.subr.bf16.mxu0 %v4424_v0  ;;  %v4429_v3 = vld [vmem:[%s6845_s1 + $0x8] ss:$16 sps:$4 sm:$0xff]   ;;  %3500 = vmatprep.subr.bf16.mxu1 %v4426_v1  ;;  %v4430_v4 = vld [vmem:[%s6845_s1 + $0x24] ss:$16 sps:$4 sm:$0xff]   ;;  %v4432_v5 = vld [vmem:[%s6845_s1 + $0x2c] ss:$16 sps:$4 sm:$0xff]  }
   0x3   :  { %3173 = vmatpush1.bf16.msra.mxu0 %v4428_v2  ;;  %3501 = vmatpush1.bf16.msra.mxu1 %v4429_v3  ;;  %v4434_v6 = vld [vmem:[%s6845_s1 + $0x20] ss:$16 sps:$4 sm:$0xff]   ;;  %v4435_v7 = vld [vmem:[%s6845_s1 + $0x28] ss:$16 sps:$4 sm:$0xff]   ;;  %v4436_v8 = vld [vmem:[%s6845_s1 + $0x44] ss:$16 sps:$4 sm:$0xff]  }
   0x4   :  { %3174 = vmatprep.subr.bf16.mxu0 %v4430_v4  ;;  %3502 = vmatprep.subr.bf16.mxu1 %v4432_v5  ;;  %v4438_v9 = vld [vmem:[%s6845_s1 + $0x4c] ss:$16 sps:$4 sm:$0xff]   ;;  %v4440_v10 = vld [vmem:[%s6845_s1 + $0x40] ss:$16 sps:$4 sm:$0xff]   ;;  %v4441_v11 = vld [vmem:[%s6845_s1 + $0x48] ss:$16 sps:$4 sm:$0xff]  }
   0x5   :  { %v4442_v12 = vld [vmem:[%s6845_s1 + $0x64] ss:$16 sps:$4 sm:$0xff]   ;;  %v4444_v13 = vld [vmem:[%s6845_s1 + $0x6c] ss:$16 sps:$4 sm:$0xff]   ;;  %v4446_v14 = vld [vmem:[%s6845_s1 + $0x60] ss:$16 sps:$4 sm:$0xff]  }
   0x6   :  { %v4447_v15 = vld [vmem:[%s6845_s1 + $0x68] ss:$16 sps:$4 sm:$0xff]   ;;  %v4448_v16 = vld [vmem:[%s6845_s1 + $0x84] ss:$16 sps:$4 sm:$0xff]   ;;  %v4450_v17 = vld [vmem:[%s6845_s1 + $0x8c] ss:$16 sps:$4 sm:$0xff]  }
   0x7   :  { %3175 = vmatpush1.bf16.msra.mxu0 %v4434_v6  ;;  %3503 = vmatpush1.bf16.msra.mxu1 %v4435_v7  ;;  %v4452_v18 = vld [vmem:[%s6845_s1 + $0x80] ss:$16 sps:$4 sm:$0xff]   ;;  %v4453_v19 = vld [vmem:[%s6845_s1 + $0x88] ss:$16 sps:$4 sm:$0xff]   ;;  %v4454_v20 = vld [vmem:[%s6845_s1 + $0xa4] ss:$16 sps:$4 sm:$0xff]  }
   0x8   :  { %3176 = vmatprep.subr.bf16.mxu0 %v4436_v8  ;;  %3504 = vmatprep.subr.bf16.mxu1 %v4438_v9  ;;  %v4456_v21 = vld [vmem:[%s6845_s1 + $0xac] ss:$16 sps:$4 sm:$0xff]   ;;  %v4458_v22 = vld [vmem:[%s6845_s1 + $0xa0] ss:$16 sps:$4 sm:$0xff]   ;;  %v4459_v23 = vld [vmem:[%s6845_s1 + $0xa8] ss:$16 sps:$4 sm:$0xff]  }
   0x9   :  { %v4460_v24 = vld [vmem:[%s6845_s1 + $0xc4] ss:$16 sps:$4 sm:$0xff]   ;;  %v4462_v25 = vld [vmem:[%s6845_s1 + $0xcc] ss:$16 sps:$4 sm:$0xff]   ;;  %v4464_v26 = vld [vmem:[%s6845_s1 + $0xc0] ss:$16 sps:$4 sm:$0xff]  }
   0xa   :  { %v4465_v27 = vld [vmem:[%s6845_s1 + $0xc8] ss:$16 sps:$4 sm:$0xff]   ;;  %v4466_v28 = vld [vmem:[%s6845_s1 + $0xe4] ss:$16 sps:$4 sm:$0xff]   ;;  %v4468_v29 = vld [vmem:[%s6845_s1 + $0xec] ss:$16 sps:$4 sm:$0xff]  }
   0xb   :  { %3177 = vmatpush1.bf16.msra.mxu0 %v4440_v10  ;;  %3505 = vmatpush1.bf16.msra.mxu1 %v4441_v11  ;;  %v4470_v30 = vld [vmem:[%s6845_s1 + $0xe0] ss:$16 sps:$4 sm:$0xff]   ;;  %v4471_v31 = vld [vmem:[%s6845_s1 + $0xe8] ss:$16 sps:$4 sm:$0xff]   ;;  %v4472_v32 = vld [vmem:[%s6845_s1 + $0x104] ss:$16 sps:$4 sm:$0xff]  }
   0xc   :  { %3178 = vmatprep.subr.bf16.mxu0 %v4442_v12  ;;  %3506 = vmatprep.subr.bf16.mxu1 %v4444_v13  ;;  %v4474_v33 = vld [vmem:[%s6845_s1 + $0x10c] ss:$16 sps:$4 sm:$0xff]   ;;  %v4476_v34 = vld [vmem:[%s6845_s1 + $0x100] ss:$16 sps:$4 sm:$0xff]   ;;  %v4477_v35 = vld [vmem:[%s6845_s1 + $0x108] ss:$16 sps:$4 sm:$0xff]  }
   0xd   :  { %v4478_v36 = vld [vmem:[%s6845_s1 + $0x124] ss:$16 sps:$4 sm:$0xff]   ;;  %v4480_v37 = vld [vmem:[%s6845_s1 + $0x12c] ss:$16 sps:$4 sm:$0xff]   ;;  %v4482_v38 = vld [vmem:[%s6845_s1 + $0x120] ss:$16 sps:$4 sm:$0xff]  }
   0xe   :  { %v4483_v39 = vld [vmem:[%s6845_s1 + $0x128] ss:$16 sps:$4 sm:$0xff]   ;;  %v4484_v40 = vld [vmem:[%s6845_s1 + $0x144] ss:$16 sps:$4 sm:$0xff]   ;;  %v4486_v41 = vld [vmem:[%s6845_s1 + $0x14c] ss:$16 sps:$4 sm:$0xff]  }
   0xf   :  { %3179 = vmatpush1.bf16.msra.mxu0 %v4446_v14  ;;  %3507 = vmatpush1.bf16.msra.mxu1 %v4447_v15  ;;  %v4488_v42 = vld [vmem:[%s6845_s1 + $0x140] ss:$16 sps:$4 sm:$0xff]   ;;  %v4489_v43 = vld [vmem:[%s6845_s1 + $0x148] ss:$16 sps:$4 sm:$0xff]   ;;  %v4490_v44 = vld [vmem:[%s6845_s1 + $0x164] ss:$16 sps:$4 sm:$0xff]  }
  0x10   :  { %3180 = vmatprep.subr.bf16.mxu0 %v4448_v16  ;;  %3508 = vmatprep.subr.bf16.mxu1 %v4450_v17  ;;  %v4492_v45 = vld [vmem:[%s6845_s1 + $0x16c] ss:$16 sps:$4 sm:$0xff]   ;;  %v14_v46 = vld [vmem:[%s6846_s0] sm:$0xff]  ;;  %v4495_v49 = vld [vmem:[%s6845_s1 + $0x168] ss:$16 sps:$4 sm:$0xff]  }
  0x11   :  { %v4494_v47 = vld [vmem:[%s6845_s1 + $0x160] ss:$16 sps:$4 sm:$0xff]   ;;  %v3837_v48 = vcombine.high %v14_v46, %v14_v46  ;;  %v4496_v50 = vld [vmem:[%s6845_s1 + $0x184] ss:$16 sps:$4 sm:$0xff]   ;;  %v4498_v51 = vld [vmem:[%s6845_s1 + $0x18c] ss:$16 sps:$4 sm:$0xff]   ;;  %v3836_v4 = vcombine.low %v14_v46, %v14_v46 }
  0x12   :  { %v4500_v52 = vld [vmem:[%s6845_s1 + $0x180] ss:$16 sps:$4 sm:$0xff]   ;;  %v4501_v53 = vld [vmem:[%s6845_s1 + $0x188] ss:$16 sps:$4 sm:$0xff]   ;;  %v4502_v54 = vld [vmem:[%s6845_s1 + $0x1a4] ss:$16 sps:$4 sm:$0xff]  }
  0x13   :  { %3181 = vmatpush1.bf16.msra.mxu0 %v4452_v18  ;;  %3509 = vmatpush1.bf16.msra.mxu1 %v4453_v19  ;;  %v4504_v55 = vld [vmem:[%s6845_s1 + $0x1ac] ss:$16 sps:$4 sm:$0xff]   ;;  %v4506_v56 = vld [vmem:[%s6845_s1 + $0x1a0] ss:$16 sps:$4 sm:$0xff]   ;;  %v4507_v57 = vld [vmem:[%s6845_s1 + $0x1a8] ss:$16 sps:$4 sm:$0xff]  }
  0x14   :  { %3182 = vmatprep.subr.bf16.mxu0 %v4454_v20  ;;  %3510 = vmatprep.subr.bf16.mxu1 %v4456_v21  ;;  %v4508_v58 = vld [vmem:[%s6845_s1 + $0x1c4] ss:$16 sps:$4 sm:$0xff]   ;;  %v4510_v59 = vld [vmem:[%s6845_s1 + $0x1cc] ss:$16 sps:$4 sm:$0xff]   ;;  %v4512_v60 = vld [vmem:[%s6845_s1 + $0x1c0] ss:$16 sps:$4 sm:$0xff]  }
  0x15   :  { %3204 = vmatprep.mubr.bf16.mxu0 %v3837_v48  ;;  %3532 = vmatprep.mubr.bf16.mxu1 %v3837_v48  ;;  %v4513_v61 = vld [vmem:[%s6845_s1 + $0x1c8] ss:$16 sps:$4 sm:$0xff]   ;;  %v4514_v62 = vld [vmem:[%s6845_s1 + $0x1e4] ss:$16 sps:$4 sm:$0xff]   ;;  %v4516_v63 = vld [vmem:[%s6845_s1 + $0x1ec] ss:$16 sps:$4 sm:$0xff]  }
  0x16   :  { %v4518_v0 = vld [vmem:[%s6845_s1 + $0x1e0] ss:$16 sps:$4 sm:$0xff]   ;;  %v4519_v1 = vld [vmem:[%s6845_s1 + $0x1e8] ss:$16 sps:$4 sm:$0xff]   ;;  %v4524_v2 = vld [vmem:[%s6845_s1 + $0x204] ss:$16 sps:$4 sm:$0xff]  }
  0x17   :  { %3183 = vmatpush1.bf16.msra.mxu0 %v4458_v22  ;;  %3511 = vmatpush1.bf16.msra.mxu1 %v4459_v23  ;;  %v4527_v3 = vld [vmem:[%s6845_s1 + $0x20c] ss:$16 sps:$4 sm:$0xff]   ;;  %v4522_v5 = vld [vmem:[%s6845_s1 + $0x200] ss:$16 sps:$4 sm:$0xff]   ;;  %v4525_v6 = vld [vmem:[%s6845_s1 + $0x208] ss:$16 sps:$4 sm:$0xff]  }
  0x18   :  { %3184 = vmatprep.subr.bf16.mxu0 %v4460_v24  ;;  %3512 = vmatprep.subr.bf16.mxu1 %v4462_v25  ;;  %v4530_v7 = vld [vmem:[%s6845_s1 + $0x224] ss:$16 sps:$4 sm:$0xff]   ;;  %v4533_v8 = vld [vmem:[%s6845_s1 + $0x22c] ss:$16 sps:$4 sm:$0xff]   ;;  %v4528_v9 = vld [vmem:[%s6845_s1 + $0x220] ss:$16 sps:$4 sm:$0xff]  }
  0x19   :  { %v4531_v10 = vld [vmem:[%s6845_s1 + $0x228] ss:$16 sps:$4 sm:$0xff]   ;;  %v4536_v11 = vld [vmem:[%s6845_s1 + $0x244] ss:$16 sps:$4 sm:$0xff]   ;;  %v4539_v12 = vld [vmem:[%s6845_s1 + $0x24c] ss:$16 sps:$4 sm:$0xff]  }
  0x1a   :  { %v4534_v13 = vld [vmem:[%s6845_s1 + $0x240] ss:$16 sps:$4 sm:$0xff]   ;;  %v4537_v14 = vld [vmem:[%s6845_s1 + $0x248] ss:$16 sps:$4 sm:$0xff]   ;;  %v4542_v15 = vld [vmem:[%s6845_s1 + $0x264] ss:$16 sps:$4 sm:$0xff]  }
  0x1b   :  { %3185 = vmatpush1.bf16.msra.mxu0 %v4464_v26  ;;  %3513 = vmatpush1.bf16.msra.mxu1 %v4465_v27  ;;  %v4545_v16 = vld [vmem:[%s6845_s1 + $0x26c] ss:$16 sps:$4 sm:$0xff]   ;;  %v4540_v17 = vld [vmem:[%s6845_s1 + $0x260] ss:$16 sps:$4 sm:$0xff]   ;;  %v4543_v18 = vld [vmem:[%s6845_s1 + $0x268] ss:$16 sps:$4 sm:$0xff]  }
  0x1c   :  { %3186 = vmatprep.subr.bf16.mxu0 %v4466_v28  ;;  %3514 = vmatprep.subr.bf16.mxu1 %v4468_v29  ;;  %v4548_v19 = vld [vmem:[%s6845_s1 + $0x284] ss:$16 sps:$4 sm:$0xff]   ;;  %v4551_v20 = vld [vmem:[%s6845_s1 + $0x28c] ss:$16 sps:$4 sm:$0xff]   ;;  %v4546_v21 = vld [vmem:[%s6845_s1 + $0x280] ss:$16 sps:$4 sm:$0xff]  }
  0x1d   :  { %v4549_v22 = vld [vmem:[%s6845_s1 + $0x288] ss:$16 sps:$4 sm:$0xff]   ;;  %v4554_v23 = vld [vmem:[%s6845_s1 + $0x2a4] ss:$16 sps:$4 sm:$0xff]   ;;  %v4557_v24 = vld [vmem:[%s6845_s1 + $0x2ac] ss:$16 sps:$4 sm:$0xff]  }
  0x1e   :  { %v4552_v25 = vld [vmem:[%s6845_s1 + $0x2a0] ss:$16 sps:$4 sm:$0xff]   ;;  %v4555_v26 = vld [vmem:[%s6845_s1 + $0x2a8] ss:$16 sps:$4 sm:$0xff]   ;;  %v4560_v27 = vld [vmem:[%s6845_s1 + $0x2c4] ss:$16 sps:$4 sm:$0xff]  }
  0x1f   :  { %3187 = vmatpush1.bf16.msra.mxu0 %v4470_v30  ;;  %3515 = vmatpush1.bf16.msra.mxu1 %v4471_v31  ;;  %v4563_v28 = vld [vmem:[%s6845_s1 + $0x2cc] ss:$16 sps:$4 sm:$0xff]   ;;  %v4558_v31 = vld [vmem:[%s6845_s1 + $0x2c0] ss:$16 sps:$4 sm:$0xff]   ;;  %v4585_v48 = vld [vmem:[%s6845_s1 + $0x348] ss:$16 sps:$4 sm:$0xff]  }
  0x20   :  { %3188 = vmatprep.subr.bf16.mxu0 %v4472_v32  ;;  %3516 = vmatprep.subr.bf16.mxu1 %v4474_v33  ;;  %v5504_v29 = vld [vmem:[%s6846_s0 + $0x8] sm:$0xff]  ;;  %v4566_v33 = vld [vmem:[%s6845_s1 + $0x2e4] ss:$16 sps:$4 sm:$0xff]  }
  0x21   :  { %v3839_v30 = vcombine.high %v5504_v29, %v5504_v29  ;;  %v4561_v32 = vld [vmem:[%s6845_s1 + $0x2c8] ss:$16 sps:$4 sm:$0xff]   ;;  %v4587_v46 = vld [vmem:[%s6845_s1 + $0x34c] ss:$16 sps:$4 sm:$0xff]  }
  0x23   :  { %3189 = vmatpush1.bf16.msra.mxu0 %v4476_v34  ;;  %3517 = vmatpush1.bf16.msra.mxu1 %v4477_v35  ;;  %v4569_v34 = vld [vmem:[%s6845_s1 + $0x2ec] ss:$16 sps:$4 sm:$0xff]   ;;  %v4564_v35 = vld [vmem:[%s6845_s1 + $0x2e0] ss:$16 sps:$4 sm:$0xff]  }
  0x24   :  { %3190 = vmatprep.subr.bf16.mxu0 %v4478_v36  ;;  %3518 = vmatprep.subr.bf16.mxu1 %v4480_v37  ;;  %v4567_v36 = vld [vmem:[%s6845_s1 + $0x2e8] ss:$16 sps:$4 sm:$0xff]   ;;  %v4572_v37 = vld [vmem:[%s6845_s1 + $0x304] ss:$16 sps:$4 sm:$0xff]  }
  0x27   :  { %3191 = vmatpush1.bf16.msra.mxu0 %v4482_v38  ;;  %3519 = vmatpush1.bf16.msra.mxu1 %v4483_v39  ;;  %v4575_v38 = vld [vmem:[%s6845_s1 + $0x30c] ss:$16 sps:$4 sm:$0xff]   ;;  %v4570_v39 = vld [vmem:[%s6845_s1 + $0x300] ss:$16 sps:$4 sm:$0xff]  }
  0x28   :  { %3192 = vmatprep.subr.bf16.mxu0 %v4484_v40  ;;  %3520 = vmatprep.subr.bf16.mxu1 %v4486_v41  ;;  %v4573_v40 = vld [vmem:[%s6845_s1 + $0x308] ss:$16 sps:$4 sm:$0xff]   ;;  %v4578_v41 = vld [vmem:[%s6845_s1 + $0x324] ss:$16 sps:$4 sm:$0xff]  }
  0x2b   :  { %3193 = vmatpush1.bf16.msra.mxu0 %v4488_v42  ;;  %3521 = vmatpush1.bf16.msra.mxu1 %v4489_v43  ;;  %v4581_v42 = vld [vmem:[%s6845_s1 + $0x32c] ss:$16 sps:$4 sm:$0xff]   ;;  %v4576_v43 = vld [vmem:[%s6845_s1 + $0x320] ss:$16 sps:$4 sm:$0xff]  }
  0x2c   :  { %3194 = vmatprep.subr.bf16.mxu0 %v4490_v44  ;;  %3522 = vmatprep.subr.bf16.mxu1 %v4492_v45  ;;  %v4579_v44 = vld [vmem:[%s6845_s1 + $0x328] ss:$16 sps:$4 sm:$0xff]   ;;  %v4584_v45 = vld [vmem:[%s6845_s1 + $0x344] ss:$16 sps:$4 sm:$0xff]  }
  0x2f   :  { %3195 = vmatpush1.bf16.msra.mxu0 %v4494_v47  ;;  %3523 = vmatpush1.bf16.msra.mxu1 %v4495_v49  ;;  %v4582_v47 = vld [vmem:[%s6845_s1 + $0x340] ss:$16 sps:$4 sm:$0xff]   ;;  %v4590_v49 = vld [vmem:[%s6845_s1 + $0x364] ss:$16 sps:$4 sm:$0xff]  }
  0x30   :  { %3196 = vmatprep.subr.bf16.mxu0 %v4496_v50  ;;  %3524 = vmatprep.subr.bf16.mxu1 %v4498_v51  ;;  %v4593_v50 = vld [vmem:[%s6845_s1 + $0x36c] ss:$16 sps:$4 sm:$0xff]   ;;  %v4588_v51 = vld [vmem:[%s6845_s1 + $0x360] ss:$16 sps:$4 sm:$0xff]  }
  0x33   :  { %3197 = vmatpush1.bf16.msra.mxu0 %v4500_v52  ;;  %3525 = vmatpush1.bf16.msra.mxu1 %v4501_v53  ;;  %v4591_v52 = vld [vmem:[%s6845_s1 + $0x368] ss:$16 sps:$4 sm:$0xff]   ;;  %v4596_v53 = vld [vmem:[%s6845_s1 + $0x384] ss:$16 sps:$4 sm:$0xff]  }
  0x34   :  { %3198 = vmatprep.subr.bf16.mxu0 %v4502_v54  ;;  %3526 = vmatprep.subr.bf16.mxu1 %v4504_v55  ;;  %v4599_v54 = vld [vmem:[%s6845_s1 + $0x38c] ss:$16 sps:$4 sm:$0xff]   ;;  %v4594_v55 = vld [vmem:[%s6845_s1 + $0x380] ss:$16 sps:$4 sm:$0xff]  }
  0x37   :  { %3199 = vmatpush1.bf16.msra.mxu0 %v4506_v56  ;;  %3527 = vmatpush1.bf16.msra.mxu1 %v4507_v57  ;;  %v4597_v56 = vld [vmem:[%s6845_s1 + $0x388] ss:$16 sps:$4 sm:$0xff]   ;;  %v4602_v57 = vld [vmem:[%s6845_s1 + $0x3a4] ss:$16 sps:$4 sm:$0xff]  }
  0x38   :  { %3200 = vmatprep.subr.bf16.mxu0 %v4508_v58  ;;  %3528 = vmatprep.subr.bf16.mxu1 %v4510_v59  ;;  %v4605_v58 = vld [vmem:[%s6845_s1 + $0x3ac] ss:$16 sps:$4 sm:$0xff]   ;;  %v4600_v59 = vld [vmem:[%s6845_s1 + $0x3a0] ss:$16 sps:$4 sm:$0xff]  }
  0x3b   :  { %3201 = vmatpush1.bf16.msra.mxu0 %v4512_v60  ;;  %3529 = vmatpush1.bf16.msra.mxu1 %v4513_v61  ;;  %v4603_v60 = vld [vmem:[%s6845_s1 + $0x3a8] ss:$16 sps:$4 sm:$0xff]   ;;  %v4608_v61 = vld [vmem:[%s6845_s1 + $0x3c4] ss:$16 sps:$4 sm:$0xff]  }
  0x3c   :  { %3202 = vmatprep.subr.bf16.mxu0 %v4514_v62  ;;  %3530 = vmatprep.subr.bf16.mxu1 %v4516_v63  ;;  %v4611_v62 = vld [vmem:[%s6845_s1 + $0x3cc] ss:$16 sps:$4 sm:$0xff]   ;;  %v4606_v63 = vld [vmem:[%s6845_s1 + $0x3c0] ss:$16 sps:$4 sm:$0xff]  }
  0x3f   :  { %3203 = vmatpush1.bf16.msra.mxu0 %v4518_v0  ;;  %3531 = vmatpush1.bf16.msra.mxu1 %v4519_v1  ;;  %v4609_v0 = vld [vmem:[%s6845_s1 + $0x3c8] ss:$16 sps:$4 sm:$0xff]   ;;  %v4614_v1 = vld [vmem:[%s6845_s1 + $0x3e4] ss:$16 sps:$4 sm:$0xff]  }
  0x40   :  { %3213 = vmatprep.subr.bf16.mxu0 %v4524_v2  ;;  %3541 = vmatprep.subr.bf16.mxu1 %v4527_v3  ;;  %v4617_v2 = vld [vmem:[%s6845_s1 + $0x3ec] ss:$16 sps:$4 sm:$0xff]   ;;  %v4612_v3 = vld [vmem:[%s6845_s1 + $0x3e0] ss:$16 sps:$4 sm:$0xff]  }
  0x42   :  { %3205 = vmatmul.mubr.bf16.vlgmr.msra.gmra.mrb[0].mxu0 %v3836_v4  ;;  %3533 = vmatmul.mubr.bf16.vlgmr.msra.gmra.mrb[0].mxu1 %v3836_v4  ;;  %v4615_v4 = vld [vmem:[%s6845_s1 + $0x3e8] ss:$16 sps:$4 sm:$0xff]  }
  0x43   :  { %3214 = vmatpush1.bf16.msra.mxu0 %v4522_v5  ;;  %3542 = vmatpush1.bf16.msra.mxu1 %v4525_v6  ;;  %v4622_v5 = vld [vmem:[%s6845_s1 + $0x404] ss:$16 sps:$4 sm:$0xff]   ;;  %v4625_v6 = vld [vmem:[%s6845_s1 + $0x40c] ss:$16 sps:$4 sm:$0xff]  }
  0x44   :  { %3215 = vmatprep.subr.bf16.mxu0 %v4530_v7  ;;  %3543 = vmatprep.subr.bf16.mxu1 %v4533_v8  ;;  %v3838_v7 = vcombine.low %v5504_v29, %v5504_v29  ;;  %v4620_v8 = vld [vmem:[%s6845_s1 + $0x400] ss:$16 sps:$4 sm:$0xff]   ;;  %v4655_v29 = vld [vmem:[%s6845_s1 + $0x4ac] ss:$16 sps:$4 sm:$0xff]  }
  0x45   :  { %3245 = vmatprep.mubr.bf16.mxu0 %v3839_v30  ;;  %3573 = vmatprep.mubr.bf16.mxu1 %v3839_v30  ;;  %v4650_v30 = vld [vmem:[%s6845_s1 + $0x4a0] ss:$16 sps:$4 sm:$0xff]  }
  0x47   :  { %3216 = vmatpush1.bf16.msra.mxu0 %v4528_v9  ;;  %3544 = vmatpush1.bf16.msra.mxu1 %v4531_v10  ;;  %v4623_v9 = vld [vmem:[%s6845_s1 + $0x408] ss:$16 sps:$4 sm:$0xff]   ;;  %v4628_v10 = vld [vmem:[%s6845_s1 + $0x424] ss:$16 sps:$4 sm:$0xff]  }
  0x48   :  { %3217 = vmatprep.subr.bf16.mxu0 %v4536_v11  ;;  %3545 = vmatprep.subr.bf16.mxu1 %v4539_v12  ;;  %v5642_v11 = vld [vmem:[%s6846_s0 + $0x10] sm:$0xff]  ;;  %v4631_v12 = vld [vmem:[%s6845_s1 + $0x42c] ss:$16 sps:$4 sm:$0xff]  }
  0x4b   :  { %3218 = vmatpush1.bf16.msra.mxu0 %v4534_v13  ;;  %3546 = vmatpush1.bf16.msra.mxu1 %v4537_v14  ;;  %v3841_v13 = vcombine.high %v5642_v11, %v5642_v11  ;;  %v4626_v14 = vld [vmem:[%s6845_s1 + $0x420] ss:$16 sps:$4 sm:$0xff]  }
  0x4c   :  { %3219 = vmatprep.subr.bf16.mxu0 %v4542_v15  ;;  %3547 = vmatprep.subr.bf16.mxu1 %v4545_v16  ;;  %v4629_v15 = vld [vmem:[%s6845_s1 + $0x428] ss:$16 sps:$4 sm:$0xff]   ;;  %v4634_v16 = vld [vmem:[%s6845_s1 + $0x444] ss:$16 sps:$4 sm:$0xff]  }
  0x4f   :  { %3220 = vmatpush1.bf16.msra.mxu0 %v4540_v17  ;;  %3548 = vmatpush1.bf16.msra.mxu1 %v4543_v18  ;;  %v4637_v17 = vld [vmem:[%s6845_s1 + $0x44c] ss:$16 sps:$4 sm:$0xff]   ;;  %v4632_v18 = vld [vmem:[%s6845_s1 + $0x440] ss:$16 sps:$4 sm:$0xff]  }
  0x50   :  { %3221 = vmatprep.subr.bf16.mxu0 %v4548_v19  ;;  %3549 = vmatprep.subr.bf16.mxu1 %v4551_v20  ;;  %v4635_v19 = vld [vmem:[%s6845_s1 + $0x448] ss:$16 sps:$4 sm:$0xff]   ;;  %v4640_v20 = vld [vmem:[%s6845_s1 + $0x464] ss:$16 sps:$4 sm:$0xff]  }
  0x53   :  { %3222 = vmatpush1.bf16.msra.mxu0 %v4546_v21  ;;  %3550 = vmatpush1.bf16.msra.mxu1 %v4549_v22  ;;  %v4643_v21 = vld [vmem:[%s6845_s1 + $0x46c] ss:$16 sps:$4 sm:$0xff]   ;;  %v4638_v22 = vld [vmem:[%s6845_s1 + $0x460] ss:$16 sps:$4 sm:$0xff]  }
  0x54   :  { %3223 = vmatprep.subr.bf16.mxu0 %v4554_v23  ;;  %3551 = vmatprep.subr.bf16.mxu1 %v4557_v24  ;;  %v4641_v23 = vld [vmem:[%s6845_s1 + $0x468] ss:$16 sps:$4 sm:$0xff]   ;;  %v4646_v24 = vld [vmem:[%s6845_s1 + $0x484] ss:$16 sps:$4 sm:$0xff]  }
  0x57   :  { %3224 = vmatpush1.bf16.msra.mxu0 %v4552_v25  ;;  %3552 = vmatpush1.bf16.msra.mxu1 %v4555_v26  ;;  %v4649_v25 = vld [vmem:[%s6845_s1 + $0x48c] ss:$16 sps:$4 sm:$0xff]   ;;  %v4644_v26 = vld [vmem:[%s6845_s1 + $0x480] ss:$16 sps:$4 sm:$0xff]  }
  0x58   :  { %3225 = vmatprep.subr.bf16.mxu0 %v4560_v27  ;;  %3553 = vmatprep.subr.bf16.mxu1 %v4563_v28  ;;  %v4647_v27 = vld [vmem:[%s6845_s1 + $0x488] ss:$16 sps:$4 sm:$0xff]   ;;  %v4652_v28 = vld [vmem:[%s6845_s1 + $0x4a4] ss:$16 sps:$4 sm:$0xff]  }
  0x5b   :  { %3226 = vmatpush1.bf16.msra.mxu0 %v4558_v31  ;;  %3554 = vmatpush1.bf16.msra.mxu1 %v4561_v32  ;;  %v4653_v31 = vld [vmem:[%s6845_s1 + $0x4a8] ss:$16 sps:$4 sm:$0xff]   ;;  %v4658_v32 = vld [vmem:[%s6845_s1 + $0x4c4] ss:$16 sps:$4 sm:$0xff]  }
  0x5c   :  { %3227 = vmatprep.subr.bf16.mxu0 %v4566_v33  ;;  %3555 = vmatprep.subr.bf16.mxu1 %v4569_v34  ;;  %v4661_v33 = vld [vmem:[%s6845_s1 + $0x4cc] ss:$16 sps:$4 sm:$0xff]   ;;  %v4656_v34 = vld [vmem:[%s6845_s1 + $0x4c0] ss:$16 sps:$4 sm:$0xff]  }
  0x5f   :  { %3228 = vmatpush1.bf16.msra.mxu0 %v4564_v35  ;;  %3556 = vmatpush1.bf16.msra.mxu1 %v4567_v36  ;;  %v4659_v35 = vld [vmem:[%s6845_s1 + $0x4c8] ss:$16 sps:$4 sm:$0xff]   ;;  %v4664_v36 = vld [vmem:[%s6845_s1 + $0x4e4] ss:$16 sps:$4 sm:$0xff]  }
  0x60   :  { %3229 = vmatprep.subr.bf16.mxu0 %v4572_v37  ;;  %3557 = vmatprep.subr.bf16.mxu1 %v4575_v38  ;;  %v4667_v37 = vld [vmem:[%s6845_s1 + $0x4ec] ss:$16 sps:$4 sm:$0xff]   ;;  %v4662_v38 = vld [vmem:[%s6845_s1 + $0x4e0] ss:$16 sps:$4 sm:$0xff]  }
  0x63   :  { %3230 = vmatpush1.bf16.msra.mxu0 %v4570_v39  ;;  %3558 = vmatpush1.bf16.msra.mxu1 %v4573_v40  ;;  %v4665_v39 = vld [vmem:[%s6845_s1 + $0x4e8] ss:$16 sps:$4 sm:$0xff]   ;;  %v4670_v40 = vld [vmem:[%s6845_s1 + $0x504] ss:$16 sps:$4 sm:$0xff]  }
  0x64   :  { %3231 = vmatprep.subr.bf16.mxu0 %v4578_v41  ;;  %3559 = vmatprep.subr.bf16.mxu1 %v4581_v42  ;;  %v4673_v41 = vld [vmem:[%s6845_s1 + $0x50c] ss:$16 sps:$4 sm:$0xff]   ;;  %v4668_v42 = vld [vmem:[%s6845_s1 + $0x500] ss:$16 sps:$4 sm:$0xff]  }
  0x67   :  { %3232 = vmatpush1.bf16.msra.mxu0 %v4576_v43  ;;  %3560 = vmatpush1.bf16.msra.mxu1 %v4579_v44  ;;  %v4671_v43 = vld [vmem:[%s6845_s1 + $0x508] ss:$16 sps:$4 sm:$0xff]   ;;  %v4676_v44 = vld [vmem:[%s6845_s1 + $0x524] ss:$16 sps:$4 sm:$0xff]  }
  0x68   :  { %3233 = vmatprep.subr.bf16.mxu0 %v4584_v45  ;;  %3561 = vmatprep.subr.bf16.mxu1 %v4587_v46  ;;  %v4679_v45 = vld [vmem:[%s6845_s1 + $0x52c] ss:$16 sps:$4 sm:$0xff]   ;;  %v4674_v46 = vld [vmem:[%s6845_s1 + $0x520] ss:$16 sps:$4 sm:$0xff]  }
  0x6b   :  { %3234 = vmatpush1.bf16.msra.mxu0 %v4582_v47  ;;  %3562 = vmatpush1.bf16.msra.mxu1 %v4585_v48  ;;  %v4677_v47 = vld [vmem:[%s6845_s1 + $0x528] ss:$16 sps:$4 sm:$0xff]   ;;  %v4682_v48 = vld [vmem:[%s6845_s1 + $0x544] ss:$16 sps:$4 sm:$0xff]  }
  0x6c   :  { %3235 = vmatprep.subr.bf16.mxu0 %v4590_v49  ;;  %3563 = vmatprep.subr.bf16.mxu1 %v4593_v50  ;;  %v4685_v49 = vld [vmem:[%s6845_s1 + $0x54c] ss:$16 sps:$4 sm:$0xff]   ;;  %v4680_v50 = vld [vmem:[%s6845_s1 + $0x540] ss:$16 sps:$4 sm:$0xff]  }
  0x6f   :  { %3236 = vmatpush1.bf16.msra.mxu0 %v4588_v51  ;;  %3564 = vmatpush1.bf16.msra.mxu1 %v4591_v52  ;;  %v4683_v51 = vld [vmem:[%s6845_s1 + $0x548] ss:$16 sps:$4 sm:$0xff]   ;;  %v4688_v52 = vld [vmem:[%s6845_s1 + $0x564] ss:$16 sps:$4 sm:$0xff]  }
  0x70   :  { %3237 = vmatprep.subr.bf16.mxu0 %v4596_v53  ;;  %3565 = vmatprep.subr.bf16.mxu1 %v4599_v54  ;;  %v4691_v53 = vld [vmem:[%s6845_s1 + $0x56c] ss:$16 sps:$4 sm:$0xff]   ;;  %v4686_v54 = vld [vmem:[%s6845_s1 + $0x560] ss:$16 sps:$4 sm:$0xff]  }
  0x73   :  { %3238 = vmatpush1.bf16.msra.mxu0 %v4594_v55  ;;  %3566 = vmatpush1.bf16.msra.mxu1 %v4597_v56  ;;  %v4689_v55 = vld [vmem:[%s6845_s1 + $0x568] ss:$16 sps:$4 sm:$0xff]   ;;  %v4694_v56 = vld [vmem:[%s6845_s1 + $0x584] ss:$16 sps:$4 sm:$0xff]  }
  0x74   :  { %3239 = vmatprep.subr.bf16.mxu0 %v4602_v57  ;;  %3567 = vmatprep.subr.bf16.mxu1 %v4605_v58  ;;  %v4697_v57 = vld [vmem:[%s6845_s1 + $0x58c] ss:$16 sps:$4 sm:$0xff]   ;;  %v4692_v58 = vld [vmem:[%s6845_s1 + $0x580] ss:$16 sps:$4 sm:$0xff]  }
  0x77   :  { %3240 = vmatpush1.bf16.msra.mxu0 %v4600_v59  ;;  %3568 = vmatpush1.bf16.msra.mxu1 %v4603_v60  ;;  %v4695_v59 = vld [vmem:[%s6845_s1 + $0x588] ss:$16 sps:$4 sm:$0xff]   ;;  %v4700_v60 = vld [vmem:[%s6845_s1 + $0x5a4] ss:$16 sps:$4 sm:$0xff]  }
  0x78   :  { %3241 = vmatprep.subr.bf16.mxu0 %v4608_v61  ;;  %3569 = vmatprep.subr.bf16.mxu1 %v4611_v62  ;;  %v4703_v61 = vld [vmem:[%s6845_s1 + $0x5ac] ss:$16 sps:$4 sm:$0xff]   ;;  %v4698_v62 = vld [vmem:[%s6845_s1 + $0x5a0] ss:$16 sps:$4 sm:$0xff]  }
  0x7b   :  { %3242 = vmatpush1.bf16.msra.mxu0 %v4606_v63  ;;  %3570 = vmatpush1.bf16.msra.mxu1 %v4609_v0  ;;  %v4701_v63 = vld [vmem:[%s6845_s1 + $0x5a8] ss:$16 sps:$4 sm:$0xff]   ;;  %v4706_v0 = vld [vmem:[%s6845_s1 + $0x5c4] ss:$16 sps:$4 sm:$0xff]  }
  0x7c   :  { %3243 = vmatprep.subr.bf16.mxu0 %v4614_v1  ;;  %3571 = vmatprep.subr.bf16.mxu1 %v4617_v2  ;;  %v4709_v1 = vld [vmem:[%s6845_s1 + $0x5cc] ss:$16 sps:$4 sm:$0xff]   ;;  %v4704_v2 = vld [vmem:[%s6845_s1 + $0x5c0] ss:$16 sps:$4 sm:$0xff]  }
  0x7f   :  { %3244 = vmatpush1.bf16.msra.mxu0 %v4612_v3  ;;  %3572 = vmatpush1.bf16.msra.mxu1 %v4615_v4  ;;  %v4707_v3 = vld [vmem:[%s6845_s1 + $0x5c8] ss:$16 sps:$4 sm:$0xff]   ;;  %v4712_v4 = vld [vmem:[%s6845_s1 + $0x5e4] ss:$16 sps:$4 sm:$0xff]  }
  0x80   :  { %3254 = vmatprep.subr.bf16.mxu0 %v4622_v5  ;;  %3582 = vmatprep.subr.bf16.mxu1 %v4625_v6  ;;  %v4715_v5 = vld [vmem:[%s6845_s1 + $0x5ec] ss:$16 sps:$4 sm:$0xff]   ;;  %v4710_v6 = vld [vmem:[%s6845_s1 + $0x5e0] ss:$16 sps:$4 sm:$0xff]  }
  0x82   :  { %3246 = vmatmul.mubr.bf16.vlgmr.msra.gmra.mrb[0].mxu0 %v3838_v7  ;;  %3574 = vmatmul.mubr.bf16.vlgmr.msra.gmra.mrb[0].mxu1 %v3838_v7  ;;  %v4713_v7 = vld [vmem:[%s6845_s1 + $0x5e8] ss:$16 sps:$4 sm:$0xff]  }
  0x83   :  { %3255 = vmatpush1.bf16.msra.mxu0 %v4620_v8  ;;  %3583 = vmatpush1.bf16.msra.mxu1 %v4623_v9  ;;  %v4720_v8 = vld [vmem:[%s6845_s1 + $0x604] ss:$16 sps:$4 sm:$0xff]   ;;  %v4723_v9 = vld [vmem:[%s6845_s1 + $0x60c] ss:$16 sps:$4 sm:$0xff]  }
  0x84   :  { %3256 = vmatprep.subr.bf16.mxu0 %v4628_v10  ;;  %3584 = vmatprep.subr.bf16.mxu1 %v4631_v12  ;;  %v4718_v10 = vld [vmem:[%s6845_s1 + $0x600] ss:$16 sps:$4 sm:$0xff]   ;;  %v3840_v12 = vcombine.low %v5642_v11, %v5642_v11  ;;  %v4729_v11 = vld [vmem:[%s6845_s1 + $0x62c] ss:$16 sps:$4 sm:$0xff]  }
  0x85   :  { %3286 = vmatprep.mubr.bf16.mxu0 %v3841_v13  ;;  %3614 = vmatprep.mubr.bf16.mxu1 %v3841_v13  ;;  %v4721_v13 = vld [vmem:[%s6845_s1 + $0x608] ss:$16 sps:$4 sm:$0xff]  }
  0x87   :  { %3257 = vmatpush1.bf16.msra.mxu0 %v4626_v14  ;;  %3585 = vmatpush1.bf16.msra.mxu1 %v4629_v15  ;;  %v5840_v14 = vld [vmem:[%s6846_s0 + $0x18] sm:$0xff]  ;;  %v4726_v15 = vld [vmem:[%s6845_s1 + $0x624] ss:$16 sps:$4 sm:$0xff]  }
  0x88   :  { %3258 = vmatprep.subr.bf16.mxu0 %v4634_v16  ;;  %3586 = vmatprep.subr.bf16.mxu1 %v4637_v17  ;;  %v3843_v16 = vcombine.high %v5840_v14, %v5840_v14  ;;  %v4724_v17 = vld [vmem:[%s6845_s1 + $0x620] ss:$16 sps:$4 sm:$0xff]  }
  0x8b   :  { %3259 = vmatpush1.bf16.msra.mxu0 %v4632_v18  ;;  %3587 = vmatpush1.bf16.msra.mxu1 %v4635_v19  ;;  %v4727_v18 = vld [vmem:[%s6845_s1 + $0x628] ss:$16 sps:$4 sm:$0xff]   ;;  %v4732_v19 = vld [vmem:[%s6845_s1 + $0x644] ss:$16 sps:$4 sm:$0xff]  }
  0x8c   :  { %3260 = vmatprep.subr.bf16.mxu0 %v4640_v20  ;;  %3588 = vmatprep.subr.bf16.mxu1 %v4643_v21  ;;  %v4735_v20 = vld [vmem:[%s6845_s1 + $0x64c] ss:$16 sps:$4 sm:$0xff]   ;;  %v4730_v21 = vld [vmem:[%s6845_s1 + $0x640] ss:$16 sps:$4 sm:$0xff]  }
  0x8f   :  { %3261 = vmatpush1.bf16.msra.mxu0 %v4638_v22  ;;  %3589 = vmatpush1.bf16.msra.mxu1 %v4641_v23  ;;  %v4733_v22 = vld [vmem:[%s6845_s1 + $0x648] ss:$16 sps:$4 sm:$0xff]   ;;  %v4738_v23 = vld [vmem:[%s6845_s1 + $0x664] ss:$16 sps:$4 sm:$0xff]  }
  0x90   :  { %3262 = vmatprep.subr.bf16.mxu0 %v4646_v24  ;;  %3590 = vmatprep.subr.bf16.mxu1 %v4649_v25  ;;  %v4741_v24 = vld [vmem:[%s6845_s1 + $0x66c] ss:$16 sps:$4 sm:$0xff]   ;;  %v4736_v25 = vld [vmem:[%s6845_s1 + $0x660] ss:$16 sps:$4 sm:$0xff]  }
  0x93   :  { %3263 = vmatpush1.bf16.msra.mxu0 %v4644_v26  ;;  %3591 = vmatpush1.bf16.msra.mxu1 %v4647_v27  ;;  %v4739_v26 = vld [vmem:[%s6845_s1 + $0x668] ss:$16 sps:$4 sm:$0xff]   ;;  %v4744_v27 = vld [vmem:[%s6845_s1 + $0x684] ss:$16 sps:$4 sm:$0xff]  }
  0x94   :  { %3264 = vmatprep.subr.bf16.mxu0 %v4652_v28  ;;  %3592 = vmatprep.subr.bf16.mxu1 %v4655_v29  ;;  %v4747_v28 = vld [vmem:[%s6845_s1 + $0x68c] ss:$16 sps:$4 sm:$0xff]   ;;  %v4742_v29 = vld [vmem:[%s6845_s1 + $0x680] ss:$16 sps:$4 sm:$0xff]  }
  0x97   :  { %3265 = vmatpush1.bf16.msra.mxu0 %v4650_v30  ;;  %3593 = vmatpush1.bf16.msra.mxu1 %v4653_v31  ;;  %v4745_v30 = vld [vmem:[%s6845_s1 + $0x688] ss:$16 sps:$4 sm:$0xff]   ;;  %v4750_v31 = vld [vmem:[%s6845_s1 + $0x6a4] ss:$16 sps:$4 sm:$0xff]  }
  0x98   :  { %3266 = vmatprep.subr.bf16.mxu0 %v4658_v32  ;;  %3594 = vmatprep.subr.bf16.mxu1 %v4661_v33  ;;  %v4753_v32 = vld [vmem:[%s6845_s1 + $0x6ac] ss:$16 sps:$4 sm:$0xff]   ;;  %v4748_v33 = vld [vmem:[%s6845_s1 + $0x6a0] ss:$16 sps:$4 sm:$0xff]  }
  0x9b   :  { %3267 = vmatpush1.bf16.msra.mxu0 %v4656_v34  ;;  %3595 = vmatpush1.bf16.msra.mxu1 %v4659_v35  ;;  %v4751_v34 = vld [vmem:[%s6845_s1 + $0x6a8] ss:$16 sps:$4 sm:$0xff]   ;;  %v4756_v35 = vld [vmem:[%s6845_s1 + $0x6c4] ss:$16 sps:$4 sm:$0xff]  }
  0x9c   :  { %3268 = vmatprep.subr.bf16.mxu0 %v4664_v36  ;;  %3596 = vmatprep.subr.bf16.mxu1 %v4667_v37  ;;  %v4759_v36 = vld [vmem:[%s6845_s1 + $0x6cc] ss:$16 sps:$4 sm:$0xff]   ;;  %v4754_v37 = vld [vmem:[%s6845_s1 + $0x6c0] ss:$16 sps:$4 sm:$0xff]  }
  0x9f   :  { %3269 = vmatpush1.bf16.msra.mxu0 %v4662_v38  ;;  %3597 = vmatpush1.bf16.msra.mxu1 %v4665_v39  ;;  %v4757_v38 = vld [vmem:[%s6845_s1 + $0x6c8] ss:$16 sps:$4 sm:$0xff]   ;;  %v4762_v39 = vld [vmem:[%s6845_s1 + $0x6e4] ss:$16 sps:$4 sm:$0xff]  }
  0xa0   :  { %3270 = vmatprep.subr.bf16.mxu0 %v4670_v40  ;;  %3598 = vmatprep.subr.bf16.mxu1 %v4673_v41  ;;  %v4765_v40 = vld [vmem:[%s6845_s1 + $0x6ec] ss:$16 sps:$4 sm:$0xff]   ;;  %v4760_v41 = vld [vmem:[%s6845_s1 + $0x6e0] ss:$16 sps:$4 sm:$0xff]  }
  0xa3   :  { %3271 = vmatpush1.bf16.msra.mxu0 %v4668_v42  ;;  %3599 = vmatpush1.bf16.msra.mxu1 %v4671_v43  ;;  %v4763_v42 = vld [vmem:[%s6845_s1 + $0x6e8] ss:$16 sps:$4 sm:$0xff]   ;;  %v4768_v43 = vld [vmem:[%s6845_s1 + $0x704] ss:$16 sps:$4 sm:$0xff]  }
  0xa4   :  { %3272 = vmatprep.subr.bf16.mxu0 %v4676_v44  ;;  %3600 = vmatprep.subr.bf16.mxu1 %v4679_v45  ;;  %v4771_v44 = vld [vmem:[%s6845_s1 + $0x70c] ss:$16 sps:$4 sm:$0xff]   ;;  %v4766_v45 = vld [vmem:[%s6845_s1 + $0x700] ss:$16 sps:$4 sm:$0xff]  }
  0xa7   :  { %3273 = vmatpush1.bf16.msra.mxu0 %v4674_v46  ;;  %3601 = vmatpush1.bf16.msra.mxu1 %v4677_v47  ;;  %v4769_v46 = vld [vmem:[%s6845_s1 + $0x708] ss:$16 sps:$4 sm:$0xff]   ;;  %v4774_v47 = vld [vmem:[%s6845_s1 + $0x724] ss:$16 sps:$4 sm:$0xff]  }
  0xa8   :  { %3274 = vmatprep.subr.bf16.mxu0 %v4682_v48  ;;  %3602 = vmatprep.subr.bf16.mxu1 %v4685_v49  ;;  %v4777_v48 = vld [vmem:[%s6845_s1 + $0x72c] ss:$16 sps:$4 sm:$0xff]   ;;  %v4772_v49 = vld [vmem:[%s6845_s1 + $0x720] ss:$16 sps:$4 sm:$0xff]  }
  0xab   :  { %3275 = vmatpush1.bf16.msra.mxu0 %v4680_v50  ;;  %3603 = vmatpush1.bf16.msra.mxu1 %v4683_v51  ;;  %v4775_v50 = vld [vmem:[%s6845_s1 + $0x728] ss:$16 sps:$4 sm:$0xff]   ;;  %v4780_v51 = vld [vmem:[%s6845_s1 + $0x744] ss:$16 sps:$4 sm:$0xff]  }
  0xac   :  { %3276 = vmatprep.subr.bf16.mxu0 %v4688_v52  ;;  %3604 = vmatprep.subr.bf16.mxu1 %v4691_v53  ;;  %v4783_v52 = vld [vmem:[%s6845_s1 + $0x74c] ss:$16 sps:$4 sm:$0xff]   ;;  %v4778_v53 = vld [vmem:[%s6845_s1 + $0x740] ss:$16 sps:$4 sm:$0xff]  }
  0xaf   :  { %3277 = vmatpush1.bf16.msra.mxu0 %v4686_v54  ;;  %3605 = vmatpush1.bf16.msra.mxu1 %v4689_v55  ;;  %v4781_v54 = vld [vmem:[%s6845_s1 + $0x748] ss:$16 sps:$4 sm:$0xff]   ;;  %v4786_v55 = vld [vmem:[%s6845_s1 + $0x764] ss:$16 sps:$4 sm:$0xff]  }
  0xb0   :  { %3278 = vmatprep.subr.bf16.mxu0 %v4694_v56  ;;  %3606 = vmatprep.subr.bf16.mxu1 %v4697_v57  ;;  %v4789_v56 = vld [vmem:[%s6845_s1 + $0x76c] ss:$16 sps:$4 sm:$0xff]   ;;  %v4784_v57 = vld [vmem:[%s6845_s1 + $0x760] ss:$16 sps:$4 sm:$0xff]  }
  0xb3   :  { %3279 = vmatpush1.bf16.msra.mxu0 %v4692_v58  ;;  %3607 = vmatpush1.bf16.msra.mxu1 %v4695_v59  ;;  %v4787_v58 = vld [vmem:[%s6845_s1 + $0x768] ss:$16 sps:$4 sm:$0xff]   ;;  %v4792_v59 = vld [vmem:[%s6845_s1 + $0x784] ss:$16 sps:$4 sm:$0xff]  }
  0xb4   :  { %3280 = vmatprep.subr.bf16.mxu0 %v4700_v60  ;;  %3608 = vmatprep.subr.bf16.mxu1 %v4703_v61  ;;  %v4795_v60 = vld [vmem:[%s6845_s1 + $0x78c] ss:$16 sps:$4 sm:$0xff]   ;;  %v4790_v61 = vld [vmem:[%s6845_s1 + $0x780] ss:$16 sps:$4 sm:$0xff]  }
  0xb7   :  { %3281 = vmatpush1.bf16.msra.mxu0 %v4698_v62  ;;  %3609 = vmatpush1.bf16.msra.mxu1 %v4701_v63  ;;  %v4793_v62 = vld [vmem:[%s6845_s1 + $0x788] ss:$16 sps:$4 sm:$0xff]   ;;  %v4798_v63 = vld [vmem:[%s6845_s1 + $0x7a4] ss:$16 sps:$4 sm:$0xff]  }
  0xb8   :  { %3282 = vmatprep.subr.bf16.mxu0 %v4706_v0  ;;  %3610 = vmatprep.subr.bf16.mxu1 %v4709_v1  ;;  %v4801_v0 = vld [vmem:[%s6845_s1 + $0x7ac] ss:$16 sps:$4 sm:$0xff]   ;;  %v4796_v1 = vld [vmem:[%s6845_s1 + $0x7a0] ss:$16 sps:$4 sm:$0xff]  }
  0xbb   :  { %3283 = vmatpush1.bf16.msra.mxu0 %v4704_v2  ;;  %3611 = vmatpush1.bf16.msra.mxu1 %v4707_v3  ;;  %v4799_v2 = vld [vmem:[%s6845_s1 + $0x7a8] ss:$16 sps:$4 sm:$0xff]   ;;  %v4804_v3 = vld [vmem:[%s6845_s1 + $0x7c4] ss:$16 sps:$4 sm:$0xff]  }
  0xbc   :  { %3284 = vmatprep.subr.bf16.mxu0 %v4712_v4  ;;  %3612 = vmatprep.subr.bf16.mxu1 %v4715_v5  ;;  %v4807_v4 = vld [vmem:[%s6845_s1 + $0x7cc] ss:$16 sps:$4 sm:$0xff]   ;;  %v4802_v5 = vld [vmem:[%s6845_s1 + $0x7c0] ss:$16 sps:$4 sm:$0xff]  }
  0xbf   :  { %3285 = vmatpush1.bf16.msra.mxu0 %v4710_v6  ;;  %3613 = vmatpush1.bf16.msra.mxu1 %v4713_v7  ;;  %v4805_v6 = vld [vmem:[%s6845_s1 + $0x7c8] ss:$16 sps:$4 sm:$0xff]   ;;  %v4810_v7 = vld [vmem:[%s6845_s1 + $0x7e4] ss:$16 sps:$4 sm:$0xff]  }
  0xc0   :  { %3295 = vmatprep.subr.bf16.mxu0 %v4720_v8  ;;  %3623 = vmatprep.subr.bf16.mxu1 %v4723_v9  ;;  %v4813_v8 = vld [vmem:[%s6845_s1 + $0x7ec] ss:$16 sps:$4 sm:$0xff]   ;;  %v4808_v9 = vld [vmem:[%s6845_s1 + $0x7e0] ss:$16 sps:$4 sm:$0xff]  }
  0xc2   :  { %3287 = vmatmul.mubr.bf16.vlgmr.msra.gmra.mrb[0].mxu0 %v3840_v12  ;;  %3615 = vmatmul.mubr.bf16.vlgmr.msra.gmra.mrb[0].mxu1 %v3840_v12  ;;  %v4818_v12 = vld [vmem:[%s6845_s1 + $0x804] ss:$16 sps:$4 sm:$0xff]  }
  0xc3   :  { %3296 = vmatpush1.bf16.msra.mxu0 %v4718_v10  ;;  %3624 = vmatpush1.bf16.msra.mxu1 %v4721_v13  ;;  %v4811_v10 = vld [vmem:[%s6845_s1 + $0x7e8] ss:$16 sps:$4 sm:$0xff]   ;;  %v4821_v13 = vld [vmem:[%s6845_s1 + $0x80c] ss:$16 sps:$4 sm:$0xff]  }
  0xc4   :  { %3297 = vmatprep.subr.bf16.mxu0 %v4726_v15  ;;  %3625 = vmatprep.subr.bf16.mxu1 %v4729_v11  ;;  %v4816_v15 = vld [vmem:[%s6845_s1 + $0x800] ss:$16 sps:$4 sm:$0xff]   ;;  %v3842_v11 = vcombine.low %v5840_v14, %v5840_v14  ;;  %v4827_v14 = vld [vmem:[%s6845_s1 + $0x82c] ss:$16 sps:$4 sm:$0xff]  }
  0xc5   :  { %3327 = vmatprep.mubr.bf16.mxu0 %v3843_v16  ;;  %3655 = vmatprep.mubr.bf16.mxu1 %v3843_v16  ;;  %v6038_v16 = vld [vmem:[%s6846_s0 + $0x20] sm:$0xff] }
  0xc7   :  { %3298 = vmatpush1.bf16.msra.mxu0 %v4724_v17  ;;  %3626 = vmatpush1.bf16.msra.mxu1 %v4727_v18  ;;  %v4819_v17 = vld [vmem:[%s6845_s1 + $0x808] ss:$16 sps:$4 sm:$0xff]   ;;  %v4824_v18 = vld [vmem:[%s6845_s1 + $0x824] ss:$16 sps:$4 sm:$0xff]  }
  0xc8   :  { %3299 = vmatprep.subr.bf16.mxu0 %v4732_v19  ;;  %3627 = vmatprep.subr.bf16.mxu1 %v4735_v20  ;;  %v3845_v19 = vcombine.high %v6038_v16, %v6038_v16  ;;  %v4822_v20 = vld [vmem:[%s6845_s1 + $0x820] ss:$16 sps:$4 sm:$0xff]  }
  0xcb   :  { %3300 = vmatpush1.bf16.msra.mxu0 %v4730_v21  ;;  %3628 = vmatpush1.bf16.msra.mxu1 %v4733_v22  ;;  %v4825_v21 = vld [vmem:[%s6845_s1 + $0x828] ss:$16 sps:$4 sm:$0xff]   ;;  %v4830_v22 = vld [vmem:[%s6845_s1 + $0x844] ss:$16 sps:$4 sm:$0xff]  }
  0xcc   :  { %3301 = vmatprep.subr.bf16.mxu0 %v4738_v23  ;;  %3629 = vmatprep.subr.bf16.mxu1 %v4741_v24  ;;  %v4833_v23 = vld [vmem:[%s6845_s1 + $0x84c] ss:$16 sps:$4 sm:$0xff]   ;;  %v4828_v24 = vld [vmem:[%s6845_s1 + $0x840] ss:$16 sps:$4 sm:$0xff]  }
  0xcf   :  { %3302 = vmatpush1.bf16.msra.mxu0 %v4736_v25  ;;  %3630 = vmatpush1.bf16.msra.mxu1 %v4739_v26  ;;  %v4831_v25 = vld [vmem:[%s6845_s1 + $0x848] ss:$16 sps:$4 sm:$0xff]   ;;  %v4836_v26 = vld [vmem:[%s6845_s1 + $0x864] ss:$16 sps:$4 sm:$0xff]  }
  0xd0   :  { %3303 = vmatprep.subr.bf16.mxu0 %v4744_v27  ;;  %3631 = vmatprep.subr.bf16.mxu1 %v4747_v28  ;;  %v4839_v27 = vld [vmem:[%s6845_s1 + $0x86c] ss:$16 sps:$4 sm:$0xff]   ;;  %v4834_v28 = vld [vmem:[%s6845_s1 + $0x860] ss:$16 sps:$4 sm:$0xff]  }
  0xd3   :  { %3304 = vmatpush1.bf16.msra.mxu0 %v4742_v29  ;;  %3632 = vmatpush1.bf16.msra.mxu1 %v4745_v30  ;;  %v4837_v29 = vld [vmem:[%s6845_s1 + $0x868] ss:$16 sps:$4 sm:$0xff]   ;;  %v4842_v30 = vld [vmem:[%s6845_s1 + $0x884] ss:$16 sps:$4 sm:$0xff]  }
  0xd4   :  { %3305 = vmatprep.subr.bf16.mxu0 %v4750_v31  ;;  %3633 = vmatprep.subr.bf16.mxu1 %v4753_v32  ;;  %v4845_v31 = vld [vmem:[%s6845_s1 + $0x88c] ss:$16 sps:$4 sm:$0xff]   ;;  %v4840_v32 = vld [vmem:[%s6845_s1 + $0x880] ss:$16 sps:$4 sm:$0xff]  }
  0xd7   :  { %3306 = vmatpush1.bf16.msra.mxu0 %v4748_v33  ;;  %3634 = vmatpush1.bf16.msra.mxu1 %v4751_v34  ;;  %v4843_v33 = vld [vmem:[%s6845_s1 + $0x888] ss:$16 sps:$4 sm:$0xff]   ;;  %v4848_v34 = vld [vmem:[%s6845_s1 + $0x8a4] ss:$16 sps:$4 sm:$0xff]  }
  0xd8   :  { %3307 = vmatprep.subr.bf16.mxu0 %v4756_v35  ;;  %3635 = vmatprep.subr.bf16.mxu1 %v4759_v36  ;;  %v4851_v35 = vld [vmem:[%s6845_s1 + $0x8ac] ss:$16 sps:$4 sm:$0xff]   ;;  %v4846_v36 = vld [vmem:[%s6845_s1 + $0x8a0] ss:$16 sps:$4 sm:$0xff]  }
  0xdb   :  { %3308 = vmatpush1.bf16.msra.mxu0 %v4754_v37  ;;  %3636 = vmatpush1.bf16.msra.mxu1 %v4757_v38  ;;  %v4849_v37 = vld [vmem:[%s6845_s1 + $0x8a8] ss:$16 sps:$4 sm:$0xff]   ;;  %v4854_v38 = vld [vmem:[%s6845_s1 + $0x8c4] ss:$16 sps:$4 sm:$0xff]  }
  0xdc   :  { %3309 = vmatprep.subr.bf16.mxu0 %v4762_v39  ;;  %3637 = vmatprep.subr.bf16.mxu1 %v4765_v40  ;;  %v4857_v39 = vld [vmem:[%s6845_s1 + $0x8cc] ss:$16 sps:$4 sm:$0xff]   ;;  %v4852_v40 = vld [vmem:[%s6845_s1 + $0x8c0] ss:$16 sps:$4 sm:$0xff]  }
  0xdf   :  { %3310 = vmatpush1.bf16.msra.mxu0 %v4760_v41  ;;  %3638 = vmatpush1.bf16.msra.mxu1 %v4763_v42  ;;  %v4855_v41 = vld [vmem:[%s6845_s1 + $0x8c8] ss:$16 sps:$4 sm:$0xff]   ;;  %v4860_v42 = vld [vmem:[%s6845_s1 + $0x8e4] ss:$16 sps:$4 sm:$0xff]  }
  0xe0   :  { %3311 = vmatprep.subr.bf16.mxu0 %v4768_v43  ;;  %3639 = vmatprep.subr.bf16.mxu1 %v4771_v44  ;;  %v4863_v43 = vld [vmem:[%s6845_s1 + $0x8ec] ss:$16 sps:$4 sm:$0xff]   ;;  %v4858_v44 = vld [vmem:[%s6845_s1 + $0x8e0] ss:$16 sps:$4 sm:$0xff]  }
  0xe3   :  { %3312 = vmatpush1.bf16.msra.mxu0 %v4766_v45  ;;  %3640 = vmatpush1.bf16.msra.mxu1 %v4769_v46  ;;  %v4861_v45 = vld [vmem:[%s6845_s1 + $0x8e8] ss:$16 sps:$4 sm:$0xff]   ;;  %v4866_v46 = vld [vmem:[%s6845_s1 + $0x904] ss:$16 sps:$4 sm:$0xff]  }
  0xe4   :  { %3313 = vmatprep.subr.bf16.mxu0 %v4774_v47  ;;  %3641 = vmatprep.subr.bf16.mxu1 %v4777_v48  ;;  %v4869_v47 = vld [vmem:[%s6845_s1 + $0x90c] ss:$16 sps:$4 sm:$0xff]   ;;  %v4864_v48 = vld [vmem:[%s6845_s1 + $0x900] ss:$16 sps:$4 sm:$0xff]  }
  0xe7   :  { %3314 = vmatpush1.bf16.msra.mxu0 %v4772_v49  ;;  %3642 = vmatpush1.bf16.msra.mxu1 %v4775_v50  ;;  %v4867_v49 = vld [vmem:[%s6845_s1 + $0x908] ss:$16 sps:$4 sm:$0xff]   ;;  %v4872_v50 = vld [vmem:[%s6845_s1 + $0x924] ss:$16 sps:$4 sm:$0xff]  }
  0xe8   :  { %3315 = vmatprep.subr.bf16.mxu0 %v4780_v51  ;;  %3643 = vmatprep.subr.bf16.mxu1 %v4783_v52  ;;  %v4875_v51 = vld [vmem:[%s6845_s1 + $0x92c] ss:$16 sps:$4 sm:$0xff]   ;;  %v4870_v52 = vld [vmem:[%s6845_s1 + $0x920] ss:$16 sps:$4 sm:$0xff]  }
  0xeb   :  { %3316 = vmatpush1.bf16.msra.mxu0 %v4778_v53  ;;  %3644 = vmatpush1.bf16.msra.mxu1 %v4781_v54  ;;  %v4873_v53 = vld [vmem:[%s6845_s1 + $0x928] ss:$16 sps:$4 sm:$0xff]   ;;  %v4878_v54 = vld [vmem:[%s6845_s1 + $0x944] ss:$16 sps:$4 sm:$0xff]  }
  0xec   :  { %3317 = vmatprep.subr.bf16.mxu0 %v4786_v55  ;;  %3645 = vmatprep.subr.bf16.mxu1 %v4789_v56  ;;  %v4881_v55 = vld [vmem:[%s6845_s1 + $0x94c] ss:$16 sps:$4 sm:$0xff]   ;;  %v4876_v56 = vld [vmem:[%s6845_s1 + $0x940] ss:$16 sps:$4 sm:$0xff]  }
  0xef   :  { %3318 = vmatpush1.bf16.msra.mxu0 %v4784_v57  ;;  %3646 = vmatpush1.bf16.msra.mxu1 %v4787_v58  ;;  %v4879_v57 = vld [vmem:[%s6845_s1 + $0x948] ss:$16 sps:$4 sm:$0xff]   ;;  %v4884_v58 = vld [vmem:[%s6845_s1 + $0x964] ss:$16 sps:$4 sm:$0xff]  }
  0xf0   :  { %3319 = vmatprep.subr.bf16.mxu0 %v4792_v59  ;;  %3647 = vmatprep.subr.bf16.mxu1 %v4795_v60  ;;  %v4887_v59 = vld [vmem:[%s6845_s1 + $0x96c] ss:$16 sps:$4 sm:$0xff]   ;;  %v4882_v60 = vld [vmem:[%s6845_s1 + $0x960] ss:$16 sps:$4 sm:$0xff]  }
  0xf3   :  { %3320 = vmatpush1.bf16.msra.mxu0 %v4790_v61  ;;  %3648 = vmatpush1.bf16.msra.mxu1 %v4793_v62  ;;  %v4885_v61 = vld [vmem:[%s6845_s1 + $0x968] ss:$16 sps:$4 sm:$0xff]   ;;  %v4890_v62 = vld [vmem:[%s6845_s1 + $0x984] ss:$16 sps:$4 sm:$0xff]  }
  0xf4   :  { %3321 = vmatprep.subr.bf16.mxu0 %v4798_v63  ;;  %3649 = vmatprep.subr.bf16.mxu1 %v4801_v0  ;;  %v4893_v63 = vld [vmem:[%s6845_s1 + $0x98c] ss:$16 sps:$4 sm:$0xff]   ;;  %v4888_v0 = vld [vmem:[%s6845_s1 + $0x980] ss:$16 sps:$4 sm:$0xff]  }
  0xf7   :  { %3322 = vmatpush1.bf16.msra.mxu0 %v4796_v1  ;;  %3650 = vmatpush1.bf16.msra.mxu1 %v4799_v2  ;;  %v4891_v1 = vld [vmem:[%s6845_s1 + $0x988] ss:$16 sps:$4 sm:$0xff]   ;;  %v4896_v2 = vld [vmem:[%s6845_s1 + $0x9a4] ss:$16 sps:$4 sm:$0xff]  }
  0xf8   :  { %3323 = vmatprep.subr.bf16.mxu0 %v4804_v3  ;;  %3651 = vmatprep.subr.bf16.mxu1 %v4807_v4  ;;  %v4899_v3 = vld [vmem:[%s6845_s1 + $0x9ac] ss:$16 sps:$4 sm:$0xff]   ;;  %v4894_v4 = vld [vmem:[%s6845_s1 + $0x9a0] ss:$16 sps:$4 sm:$0xff]  }
  0xfb   :  { %3324 = vmatpush1.bf16.msra.mxu0 %v4802_v5  ;;  %3652 = vmatpush1.bf16.msra.mxu1 %v4805_v6  ;;  %v4897_v5 = vld [vmem:[%s6845_s1 + $0x9a8] ss:$16 sps:$4 sm:$0xff]   ;;  %v4902_v6 = vld [vmem:[%s6845_s1 + $0x9c4] ss:$16 sps:$4 sm:$0xff]  }
  0xfc   :  { %3325 = vmatprep.subr.bf16.mxu0 %v4810_v7  ;;  %3653 = vmatprep.subr.bf16.mxu1 %v4813_v8  ;;  %v4905_v7 = vld [vmem:[%s6845_s1 + $0x9cc] ss:$16 sps:$4 sm:$0xff]   ;;  %v4900_v8 = vld [vmem:[%s6845_s1 + $0x9c0] ss:$16 sps:$4 sm:$0xff]  }
  0xff   :  { %3326 = vmatpush1.bf16.msra.mxu0 %v4808_v9  ;;  %3654 = vmatpush1.bf16.msra.mxu1 %v4811_v10  ;;  %v4903_v9 = vld [vmem:[%s6845_s1 + $0x9c8] ss:$16 sps:$4 sm:$0xff]   ;;  %v4908_v10 = vld [vmem:[%s6845_s1 + $0x9e4] ss:$16 sps:$4 sm:$0xff]  }
 0x100   :  { %3336 = vmatprep.subr.bf16.mxu0 %v4818_v12  ;;  %3664 = vmatprep.subr.bf16.mxu1 %v4821_v13  ;;  %v4911_v12 = vld [vmem:[%s6845_s1 + $0x9ec] ss:$16 sps:$4 sm:$0xff]   ;;  %v4906_v13 = vld [vmem:[%s6845_s1 + $0x9e0] ss:$16 sps:$4 sm:$0xff]  }
 0x102   :  { %3328 = vmatmul.mubr.bf16.vlgmr.msra.gmra.mrb[0].mxu0 %v3842_v11  ;;  %3656 = vmatmul.mubr.bf16.vlgmr.msra.gmra.mrb[0].mxu1 %v3842_v11  ;;  %v4916_v11 = vld [vmem:[%s6845_s1 + $0xa04] ss:$16 sps:$4 sm:$0xff]  }
 0x103   :  { %3337 = vmatpush1.bf16.msra.mxu0 %v4816_v15  ;;  %3665 = vmatpush1.bf16.msra.mxu1 %v4819_v17  ;;  %v4909_v15 = vld [vmem:[%s6845_s1 + $0x9e8] ss:$16 sps:$4 sm:$0xff]   ;;  %v4919_v17 = vld [vmem:[%s6845_s1 + $0xa0c] ss:$16 sps:$4 sm:$0xff]  }
 0x104   :  { %3338 = vmatprep.subr.bf16.mxu0 %v4824_v18  ;;  %3666 = vmatprep.subr.bf16.mxu1 %v4827_v14  ;;  %v6234_v18 = vld [vmem:[%s6846_s0 + $0x28] sm:$0xff]  ;;  %v3844_v14 = vcombine.low %v6038_v16, %v6038_v16 }
 0x105   :  { %3368 = vmatprep.mubr.bf16.mxu0 %v3845_v19  ;;  %3696 = vmatprep.mubr.bf16.mxu1 %v3845_v19  ;;  %v4914_v19 = vld [vmem:[%s6845_s1 + $0xa00] ss:$16 sps:$4 sm:$0xff]   ;;  %v4925_v16 = vld [vmem:[%s6845_s1 + $0xa2c] ss:$16 sps:$4 sm:$0xff]  }
 0x107   :  { %3339 = vmatpush1.bf16.msra.mxu0 %v4822_v20  ;;  %3667 = vmatpush1.bf16.msra.mxu1 %v4825_v21  ;;  %v4917_v20 = vld [vmem:[%s6845_s1 + $0xa08] ss:$16 sps:$4 sm:$0xff]   ;;  %v4922_v21 = vld [vmem:[%s6845_s1 + $0xa24] ss:$16 sps:$4 sm:$0xff]  }
 0x108   :  { %3340 = vmatprep.subr.bf16.mxu0 %v4830_v22  ;;  %3668 = vmatprep.subr.bf16.mxu1 %v4833_v23  ;;  %v3847_v22 = vcombine.high %v6234_v18, %v6234_v18  ;;  %v4920_v23 = vld [vmem:[%s6845_s1 + $0xa20] ss:$16 sps:$4 sm:$0xff]  }
 0x10b   :  { %3341 = vmatpush1.bf16.msra.mxu0 %v4828_v24  ;;  %3669 = vmatpush1.bf16.msra.mxu1 %v4831_v25  ;;  %v4923_v24 = vld [vmem:[%s6845_s1 + $0xa28] ss:$16 sps:$4 sm:$0xff]   ;;  %v4928_v25 = vld [vmem:[%s6845_s1 + $0xa44] ss:$16 sps:$4 sm:$0xff]  }
 0x10c   :  { %3342 = vmatprep.subr.bf16.mxu0 %v4836_v26  ;;  %3670 = vmatprep.subr.bf16.mxu1 %v4839_v27  ;;  %v4931_v26 = vld [vmem:[%s6845_s1 + $0xa4c] ss:$16 sps:$4 sm:$0xff]   ;;  %v4926_v27 = vld [vmem:[%s6845_s1 + $0xa40] ss:$16 sps:$4 sm:$0xff]  }
 0x10f   :  { %3343 = vmatpush1.bf16.msra.mxu0 %v4834_v28  ;;  %3671 = vmatpush1.bf16.msra.mxu1 %v4837_v29  ;;  %v4929_v28 = vld [vmem:[%s6845_s1 + $0xa48] ss:$16 sps:$4 sm:$0xff]   ;;  %v4934_v29 = vld [vmem:[%s6845_s1 + $0xa64] ss:$16 sps:$4 sm:$0xff]  }
 0x110   :  { %3344 = vmatprep.subr.bf16.mxu0 %v4842_v30  ;;  %3672 = vmatprep.subr.bf16.mxu1 %v4845_v31  ;;  %v4937_v30 = vld [vmem:[%s6845_s1 + $0xa6c] ss:$16 sps:$4 sm:$0xff]   ;;  %v4932_v31 = vld [vmem:[%s6845_s1 + $0xa60] ss:$16 sps:$4 sm:$0xff]  }
 0x113   :  { %3345 = vmatpush1.bf16.msra.mxu0 %v4840_v32  ;;  %3673 = vmatpush1.bf16.msra.mxu1 %v4843_v33  ;;  %v4935_v32 = vld [vmem:[%s6845_s1 + $0xa68] ss:$16 sps:$4 sm:$0xff]   ;;  %v4940_v33 = vld [vmem:[%s6845_s1 + $0xa84] ss:$16 sps:$4 sm:$0xff]  }
 0x114   :  { %3346 = vmatprep.subr.bf16.mxu0 %v4848_v34  ;;  %3674 = vmatprep.subr.bf16.mxu1 %v4851_v35  ;;  %v4943_v34 = vld [vmem:[%s6845_s1 + $0xa8c] ss:$16 sps:$4 sm:$0xff]   ;;  %v4938_v35 = vld [vmem:[%s6845_s1 + $0xa80] ss:$16 sps:$4 sm:$0xff]  }
 0x117   :  { %3347 = vmatpush1.bf16.msra.mxu0 %v4846_v36  ;;  %3675 = vmatpush1.bf16.msra.mxu1 %v4849_v37  ;;  %v4941_v36 = vld [vmem:[%s6845_s1 + $0xa88] ss:$16 sps:$4 sm:$0xff]   ;;  %v4946_v37 = vld [vmem:[%s6845_s1 + $0xaa4] ss:$16 sps:$4 sm:$0xff]  }
 0x118   :  { %3348 = vmatprep.subr.bf16.mxu0 %v4854_v38  ;;  %3676 = vmatprep.subr.bf16.mxu1 %v4857_v39  ;;  %v4949_v38 = vld [vmem:[%s6845_s1 + $0xaac] ss:$16 sps:$4 sm:$0xff]   ;;  %v4944_v39 = vld [vmem:[%s6845_s1 + $0xaa0] ss:$16 sps:$4 sm:$0xff]  }
 0x11b   :  { %3349 = vmatpush1.bf16.msra.mxu0 %v4852_v40  ;;  %3677 = vmatpush1.bf16.msra.mxu1 %v4855_v41  ;;  %v4947_v40 = vld [vmem:[%s6845_s1 + $0xaa8] ss:$16 sps:$4 sm:$0xff]   ;;  %v4952_v41 = vld [vmem:[%s6845_s1 + $0xac4] ss:$16 sps:$4 sm:$0xff]  }
 0x11c   :  { %3350 = vmatprep.subr.bf16.mxu0 %v4860_v42  ;;  %3678 = vmatprep.subr.bf16.mxu1 %v4863_v43  ;;  %v4955_v42 = vld [vmem:[%s6845_s1 + $0xacc] ss:$16 sps:$4 sm:$0xff]   ;;  %v4950_v43 = vld [vmem:[%s6845_s1 + $0xac0] ss:$16 sps:$4 sm:$0xff]  }
 0x11f   :  { %3351 = vmatpush1.bf16.msra.mxu0 %v4858_v44  ;;  %3679 = vmatpush1.bf16.msra.mxu1 %v4861_v45  ;;  %v4953_v44 = vld [vmem:[%s6845_s1 + $0xac8] ss:$16 sps:$4 sm:$0xff]   ;;  %v4958_v45 = vld [vmem:[%s6845_s1 + $0xae4] ss:$16 sps:$4 sm:$0xff]  }
 0x120   :  { %3352 = vmatprep.subr.bf16.mxu0 %v4866_v46  ;;  %3680 = vmatprep.subr.bf16.mxu1 %v4869_v47  ;;  %v4961_v46 = vld [vmem:[%s6845_s1 + $0xaec] ss:$16 sps:$4 sm:$0xff]   ;;  %v4956_v47 = vld [vmem:[%s6845_s1 + $0xae0] ss:$16 sps:$4 sm:$0xff]  }
 0x123   :  { %3353 = vmatpush1.bf16.msra.mxu0 %v4864_v48  ;;  %3681 = vmatpush1.bf16.msra.mxu1 %v4867_v49  ;;  %v4959_v48 = vld [vmem:[%s6845_s1 + $0xae8] ss:$16 sps:$4 sm:$0xff]   ;;  %v4964_v49 = vld [vmem:[%s6845_s1 + $0xb04] ss:$16 sps:$4 sm:$0xff]  }
 0x124   :  { %3354 = vmatprep.subr.bf16.mxu0 %v4872_v50  ;;  %3682 = vmatprep.subr.bf16.mxu1 %v4875_v51  ;;  %v4967_v50 = vld [vmem:[%s6845_s1 + $0xb0c] ss:$16 sps:$4 sm:$0xff]   ;;  %v4962_v51 = vld [vmem:[%s6845_s1 + $0xb00] ss:$16 sps:$4 sm:$0xff]  }
 0x127   :  { %3355 = vmatpush1.bf16.msra.mxu0 %v4870_v52  ;;  %3683 = vmatpush1.bf16.msra.mxu1 %v4873_v53  ;;  %v4965_v52 = vld [vmem:[%s6845_s1 + $0xb08] ss:$16 sps:$4 sm:$0xff]   ;;  %v4970_v53 = vld [vmem:[%s6845_s1 + $0xb24] ss:$16 sps:$4 sm:$0xff]  }
 0x128   :  { %3356 = vmatprep.subr.bf16.mxu0 %v4878_v54  ;;  %3684 = vmatprep.subr.bf16.mxu1 %v4881_v55  ;;  %v4973_v54 = vld [vmem:[%s6845_s1 + $0xb2c] ss:$16 sps:$4 sm:$0xff]   ;;  %v4968_v55 = vld [vmem:[%s6845_s1 + $0xb20] ss:$16 sps:$4 sm:$0xff]  }
 0x12b   :  { %3357 = vmatpush1.bf16.msra.mxu0 %v4876_v56  ;;  %3685 = vmatpush1.bf16.msra.mxu1 %v4879_v57  ;;  %v4971_v56 = vld [vmem:[%s6845_s1 + $0xb28] ss:$16 sps:$4 sm:$0xff]   ;;  %v4976_v57 = vld [vmem:[%s6845_s1 + $0xb44] ss:$16 sps:$4 sm:$0xff]  }
 0x12c   :  { %3358 = vmatprep.subr.bf16.mxu0 %v4884_v58  ;;  %3686 = vmatprep.subr.bf16.mxu1 %v4887_v59  ;;  %v4979_v58 = vld [vmem:[%s6845_s1 + $0xb4c] ss:$16 sps:$4 sm:$0xff]   ;;  %v4974_v59 = vld [vmem:[%s6845_s1 + $0xb40] ss:$16 sps:$4 sm:$0xff]  }
 0x12f   :  { %3359 = vmatpush1.bf16.msra.mxu0 %v4882_v60  ;;  %3687 = vmatpush1.bf16.msra.mxu1 %v4885_v61  ;;  %v4977_v60 = vld [vmem:[%s6845_s1 + $0xb48] ss:$16 sps:$4 sm:$0xff]   ;;  %v4982_v61 = vld [vmem:[%s6845_s1 + $0xb64] ss:$16 sps:$4 sm:$0xff]  }
 0x130   :  { %3360 = vmatprep.subr.bf16.mxu0 %v4890_v62  ;;  %3688 = vmatprep.subr.bf16.mxu1 %v4893_v63  ;;  %v4985_v62 = vld [vmem:[%s6845_s1 + $0xb6c] ss:$16 sps:$4 sm:$0xff]   ;;  %v4980_v63 = vld [vmem:[%s6845_s1 + $0xb60] ss:$16 sps:$4 sm:$0xff]  }
 0x133   :  { %3361 = vmatpush1.bf16.msra.mxu0 %v4888_v0  ;;  %3689 = vmatpush1.bf16.msra.mxu1 %v4891_v1  ;;  %v4983_v0 = vld [vmem:[%s6845_s1 + $0xb68] ss:$16 sps:$4 sm:$0xff]   ;;  %v4988_v1 = vld [vmem:[%s6845_s1 + $0xb84] ss:$16 sps:$4 sm:$0xff]  }
 0x134   :  { %3362 = vmatprep.subr.bf16.mxu0 %v4896_v2  ;;  %3690 = vmatprep.subr.bf16.mxu1 %v4899_v3  ;;  %v4991_v2 = vld [vmem:[%s6845_s1 + $0xb8c] ss:$16 sps:$4 sm:$0xff]   ;;  %v4986_v3 = vld [vmem:[%s6845_s1 + $0xb80] ss:$16 sps:$4 sm:$0xff]  }
 0x137   :  { %3363 = vmatpush1.bf16.msra.mxu0 %v4894_v4  ;;  %3691 = vmatpush1.bf16.msra.mxu1 %v4897_v5  ;;  %v4989_v4 = vld [vmem:[%s6845_s1 + $0xb88] ss:$16 sps:$4 sm:$0xff]   ;;  %v4994_v5 = vld [vmem:[%s6845_s1 + $0xba4] ss:$16 sps:$4 sm:$0xff]  }
 0x138   :  { %3364 = vmatprep.subr.bf16.mxu0 %v4902_v6  ;;  %3692 = vmatprep.subr.bf16.mxu1 %v4905_v7  ;;  %v4997_v6 = vld [vmem:[%s6845_s1 + $0xbac] ss:$16 sps:$4 sm:$0xff]   ;;  %v4992_v7 = vld [vmem:[%s6845_s1 + $0xba0] ss:$16 sps:$4 sm:$0xff]  }
 0x13b   :  { %3365 = vmatpush1.bf16.msra.mxu0 %v4900_v8  ;;  %3693 = vmatpush1.bf16.msra.mxu1 %v4903_v9  ;;  %v4995_v8 = vld [vmem:[%s6845_s1 + $0xba8] ss:$16 sps:$4 sm:$0xff]   ;;  %v5000_v9 = vld [vmem:[%s6845_s1 + $0xbc4] ss:$16 sps:$4 sm:$0xff]  }
 0x13c   :  { %3366 = vmatprep.subr.bf16.mxu0 %v4908_v10  ;;  %3694 = vmatprep.subr.bf16.mxu1 %v4911_v12  ;;  %v5003_v10 = vld [vmem:[%s6845_s1 + $0xbcc] ss:$16 sps:$4 sm:$0xff]   ;;  %v4998_v12 = vld [vmem:[%s6845_s1 + $0xbc0] ss:$16 sps:$4 sm:$0xff]  }
 0x13f   :  { %3367 = vmatpush1.bf16.msra.mxu0 %v4906_v13  ;;  %3695 = vmatpush1.bf16.msra.mxu1 %v4909_v15  ;;  %v5001_v13 = vld [vmem:[%s6845_s1 + $0xbc8] ss:$16 sps:$4 sm:$0xff]   ;;  %v5006_v15 = vld [vmem:[%s6845_s1 + $0xbe4] ss:$16 sps:$4 sm:$0xff]  }
 0x140   :  { %3377 = vmatprep.subr.bf16.mxu0 %v4916_v11  ;;  %3705 = vmatprep.subr.bf16.mxu1 %v4919_v17  ;;  %v5009_v11 = vld [vmem:[%s6845_s1 + $0xbec] ss:$16 sps:$4 sm:$0xff]   ;;  %v5004_v17 = vld [vmem:[%s6845_s1 + $0xbe0] ss:$16 sps:$4 sm:$0xff]  }
 0x142   :  { %3369 = vmatmul.mubr.bf16.vlgmr.msra.gmra.mrb[0].mxu0 %v3844_v14  ;;  %3697 = vmatmul.mubr.bf16.vlgmr.msra.gmra.mrb[0].mxu1 %v3844_v14  ;;  %v5007_v14 = vld [vmem:[%s6845_s1 + $0xbe8] ss:$16 sps:$4 sm:$0xff]  }
 0x143   :  { %3378 = vmatpush1.bf16.msra.mxu0 %v4914_v19  ;;  %3706 = vmatpush1.bf16.msra.mxu1 %v4917_v20  ;;  %v5014_v19 = vld [vmem:[%s6845_s1 + $0xc04] ss:$16 sps:$4 sm:$0xff]   ;;  %v5017_v20 = vld [vmem:[%s6845_s1 + $0xc0c] ss:$16 sps:$4 sm:$0xff]  }
 0x144   :  { %3379 = vmatprep.subr.bf16.mxu0 %v4922_v21  ;;  %3707 = vmatprep.subr.bf16.mxu1 %v4925_v16  ;;  %v3846_v21 = vcombine.low %v6234_v18, %v6234_v18  ;;  %v6437_v16 = vld [vmem:[%s6846_s0 + $0x30] sm:$0xff] }
 0x145   :  { %3409 = vmatprep.mubr.bf16.mxu0 %v3847_v22  ;;  %3737 = vmatprep.mubr.bf16.mxu1 %v3847_v22  ;;  %v5012_v22 = vld [vmem:[%s6845_s1 + $0xc00] ss:$16 sps:$4 sm:$0xff]   ;;  %v5020_v18 = vld [vmem:[%s6845_s1 + $0xc24] ss:$16 sps:$4 sm:$0xff]  }
 0x147   :  { %3380 = vmatpush1.bf16.msra.mxu0 %v4920_v23  ;;  %3708 = vmatpush1.bf16.msra.mxu1 %v4923_v24  ;;  %v5015_v23 = vld [vmem:[%s6845_s1 + $0xc08] ss:$16 sps:$4 sm:$0xff]   ;;  %v5023_v24 = vld [vmem:[%s6845_s1 + $0xc2c] ss:$16 sps:$4 sm:$0xff]  }
 0x148   :  { %3381 = vmatprep.subr.bf16.mxu0 %v4928_v25  ;;  %3709 = vmatprep.subr.bf16.mxu1 %v4931_v26  ;;  %v3849_v25 = vcombine.high %v6437_v16, %v6437_v16  ;;  %v5018_v26 = vld [vmem:[%s6845_s1 + $0xc20] ss:$16 sps:$4 sm:$0xff]  }
 0x14b   :  { %3382 = vmatpush1.bf16.msra.mxu0 %v4926_v27  ;;  %3710 = vmatpush1.bf16.msra.mxu1 %v4929_v28  ;;  %v5021_v27 = vld [vmem:[%s6845_s1 + $0xc28] ss:$16 sps:$4 sm:$0xff]   ;;  %v5026_v28 = vld [vmem:[%s6845_s1 + $0xc44] ss:$16 sps:$4 sm:$0xff]  }
 0x14c   :  { %3383 = vmatprep.subr.bf16.mxu0 %v4934_v29  ;;  %3711 = vmatprep.subr.bf16.mxu1 %v4937_v30  ;;  %v5029_v29 = vld [vmem:[%s6845_s1 + $0xc4c] ss:$16 sps:$4 sm:$0xff]   ;;  %v5024_v30 = vld [vmem:[%s6845_s1 + $0xc40] ss:$16 sps:$4 sm:$0xff]  }
 0x14f   :  { %3384 = vmatpush1.bf16.msra.mxu0 %v4932_v31  ;;  %3712 = vmatpush1.bf16.msra.mxu1 %v4935_v32  ;;  %v5027_v31 = vld [vmem:[%s6845_s1 + $0xc48] ss:$16 sps:$4 sm:$0xff]   ;;  %v5032_v32 = vld [vmem:[%s6845_s1 + $0xc64] ss:$16 sps:$4 sm:$0xff]  }
 0x150   :  { %3385 = vmatprep.subr.bf16.mxu0 %v4940_v33  ;;  %3713 = vmatprep.subr.bf16.mxu1 %v4943_v34  ;;  %v5035_v33 = vld [vmem:[%s6845_s1 + $0xc6c] ss:$16 sps:$4 sm:$0xff]   ;;  %v5030_v34 = vld [vmem:[%s6845_s1 + $0xc60] ss:$16 sps:$4 sm:$0xff]  }
 0x153   :  { %3386 = vmatpush1.bf16.msra.mxu0 %v4938_v35  ;;  %3714 = vmatpush1.bf16.msra.mxu1 %v4941_v36  ;;  %v5033_v35 = vld [vmem:[%s6845_s1 + $0xc68] ss:$16 sps:$4 sm:$0xff]   ;;  %v5038_v36 = vld [vmem:[%s6845_s1 + $0xc84] ss:$16 sps:$4 sm:$0xff]  }
 0x154   :  { %3387 = vmatprep.subr.bf16.mxu0 %v4946_v37  ;;  %3715 = vmatprep.subr.bf16.mxu1 %v4949_v38  ;;  %v5041_v37 = vld [vmem:[%s6845_s1 + $0xc8c] ss:$16 sps:$4 sm:$0xff]   ;;  %v5036_v38 = vld [vmem:[%s6845_s1 + $0xc80] ss:$16 sps:$4 sm:$0xff]  }
 0x157   :  { %3388 = vmatpush1.bf16.msra.mxu0 %v4944_v39  ;;  %3716 = vmatpush1.bf16.msra.mxu1 %v4947_v40  ;;  %v5039_v39 = vld [vmem:[%s6845_s1 + $0xc88] ss:$16 sps:$4 sm:$0xff]   ;;  %v5044_v40 = vld [vmem:[%s6845_s1 + $0xca4] ss:$16 sps:$4 sm:$0xff]  }
 0x158   :  { %3389 = vmatprep.subr.bf16.mxu0 %v4952_v41  ;;  %3717 = vmatprep.subr.bf16.mxu1 %v4955_v42  ;;  %v5047_v41 = vld [vmem:[%s6845_s1 + $0xcac] ss:$16 sps:$4 sm:$0xff]   ;;  %v5042_v42 = vld [vmem:[%s6845_s1 + $0xca0] ss:$16 sps:$4 sm:$0xff]  }
 0x15b   :  { %3390 = vmatpush1.bf16.msra.mxu0 %v4950_v43  ;;  %3718 = vmatpush1.bf16.msra.mxu1 %v4953_v44  ;;  %v5045_v43 = vld [vmem:[%s6845_s1 + $0xca8] ss:$16 sps:$4 sm:$0xff]   ;;  %v5050_v44 = vld [vmem:[%s6845_s1 + $0xcc4] ss:$16 sps:$4 sm:$0xff]  }
 0x15c   :  { %3391 = vmatprep.subr.bf16.mxu0 %v4958_v45  ;;  %3719 = vmatprep.subr.bf16.mxu1 %v4961_v46  ;;  %v5053_v45 = vld [vmem:[%s6845_s1 + $0xccc] ss:$16 sps:$4 sm:$0xff]   ;;  %v5048_v46 = vld [vmem:[%s6845_s1 + $0xcc0] ss:$16 sps:$4 sm:$0xff]  }
 0x15f   :  { %3392 = vmatpush1.bf16.msra.mxu0 %v4956_v47  ;;  %3720 = vmatpush1.bf16.msra.mxu1 %v4959_v48  ;;  %v5051_v47 = vld [vmem:[%s6845_s1 + $0xcc8] ss:$16 sps:$4 sm:$0xff]   ;;  %v5056_v48 = vld [vmem:[%s6845_s1 + $0xce4] ss:$16 sps:$4 sm:$0xff]  }
 0x160   :  { %3393 = vmatprep.subr.bf16.mxu0 %v4964_v49  ;;  %3721 = vmatprep.subr.bf16.mxu1 %v4967_v50  ;;  %v5059_v49 = vld [vmem:[%s6845_s1 + $0xcec] ss:$16 sps:$4 sm:$0xff]   ;;  %v5054_v50 = vld [vmem:[%s6845_s1 + $0xce0] ss:$16 sps:$4 sm:$0xff]  }
 0x163   :  { %3394 = vmatpush1.bf16.msra.mxu0 %v4962_v51  ;;  %3722 = vmatpush1.bf16.msra.mxu1 %v4965_v52  ;;  %v5057_v51 = vld [vmem:[%s6845_s1 + $0xce8] ss:$16 sps:$4 sm:$0xff]   ;;  %v5062_v52 = vld [vmem:[%s6845_s1 + $0xd04] ss:$16 sps:$4 sm:$0xff]  }
 0x164   :  { %3395 = vmatprep.subr.bf16.mxu0 %v4970_v53  ;;  %3723 = vmatprep.subr.bf16.mxu1 %v4973_v54  ;;  %v5065_v53 = vld [vmem:[%s6845_s1 + $0xd0c] ss:$16 sps:$4 sm:$0xff]   ;;  %v5060_v54 = vld [vmem:[%s6845_s1 + $0xd00] ss:$16 sps:$4 sm:$0xff]  }
 0x167   :  { %3396 = vmatpush1.bf16.msra.mxu0 %v4968_v55  ;;  %3724 = vmatpush1.bf16.msra.mxu1 %v4971_v56  ;;  %v5063_v55 = vld [vmem:[%s6845_s1 + $0xd08] ss:$16 sps:$4 sm:$0xff]   ;;  %v5068_v56 = vld [vmem:[%s6845_s1 + $0xd24] ss:$16 sps:$4 sm:$0xff]  }
 0x168   :  { %3397 = vmatprep.subr.bf16.mxu0 %v4976_v57  ;;  %3725 = vmatprep.subr.bf16.mxu1 %v4979_v58  ;;  %v5071_v57 = vld [vmem:[%s6845_s1 + $0xd2c] ss:$16 sps:$4 sm:$0xff]   ;;  %v5066_v58 = vld [vmem:[%s6845_s1 + $0xd20] ss:$16 sps:$4 sm:$0xff]  }
 0x16b   :  { %3398 = vmatpush1.bf16.msra.mxu0 %v4974_v59  ;;  %3726 = vmatpush1.bf16.msra.mxu1 %v4977_v60  ;;  %v5069_v59 = vld [vmem:[%s6845_s1 + $0xd28] ss:$16 sps:$4 sm:$0xff]   ;;  %v5074_v60 = vld [vmem:[%s6845_s1 + $0xd44] ss:$16 sps:$4 sm:$0xff]  }
 0x16c   :  { %3399 = vmatprep.subr.bf16.mxu0 %v4982_v61  ;;  %3727 = vmatprep.subr.bf16.mxu1 %v4985_v62  ;;  %v5077_v61 = vld [vmem:[%s6845_s1 + $0xd4c] ss:$16 sps:$4 sm:$0xff]   ;;  %v5072_v62 = vld [vmem:[%s6845_s1 + $0xd40] ss:$16 sps:$4 sm:$0xff]  }
 0x16f   :  { %3400 = vmatpush1.bf16.msra.mxu0 %v4980_v63  ;;  %3728 = vmatpush1.bf16.msra.mxu1 %v4983_v0  ;;  %v5075_v63 = vld [vmem:[%s6845_s1 + $0xd48] ss:$16 sps:$4 sm:$0xff]   ;;  %v5080_v0 = vld [vmem:[%s6845_s1 + $0xd64] ss:$16 sps:$4 sm:$0xff]  }
 0x170   :  { %3401 = vmatprep.subr.bf16.mxu0 %v4988_v1  ;;  %3729 = vmatprep.subr.bf16.mxu1 %v4991_v2  ;;  %v5083_v1 = vld [vmem:[%s6845_s1 + $0xd6c] ss:$16 sps:$4 sm:$0xff]   ;;  %v5078_v2 = vld [vmem:[%s6845_s1 + $0xd60] ss:$16 sps:$4 sm:$0xff]  }
 0x173   :  { %3402 = vmatpush1.bf16.msra.mxu0 %v4986_v3  ;;  %3730 = vmatpush1.bf16.msra.mxu1 %v4989_v4  ;;  %v5081_v3 = vld [vmem:[%s6845_s1 + $0xd68] ss:$16 sps:$4 sm:$0xff]   ;;  %v5086_v4 = vld [vmem:[%s6845_s1 + $0xd84] ss:$16 sps:$4 sm:$0xff]  }
 0x174   :  { %3403 = vmatprep.subr.bf16.mxu0 %v4994_v5  ;;  %3731 = vmatprep.subr.bf16.mxu1 %v4997_v6  ;;  %v5089_v5 = vld [vmem:[%s6845_s1 + $0xd8c] ss:$16 sps:$4 sm:$0xff]   ;;  %v5084_v6 = vld [vmem:[%s6845_s1 + $0xd80] ss:$16 sps:$4 sm:$0xff]  }
 0x177   :  { %3404 = vmatpush1.bf16.msra.mxu0 %v4992_v7  ;;  %3732 = vmatpush1.bf16.msra.mxu1 %v4995_v8  ;;  %v5087_v7 = vld [vmem:[%s6845_s1 + $0xd88] ss:$16 sps:$4 sm:$0xff]   ;;  %v5092_v8 = vld [vmem:[%s6845_s1 + $0xda4] ss:$16 sps:$4 sm:$0xff]  }
 0x178   :  { %3405 = vmatprep.subr.bf16.mxu0 %v5000_v9  ;;  %3733 = vmatprep.subr.bf16.mxu1 %v5003_v10  ;;  %v5095_v9 = vld [vmem:[%s6845_s1 + $0xdac] ss:$16 sps:$4 sm:$0xff]   ;;  %v5090_v10 = vld [vmem:[%s6845_s1 + $0xda0] ss:$16 sps:$4 sm:$0xff]  }
 0x17b   :  { %3406 = vmatpush1.bf16.msra.mxu0 %v4998_v12  ;;  %3734 = vmatpush1.bf16.msra.mxu1 %v5001_v13  ;;  %v5093_v12 = vld [vmem:[%s6845_s1 + $0xda8] ss:$16 sps:$4 sm:$0xff]   ;;  %v5098_v13 = vld [vmem:[%s6845_s1 + $0xdc4] ss:$16 sps:$4 sm:$0xff]  }
 0x17c   :  { %3407 = vmatprep.subr.bf16.mxu0 %v5006_v15  ;;  %3735 = vmatprep.subr.bf16.mxu1 %v5009_v11  ;;  %v5101_v15 = vld [vmem:[%s6845_s1 + $0xdcc] ss:$16 sps:$4 sm:$0xff]   ;;  %v5096_v11 = vld [vmem:[%s6845_s1 + $0xdc0] ss:$16 sps:$4 sm:$0xff]  }
 0x17f   :  { %3408 = vmatpush1.bf16.msra.mxu0 %v5004_v17  ;;  %3736 = vmatpush1.bf16.msra.mxu1 %v5007_v14  ;;  %v5099_v17 = vld [vmem:[%s6845_s1 + $0xdc8] ss:$16 sps:$4 sm:$0xff]   ;;  %v5104_v14 = vld [vmem:[%s6845_s1 + $0xde4] ss:$16 sps:$4 sm:$0xff]  }
 0x180   :  { %3418 = vmatprep.subr.bf16.mxu0 %v5014_v19  ;;  %3746 = vmatprep.subr.bf16.mxu1 %v5017_v20  ;;  %v5107_v19 = vld [vmem:[%s6845_s1 + $0xdec] ss:$16 sps:$4 sm:$0xff]   ;;  %v5102_v20 = vld [vmem:[%s6845_s1 + $0xde0] ss:$16 sps:$4 sm:$0xff]  }
 0x182   :  { %3410 = vmatmul.mubr.bf16.vlgmr.msra.gmra.mrb[0].mxu0 %v3846_v21  ;;  %3738 = vmatmul.mubr.bf16.vlgmr.msra.gmra.mrb[0].mxu1 %v3846_v21  ;;  %v5105_v21 = vld [vmem:[%s6845_s1 + $0xde8] ss:$16 sps:$4 sm:$0xff]  }
 0x183   :  { %3419 = vmatpush1.bf16.msra.mxu0 %v5012_v22  ;;  %3747 = vmatpush1.bf16.msra.mxu1 %v5015_v23  ;;  %v5112_v22 = vld [vmem:[%s6845_s1 + $0xe04] ss:$16 sps:$4 sm:$0xff]   ;;  %v5115_v23 = vld [vmem:[%s6845_s1 + $0xe0c] ss:$16 sps:$4 sm:$0xff]  }
 0x184   :  { %3420 = vmatprep.subr.bf16.mxu0 %v5020_v18  ;;  %3748 = vmatprep.subr.bf16.mxu1 %v5023_v24  ;;  %v3848_v18 = vcombine.low %v6437_v16, %v6437_v16  ;;  %v6638_v24 = vld [vmem:[%s6846_s0 + $0x38] sm:$0xff]  ;;  %v5118_v16 = vld [vmem:[%s6845_s1 + $0xe24] ss:$16 sps:$4 sm:$0xff]  }
 0x185   :  { %3450 = vmatprep.mubr.bf16.mxu0 %v3849_v25  ;;  %3778 = vmatprep.mubr.bf16.mxu1 %v3849_v25  ;;  %v5110_v25 = vld [vmem:[%s6845_s1 + $0xe00] ss:$16 sps:$4 sm:$0xff]  }
 0x187   :  { %3421 = vmatpush1.bf16.msra.mxu0 %v5018_v26  ;;  %3749 = vmatpush1.bf16.msra.mxu1 %v5021_v27  ;;  %v5113_v26 = vld [vmem:[%s6845_s1 + $0xe08] ss:$16 sps:$4 sm:$0xff]   ;;  %v5121_v27 = vld [vmem:[%s6845_s1 + $0xe2c] ss:$16 sps:$4 sm:$0xff]  }
 0x188   :  { %3422 = vmatprep.subr.bf16.mxu0 %v5026_v28  ;;  %3750 = vmatprep.subr.bf16.mxu1 %v5029_v29  ;;  %v3851_v28 = vcombine.high %v6638_v24, %v6638_v24  ;;  %v5116_v29 = vld [vmem:[%s6845_s1 + $0xe20] ss:$16 sps:$4 sm:$0xff]  }
 0x18b   :  { %3423 = vmatpush1.bf16.msra.mxu0 %v5024_v30  ;;  %3751 = vmatpush1.bf16.msra.mxu1 %v5027_v31  ;;  %v5119_v30 = vld [vmem:[%s6845_s1 + $0xe28] ss:$16 sps:$4 sm:$0xff]   ;;  %v5124_v31 = vld [vmem:[%s6845_s1 + $0xe44] ss:$16 sps:$4 sm:$0xff]  }
 0x18c   :  { %3424 = vmatprep.subr.bf16.mxu0 %v5032_v32  ;;  %3752 = vmatprep.subr.bf16.mxu1 %v5035_v33  ;;  %v5127_v32 = vld [vmem:[%s6845_s1 + $0xe4c] ss:$16 sps:$4 sm:$0xff]   ;;  %v5122_v33 = vld [vmem:[%s6845_s1 + $0xe40] ss:$16 sps:$4 sm:$0xff]  }
 0x18f   :  { %3425 = vmatpush1.bf16.msra.mxu0 %v5030_v34  ;;  %3753 = vmatpush1.bf16.msra.mxu1 %v5033_v35  ;;  %v5125_v34 = vld [vmem:[%s6845_s1 + $0xe48] ss:$16 sps:$4 sm:$0xff]   ;;  %v5130_v35 = vld [vmem:[%s6845_s1 + $0xe64] ss:$16 sps:$4 sm:$0xff]  }
 0x190   :  { %3426 = vmatprep.subr.bf16.mxu0 %v5038_v36  ;;  %3754 = vmatprep.subr.bf16.mxu1 %v5041_v37  ;;  %v5133_v36 = vld [vmem:[%s6845_s1 + $0xe6c] ss:$16 sps:$4 sm:$0xff]   ;;  %v5128_v37 = vld [vmem:[%s6845_s1 + $0xe60] ss:$16 sps:$4 sm:$0xff]  }
 0x193   :  { %3427 = vmatpush1.bf16.msra.mxu0 %v5036_v38  ;;  %3755 = vmatpush1.bf16.msra.mxu1 %v5039_v39  ;;  %v5131_v38 = vld [vmem:[%s6845_s1 + $0xe68] ss:$16 sps:$4 sm:$0xff]   ;;  %v5136_v39 = vld [vmem:[%s6845_s1 + $0xe84] ss:$16 sps:$4 sm:$0xff]  }
 0x194   :  { %3428 = vmatprep.subr.bf16.mxu0 %v5044_v40  ;;  %3756 = vmatprep.subr.bf16.mxu1 %v5047_v41  ;;  %v5139_v40 = vld [vmem:[%s6845_s1 + $0xe8c] ss:$16 sps:$4 sm:$0xff]   ;;  %v5134_v41 = vld [vmem:[%s6845_s1 + $0xe80] ss:$16 sps:$4 sm:$0xff]  }
 0x197   :  { %3429 = vmatpush1.bf16.msra.mxu0 %v5042_v42  ;;  %3757 = vmatpush1.bf16.msra.mxu1 %v5045_v43  ;;  %v5137_v42 = vld [vmem:[%s6845_s1 + $0xe88] ss:$16 sps:$4 sm:$0xff]   ;;  %v5142_v43 = vld [vmem:[%s6845_s1 + $0xea4] ss:$16 sps:$4 sm:$0xff]  }
 0x198   :  { %3430 = vmatprep.subr.bf16.mxu0 %v5050_v44  ;;  %3758 = vmatprep.subr.bf16.mxu1 %v5053_v45  ;;  %v5145_v44 = vld [vmem:[%s6845_s1 + $0xeac] ss:$16 sps:$4 sm:$0xff]   ;;  %v5140_v45 = vld [vmem:[%s6845_s1 + $0xea0] ss:$16 sps:$4 sm:$0xff]  }
 0x19b   :  { %3431 = vmatpush1.bf16.msra.mxu0 %v5048_v46  ;;  %3759 = vmatpush1.bf16.msra.mxu1 %v5051_v47  ;;  %v5143_v46 = vld [vmem:[%s6845_s1 + $0xea8] ss:$16 sps:$4 sm:$0xff]   ;;  %v5148_v47 = vld [vmem:[%s6845_s1 + $0xec4] ss:$16 sps:$4 sm:$0xff]  }
 0x19c   :  { %3432 = vmatprep.subr.bf16.mxu0 %v5056_v48  ;;  %3760 = vmatprep.subr.bf16.mxu1 %v5059_v49  ;;  %v5151_v48 = vld [vmem:[%s6845_s1 + $0xecc] ss:$16 sps:$4 sm:$0xff]   ;;  %v5146_v49 = vld [vmem:[%s6845_s1 + $0xec0] ss:$16 sps:$4 sm:$0xff]  }
 0x19f   :  { %3433 = vmatpush1.bf16.msra.mxu0 %v5054_v50  ;;  %3761 = vmatpush1.bf16.msra.mxu1 %v5057_v51  ;;  %v5149_v50 = vld [vmem:[%s6845_s1 + $0xec8] ss:$16 sps:$4 sm:$0xff]   ;;  %v5154_v51 = vld [vmem:[%s6845_s1 + $0xee4] ss:$16 sps:$4 sm:$0xff]  }
 0x1a0   :  { %3434 = vmatprep.subr.bf16.mxu0 %v5062_v52  ;;  %3762 = vmatprep.subr.bf16.mxu1 %v5065_v53  ;;  %v5157_v52 = vld [vmem:[%s6845_s1 + $0xeec] ss:$16 sps:$4 sm:$0xff]   ;;  %v5152_v53 = vld [vmem:[%s6845_s1 + $0xee0] ss:$16 sps:$4 sm:$0xff]  }
 0x1a3   :  { %3435 = vmatpush1.bf16.msra.mxu0 %v5060_v54  ;;  %3763 = vmatpush1.bf16.msra.mxu1 %v5063_v55  ;;  %v5155_v54 = vld [vmem:[%s6845_s1 + $0xee8] ss:$16 sps:$4 sm:$0xff]   ;;  %v5160_v55 = vld [vmem:[%s6845_s1 + $0xf04] ss:$16 sps:$4 sm:$0xff]  }
 0x1a4   :  { %3436 = vmatprep.subr.bf16.mxu0 %v5068_v56  ;;  %3764 = vmatprep.subr.bf16.mxu1 %v5071_v57  ;;  %v5163_v56 = vld [vmem:[%s6845_s1 + $0xf0c] ss:$16 sps:$4 sm:$0xff]   ;;  %v5158_v57 = vld [vmem:[%s6845_s1 + $0xf00] ss:$16 sps:$4 sm:$0xff]  }
 0x1a7   :  { %3437 = vmatpush1.bf16.msra.mxu0 %v5066_v58  ;;  %3765 = vmatpush1.bf16.msra.mxu1 %v5069_v59  ;;  %v5161_v58 = vld [vmem:[%s6845_s1 + $0xf08] ss:$16 sps:$4 sm:$0xff]   ;;  %v5166_v59 = vld [vmem:[%s6845_s1 + $0xf24] ss:$16 sps:$4 sm:$0xff]  }
 0x1a8   :  { %3438 = vmatprep.subr.bf16.mxu0 %v5074_v60  ;;  %3766 = vmatprep.subr.bf16.mxu1 %v5077_v61  ;;  %v5169_v60 = vld [vmem:[%s6845_s1 + $0xf2c] ss:$16 sps:$4 sm:$0xff]   ;;  %v5164_v61 = vld [vmem:[%s6845_s1 + $0xf20] ss:$16 sps:$4 sm:$0xff]  }
 0x1ab   :  { %3439 = vmatpush1.bf16.msra.mxu0 %v5072_v62  ;;  %3767 = vmatpush1.bf16.msra.mxu1 %v5075_v63  ;;  %v5167_v62 = vld [vmem:[%s6845_s1 + $0xf28] ss:$16 sps:$4 sm:$0xff]   ;;  %v5172_v63 = vld [vmem:[%s6845_s1 + $0xf44] ss:$16 sps:$4 sm:$0xff]  }
 0x1ac   :  { %3440 = vmatprep.subr.bf16.mxu0 %v5080_v0  ;;  %3768 = vmatprep.subr.bf16.mxu1 %v5083_v1  ;;  %v5175_v0 = vld [vmem:[%s6845_s1 + $0xf4c] ss:$16 sps:$4 sm:$0xff]   ;;  %v5170_v1 = vld [vmem:[%s6845_s1 + $0xf40] ss:$16 sps:$4 sm:$0xff]  }
 0x1af   :  { %3441 = vmatpush1.bf16.msra.mxu0 %v5078_v2  ;;  %3769 = vmatpush1.bf16.msra.mxu1 %v5081_v3  ;;  %v5173_v2 = vld [vmem:[%s6845_s1 + $0xf48] ss:$16 sps:$4 sm:$0xff]   ;;  %v5178_v3 = vld [vmem:[%s6845_s1 + $0xf64] ss:$16 sps:$4 sm:$0xff]  }
 0x1b0   :  { %3442 = vmatprep.subr.bf16.mxu0 %v5086_v4  ;;  %3770 = vmatprep.subr.bf16.mxu1 %v5089_v5  ;;  %v5181_v4 = vld [vmem:[%s6845_s1 + $0xf6c] ss:$16 sps:$4 sm:$0xff]   ;;  %v5176_v5 = vld [vmem:[%s6845_s1 + $0xf60] ss:$16 sps:$4 sm:$0xff]  }
 0x1b3   :  { %3443 = vmatpush1.bf16.msra.mxu0 %v5084_v6  ;;  %3771 = vmatpush1.bf16.msra.mxu1 %v5087_v7  ;;  %v5179_v6 = vld [vmem:[%s6845_s1 + $0xf68] ss:$16 sps:$4 sm:$0xff]   ;;  %v5184_v7 = vld [vmem:[%s6845_s1 + $0xf84] ss:$16 sps:$4 sm:$0xff]  }
 0x1b4   :  { %3444 = vmatprep.subr.bf16.mxu0 %v5092_v8  ;;  %3772 = vmatprep.subr.bf16.mxu1 %v5095_v9  ;;  %v5187_v8 = vld [vmem:[%s6845_s1 + $0xf8c] ss:$16 sps:$4 sm:$0xff]   ;;  %v5182_v9 = vld [vmem:[%s6845_s1 + $0xf80] ss:$16 sps:$4 sm:$0xff]  }
 0x1b7   :  { %3445 = vmatpush1.bf16.msra.mxu0 %v5090_v10  ;;  %3773 = vmatpush1.bf16.msra.mxu1 %v5093_v12  ;;  %v5185_v10 = vld [vmem:[%s6845_s1 + $0xf88] ss:$16 sps:$4 sm:$0xff]   ;;  %v5190_v12 = vld [vmem:[%s6845_s1 + $0xfa4] ss:$16 sps:$4 sm:$0xff]  }
 0x1b8   :  { %3446 = vmatprep.subr.bf16.mxu0 %v5098_v13  ;;  %3774 = vmatprep.subr.bf16.mxu1 %v5101_v15  ;;  %v5193_v13 = vld [vmem:[%s6845_s1 + $0xfac] ss:$16 sps:$4 sm:$0xff]   ;;  %v5188_v15 = vld [vmem:[%s6845_s1 + $0xfa0] ss:$16 sps:$4 sm:$0xff]  }
 0x1bb   :  { %3447 = vmatpush1.bf16.msra.mxu0 %v5096_v11  ;;  %3775 = vmatpush1.bf16.msra.mxu1 %v5099_v17  ;;  %v5191_v11 = vld [vmem:[%s6845_s1 + $0xfa8] ss:$16 sps:$4 sm:$0xff]   ;;  %v5196_v17 = vld [vmem:[%s6845_s1 + $0xfc4] ss:$16 sps:$4 sm:$0xff]  }
 0x1bc   :  { %3448 = vmatprep.subr.bf16.mxu0 %v5104_v14  ;;  %3776 = vmatprep.subr.bf16.mxu1 %v5107_v19  ;;  %v5199_v14 = vld [vmem:[%s6845_s1 + $0xfcc] ss:$16 sps:$4 sm:$0xff]   ;;  %v5194_v19 = vld [vmem:[%s6845_s1 + $0xfc0] ss:$16 sps:$4 sm:$0xff]  }
 0x1bf   :  { %3449 = vmatpush1.bf16.msra.mxu0 %v5102_v20  ;;  %3777 = vmatpush1.bf16.msra.mxu1 %v5105_v21  ;;  %v5197_v20 = vld [vmem:[%s6845_s1 + $0xfc8] ss:$16 sps:$4 sm:$0xff]   ;;  %v5202_v21 = vld [vmem:[%s6845_s1 + $0xfe4] ss:$16 sps:$4 sm:$0xff]  }
 0x1c0   :  { %3459 = vmatprep.subr.bf16.mxu0 %v5112_v22  ;;  %3787 = vmatprep.subr.bf16.mxu1 %v5115_v23  ;;  %v5205_v22 = vld [vmem:[%s6845_s1 + $0xfec] ss:$16 sps:$4 sm:$0xff]   ;;  %v5200_v23 = vld [vmem:[%s6845_s1 + $0xfe0] ss:$16 sps:$4 sm:$0xff]  }
 0x1c2   :  { %3451 = vmatmul.mubr.bf16.vlgmr.msra.gmra.mrb[0].mxu0 %v3848_v18  ;;  %3779 = vmatmul.mubr.bf16.vlgmr.msra.gmra.mrb[0].mxu1 %v3848_v18  ;;  %v5203_v18 = vld [vmem:[%s6845_s1 + $0xfe8] ss:$16 sps:$4 sm:$0xff]  }
 0x1c3   :  { %3460 = vmatpush1.bf16.msra.mxu0 %v5110_v25  ;;  %3788 = vmatpush1.bf16.msra.mxu1 %v5113_v26  ;;  %v3850_v25 = vcombine.low %v6638_v24, %v6638_v24  ;;  %v536_v26 = vlaneseq }
 0x1c4   :  { %3461 = vmatprep.subr.bf16.mxu0 %v5118_v16  ;;  %3789 = vmatprep.subr.bf16.mxu1 %v5121_v27 }
 0x1c5   :  { %3491 = vmatprep.mubr.bf16.mxu0 %v3851_v28  ;;  %3819 = vmatprep.mubr.bf16.mxu1 %v3851_v28  ;;  %v537_v16 = vshrl.u32 %v536_v26, 7 }
 0x1c7   :  { %3462 = vmatpush1.bf16.msra.mxu0 %v5116_v29  ;;  %3790 = vmatpush1.bf16.msra.mxu1 %v5119_v30  ;;  %v538_v27 = vsub.s32 0, %v537_v16  ;;  %v546_v28 = vsub.s32 2, %v537_v16  ;;  %v534_v29 = vld [vmem:[%s6847_s2] sm:$0xf]  ;;  %v542_v30 = vsub.s32 1, %v537_v16 }
 0x1c8   :  { %3463 = vmatprep.subr.bf16.mxu0 %v5124_v31  ;;  %3791 = vmatprep.subr.bf16.mxu1 %v5127_v32  ;;  %v550_v31 = vsub.s32 3, %v537_v16 }
 0x1c9   :  { %v539_v32 = vrot.slane %v534_v29, %v538_v27 }
 0x1cb   :  { %3464 = vmatpush1.bf16.msra.mxu0 %v5122_v33  ;;  %3792 = vmatpush1.bf16.msra.mxu1 %v5125_v34  ;;  %v547_v33 = vrot.slane %v534_v29, %v546_v28  ;;  %v543_v34 = vrot.slane %v534_v29, %v542_v30 }
 0x1cc   :  { %3465 = vmatprep.subr.bf16.mxu0 %v5130_v35  ;;  %3793 = vmatprep.subr.bf16.mxu1 %v5133_v36  ;;  %v551_v35 = vrot.slane %v534_v29, %v550_v31 }
 0x1cf   :  { %3466 = vmatpush1.bf16.msra.mxu0 %v5128_v37  ;;  %3794 = vmatpush1.bf16.msra.mxu1 %v5131_v38 }
 0x1d0   :  { %3467 = vmatprep.subr.bf16.mxu0 %v5136_v39  ;;  %3795 = vmatprep.subr.bf16.mxu1 %v5139_v40 }
 0x1d3   :  { %3468 = vmatpush1.bf16.msra.mxu0 %v5134_v41  ;;  %3796 = vmatpush1.bf16.msra.mxu1 %v5137_v42 }
 0x1d4   :  { %3469 = vmatprep.subr.bf16.mxu0 %v5142_v43  ;;  %3797 = vmatprep.subr.bf16.mxu1 %v5145_v44 }
 0x1d7   :  { %3470 = vmatpush1.bf16.msra.mxu0 %v5140_v45  ;;  %3798 = vmatpush1.bf16.msra.mxu1 %v5143_v46 }
 0x1d8   :  { %3471 = vmatprep.subr.bf16.mxu0 %v5148_v47  ;;  %3799 = vmatprep.subr.bf16.mxu1 %v5151_v48 }
 0x1db   :  { %3472 = vmatpush1.bf16.msra.mxu0 %v5146_v49  ;;  %3800 = vmatpush1.bf16.msra.mxu1 %v5149_v50 }
 0x1dc   :  { %3473 = vmatprep.subr.bf16.mxu0 %v5154_v51  ;;  %3801 = vmatprep.subr.bf16.mxu1 %v5157_v52 }
 0x1df   :  { %3474 = vmatpush1.bf16.msra.mxu0 %v5152_v53  ;;  %3802 = vmatpush1.bf16.msra.mxu1 %v5155_v54 }
 0x1e0   :  { %3475 = vmatprep.subr.bf16.mxu0 %v5160_v55  ;;  %3803 = vmatprep.subr.bf16.mxu1 %v5163_v56 }
 0x1e3   :  { %3476 = vmatpush1.bf16.msra.mxu0 %v5158_v57  ;;  %3804 = vmatpush1.bf16.msra.mxu1 %v5161_v58 }
 0x1e4   :  { %3477 = vmatprep.subr.bf16.mxu0 %v5166_v59  ;;  %3805 = vmatprep.subr.bf16.mxu1 %v5169_v60 }
 0x1e7   :  { %3478 = vmatpush1.bf16.msra.mxu0 %v5164_v61  ;;  %3806 = vmatpush1.bf16.msra.mxu1 %v5167_v62 }
 0x1e8   :  { %3479 = vmatprep.subr.bf16.mxu0 %v5172_v63  ;;  %3807 = vmatprep.subr.bf16.mxu1 %v5175_v0 }
 0x1eb   :  { %3480 = vmatpush1.bf16.msra.mxu0 %v5170_v1  ;;  %3808 = vmatpush1.bf16.msra.mxu1 %v5173_v2 }
 0x1ec   :  { %3481 = vmatprep.subr.bf16.mxu0 %v5178_v3  ;;  %3809 = vmatprep.subr.bf16.mxu1 %v5181_v4 }
 0x1ef   :  { %3482 = vmatpush1.bf16.msra.mxu0 %v5176_v5  ;;  %3810 = vmatpush1.bf16.msra.mxu1 %v5179_v6 }
 0x1f0   :  { %3483 = vmatprep.subr.bf16.mxu0 %v5184_v7  ;;  %3811 = vmatprep.subr.bf16.mxu1 %v5187_v8 }
 0x1f3   :  { %3484 = vmatpush1.bf16.msra.mxu0 %v5182_v9  ;;  %3812 = vmatpush1.bf16.msra.mxu1 %v5185_v10 }
 0x1f4   :  { %3485 = vmatprep.subr.bf16.mxu0 %v5190_v12  ;;  %3813 = vmatprep.subr.bf16.mxu1 %v5193_v13 }
 0x1f7   :  { %3486 = vmatpush1.bf16.msra.mxu0 %v5188_v15  ;;  %3814 = vmatpush1.bf16.msra.mxu1 %v5191_v11 }
 0x1f8   :  { %3487 = vmatprep.subr.bf16.mxu0 %v5196_v17  ;;  %3815 = vmatprep.subr.bf16.mxu1 %v5199_v14 }
 0x1fb   :  { %3488 = vmatpush1.bf16.msra.mxu0 %v5194_v19  ;;  %3816 = vmatpush1.bf16.msra.mxu1 %v5197_v20 }
 0x1fc   :  { %3489 = vmatprep.subr.bf16.mxu0 %v5202_v21  ;;  %3817 = vmatprep.subr.bf16.mxu1 %v5205_v22 }
 0x1ff   :  { %3490 = vmatpush1.bf16.msra.mxu0 %v5200_v23  ;;  %3818 = vmatpush1.bf16.msra.mxu1 %v5203_v18 }
 0x202   :  { %3492 = vmatmul.mubr.bf16.vlgmr.msra.gmra.mrb[0].mxu0 %v3850_v25  ;;  %3820 = vmatmul.mubr.bf16.vlgmr.msra.gmra.mrb[0].mxu1 %v3850_v25 }
 0x2d5   :  { %v3493_v36 = vpop.f32.mrb[0].mxu0  ;;  %v3821_v24 = vpop.f32.mrb[0].mxu1 }
 0x2d6   :  { %v4364_v37 = vadd.f32 %v3493_v36, %v539_v32  ;;  %v4366_v38 = vadd.f32 %v3821_v24, %v547_v33  ;;  %v3495_v39 = vpop.f32.mrb[1].mxu0  ;;  %v3823_v40 = vpop.f32.mrb[1].mxu1 }
 0x2d7   :  { %v4365_v41 = vadd.f32 %v3495_v39, %v543_v34  ;;  %v4367_v42 = vadd.f32 %v3823_v40, %v551_v35  ;;  %v3497_v43 = vpop.f32.mrb[2].mxu0  ;;  %v3825_v44 = vpop.f32.mrb[2].mxu1 }
 0x2d8   :  { %3828 = vst [vmem:[%s6848_s3] sm:$0xff] %v4364_v37  ;;  %3830 = vst [vmem:[%s6848_s3 + $0x10] sm:$0xff] %v4366_v38  ;;  %v3498_v45 = vpop.f32.mrb[3].mxu0  ;;  %v3826_v46 = vpop.f32.mrb[3].mxu1 }
 0x2d9   :  { %3829 = vst [vmem:[%s6848_s3 + $0x8] sm:$0xff] %v4365_v41  ;;  %3831 = vst [vmem:[%s6848_s3 + $0x18] sm:$0xff] %v4367_v42 }

</bundles_post_ra>
